<compile_context>
chip_gen: v5e
topology: v5e:2x2
jax: 0.10.0
libtpu: 0.0.40
codegen_flags: <defaults>
</compile_context>

<pallas_src>
import jax
import jax.numpy as jnp
from jax.experimental import pallas as pl
from jax.experimental.pallas import tpu as pltpu

DIM = 32             # params.dim == embedding_dim
TIME_DIM = 32        # per-step time feature dim (emb || time == 2*DIM)
SEQ = 8              # history length (== TPU sublane count)
VOCAB = 64
USER_NUM = 16
TF_DIM = 6           # global time_features width (output_linear in = 3*dim + 6)
NEG_SLOPE = 0.01     # nn.LeakyReLU default
OUT_PAD = 128        # lane-dense padded logits width (real logits = first 2 lanes)
SCALE = float(DIM) ** -0.5
TILE_B_MAX = 256     # examples per grid step (v5e-safe; raise on v6e if desired)

X_WIDTH = 3 * (2 * DIM)                 # 192 : [x_reco | x_search | x_open]
QKV_WIDTH = 3 * (3 * DIM) + 2 * DIM     # 352 : 3 towers' QKV + repeat K||V


def _leaky_relu(x):
    return jnp.where(x > 0, x, NEG_SLOPE * x)


def _round_up(x, m):
    return (x + m - 1) // m * m


# --------------------------- single fused forward kernel ---------------------------
def fused_forward_kernel(x_ref, user_ref, tf_ref,
                         wbig_ref, wq_rep_ref,
                         w1_ref, b1_ref, w2_ref, b2_ref,
                         w3_ref, b3_ref, w4_ref, b4_ref, w5_ref, b5_ref,
                         out_ref):
    rows = x_ref.shape[0]            # tile_b * SEQ
    tb = rows // SEQ

    # One lane-dense MXU matmul for every projection: 3 towers' fused QKV
    # (block-diagonal) plus the target-attention K||V of the search tower.
    big = jnp.dot(x_ref[...], wbig_ref[...],
                  preferred_element_type=jnp.float32)            # (rows, 352) f32
    big3 = big.reshape(tb, SEQ, QKV_WIDTH)                       # layout-preserving (SEQ == 8)

    def tower_pool(qkv):
        # qkv: (tb, SEQ, 3*DIM) -> mean-pooled self-attention output (tb, DIM)
        q = qkv[:, :, 0:DIM].astype(jnp.bfloat16)
        k = qkv[:, :, DIM:2 * DIM].astype(jnp.bfloat16)
        v = qkv[:, :, 2 * DIM:3 * DIM].astype(jnp.bfloat16)
        s = jnp.einsum('bqd,bkd->bqk', q, k,
                       preferred_element_type=jnp.float32) * SCALE          # (tb, S, S)
        s = s - jnp.max(s, axis=-1, keepdims=True)
        p = jnp.exp(s)
        p = p * pl.reciprocal(jnp.sum(p, axis=-1, keepdims=True), approx=True)
        o3 = jnp.einsum('bqk,bkd->bqd', p.astype(jnp.bfloat16), v,
                        preferred_element_type=jnp.float32)                 # (tb, S, DIM)
        return jnp.mean(o3, axis=1)                                         # mean pool -> (tb, DIM)

    out_reco = tower_pool(big3[:, :, 0:96])
    out_search = tower_pool(big3[:, :, 96:192])
    out_open = tower_pool(big3[:, :, 192:288])

    query = jnp.concatenate([out_reco, out_search, out_open], axis=-1)      # (tb, 3*DIM) f32
    qb = query.astype(jnp.bfloat16)

    # ---- TargetAttention(3*dim, 2*dim, dim): one query per example ----
    q_rep = jnp.dot(qb, wq_rep_ref[...], preferred_element_type=jnp.float32)   # (tb, DIM)
    q3 = jax.lax.broadcast_in_dim(q_rep, (tb, SEQ, DIM), (0, 2)).astype(jnp.bfloat16)
    kv3 = big3[:, :, 288:352]                                                  # (tb, S, 2*DIM)
    k3 = kv3[:, :, 0:DIM].astype(jnp.bfloat16)
    v3 = kv3[:, :, DIM:2 * DIM].astype(jnp.bfloat16)
    s = jnp.einsum('bqd,bkd->bqk', q3, k3,
                   preferred_element_type=jnp.float32) * SCALE                 # (tb, S, S), identical rows
    s = s - jnp.max(s, axis=-1, keepdims=True)
    p = jnp.exp(s)
    p = p * pl.reciprocal(jnp.sum(p, axis=-1, keepdims=True), approx=True)
    o3 = jnp.einsum('bqk,bkd->bqd', p.astype(jnp.bfloat16), v3,
                    preferred_element_type=jnp.float32)                        # (tb, S, DIM), identical rows
    out_rep = jnp.mean(o3, axis=1)                                             # (tb, DIM)

    # ---- head MLPs on de-replicated (tb, .) rows ----
    h = _leaky_relu(jnp.dot(qb, w1_ref[...], preferred_element_type=jnp.float32) + b1_ref[...])
    hist = _leaky_relu(jnp.dot(h.astype(jnp.bfloat16), w2_ref[...],
                               preferred_element_type=jnp.float32) + b2_ref[...])
    # [hist(32) | user(32) | repeat(32) | time(6)+pad(26)] -> exactly 128 lanes
    feat = jnp.concatenate([hist, user_ref[...], out_rep, tf_ref[...]], axis=-1)   # (tb, 128) f32
    z = _leaky_relu(jnp.dot(feat.astype(jnp.bfloat16), w3_ref[...],
                            preferred_element_type=jnp.float32) + b3_ref[...])
    z = _leaky_relu(jnp.dot(z.astype(jnp.bfloat16), w4_ref[...],
                            preferred_element_type=jnp.float32) + b4_ref[...])
    out_ref[...] = (jnp.dot(z.astype(jnp.bfloat16), w5_ref[...],
                            preferred_element_type=jnp.float32) + b5_ref[...])      # (tb, 128) lane-dense store


# --------------------------------- wrapper ---------------------------------
def _pad_batch(x, target_b):
    b = x.shape[0]
    if target_b == b:
        return x
    return jnp.pad(x, [(0, target_b - b)] + [(0, 0)] * (x.ndim - 1))


def _pad_cols(x, width):
    if x.shape[-1] == width:
        return x
    return jnp.pad(x, ((0, 0), (0, width - x.shape[-1])))


def run_fused_forward(p, x_reco, x_search, x_open, user_feature, time_features):
    B = x_reco.shape[0]
    B_pad = _round_up(B, 8)
    tile_b = min(TILE_B_MAX, B_pad)
    if B_pad >= 16 and tile_b == B_pad:
        # at least 2 tiles so the parallel grid axis can shard across v7x's 2 TCs
        tile_b = _round_up(B_pad // 2, 8)
    B_pad = _round_up(B_pad, tile_b)
    tile_rows = tile_b * SEQ
    n_tiles = B_pad // tile_b
    rows = B_pad * SEQ

    # ---- activations: one lane-dense bf16 slab for the towers, compact user/tf ----
    x_all = jnp.concatenate([x_reco, x_search, x_open], axis=-1)              # (B, S, 192)
    x_all = _pad_batch(x_all, B_pad).reshape(rows, X_WIDTH).astype(jnp.bfloat16)
    user2 = _pad_cols(_pad_batch(user_feature, B_pad), DIM).astype(jnp.float32)   # (B_pad, 32)
    tf2 = _pad_cols(_pad_batch(time_features, B_pad), DIM).astype(jnp.float32)    # (B_pad, 32): 6 real + pad

    # ---- weights: fold the (emb||time)->dim projection into Q/K/V, build block-diag ----
    def fuse_qkv(tower_params):
        wp, wq, wk, wv = tower_params
        return jnp.concatenate([wp @ wq, wp @ wk, wp @ wv], axis=1)           # (2*DIM, 3*DIM)

    wqkv_r = fuse_qkv(p["reco_tf"])
    wqkv_s = fuse_qkv(p["search_tf"])
    wqkv_o = fuse_qkv(p["open_search_tf"])
    wq_rep, wk_rep, wv_rep = p["repeat"]
    wkv_rep = jnp.concatenate([wk_rep, wv_rep], axis=1)                       # (2*DIM, 2*DIM)

    wbig = jnp.zeros((X_WIDTH, QKV_WIDTH), jnp.float32)
    wbig = wbig.at[0:64, 0:96].set(wqkv_r)            # x_reco rows   -> tower r QKV
    wbig = wbig.at[64:128, 96:192].set(wqkv_s)        # x_search rows -> tower s QKV
    wbig = wbig.at[128:192, 192:288].set(wqkv_o)      # x_open rows   -> tower o QKV
    wbig = wbig.at[64:128, 288:352].set(wkv_rep)      # x_search rows -> repeat K||V
    wbig = wbig.astype(jnp.bfloat16)

    (w1, b1), (w2, b2), (w3, b3), (w4, b4), (w5, b5) = p["head"]
    w3p = jnp.pad(w3, ((0, 4 * DIM - w3.shape[0]), (0, 0)))                   # (102,96) -> (128,96)
    w5p = jnp.pad(w5, ((0, 0), (0, OUT_PAD - w5.shape[1])))                   # (32,2)   -> (32,128)
    b5p = jnp.pad(b5, ((0, 0), (0, OUT_PAD - b5.shape[1])))                   # (1,2)    -> (1,128)
    wq_rep_b = wq_rep.astype(jnp.bfloat16)
    w1b = w1.astype(jnp.bfloat16)
    w2b = w2.astype(jnp.bfloat16)
    w3b = w3p.astype(jnp.bfloat16)
    w4b = w4.astype(jnp.bfloat16)
    w5b = w5p.astype(jnp.bfloat16)

    def seq_rows_spec(width):
        return pl.BlockSpec((tile_rows, width), lambda i: (i, 0))

    def ex_rows_spec(width):
        return pl.BlockSpec((tile_b, width), lambda i: (i, 0))

    def w_spec(w):
        return pl.BlockSpec(w.shape, lambda i: (0,) * w.ndim)

    # advisory cost estimate so XLA schedules the surrounding gathers sensibly
    head_flops = 2 * (96 * 64 + 64 * 32 + 128 * 96 + 96 * 32 + 32 * OUT_PAD + 96 * 32)
    attn_flops = 4 * 2 * SEQ * SEQ * DIM * 2          # 4 attentions: QK^T + PV
    flops = 2 * rows * X_WIDTH * QKV_WIDTH + B_pad * (head_flops + attn_flops)
    weight_args = (wbig, wq_rep_b, w1b, b1, w2b, b2, w3b, b3, w4b, b4, w5b, b5p)
    weights_bytes = sum(int(a.size) * a.dtype.itemsize for a in weight_args)
    bytes_accessed = (int(x_all.size) * 2 + int(user2.size) * 4 + int(tf2.size) * 4
                      + B_pad * OUT_PAD * 4 + n_tiles * weights_bytes)
    cost = pl.CostEstimate(flops=int(flops),
                           transcendentals=int(B_pad * 4 * SEQ * SEQ),
                           bytes_accessed=int(bytes_accessed))

    out = pl.pallas_call(
        fused_forward_kernel,
        out_shape=jax.ShapeDtypeStruct((B_pad, OUT_PAD), jnp.float32),
        grid=(n_tiles,),
        in_specs=[
            seq_rows_spec(X_WIDTH),
            ex_rows_spec(DIM), ex_rows_spec(DIM),
            w_spec(wbig), w_spec(wq_rep_b),
            w_spec(w1b), w_spec(b1), w_spec(w2b), w_spec(b2),
            w_spec(w3b), w_spec(b3), w_spec(w4b), w_spec(b4),
            w_spec(w5b), w_spec(b5p),
        ],
        out_specs=pl.BlockSpec((tile_b, OUT_PAD), lambda i: (i, 0)),
        compiler_params=pltpu.CompilerParams(dimension_semantics=("parallel",)),
        cost_estimate=cost,
    )(x_all, user2, tf2,
      wbig, wq_rep_b,
      w1b, b1, w2b, b2, w3b, b3, w4b, b4, w5b, b5p)

    # one row per example already; keep the 2 real logit lanes.
    return out[:B, :2]


# ---------------- deterministic parameter construction ----------------
def _init_linear(key, fan_in, fan_out):
    k1, k2 = jax.random.split(key)
    scale = fan_in ** -0.5
    w = jax.random.uniform(k1, (fan_in, fan_out), jnp.float32, -scale, scale)
    b = jax.random.uniform(k2, (1, fan_out), jnp.float32, -scale, scale)
    return w, b


def _init_mat(key, fan_in, fan_out):
    return jax.random.uniform(key, (fan_in, fan_out), jnp.float32,
                              -(fan_in ** -0.5), fan_in ** -0.5)


def make_params(seed=42):
    keys = jax.random.split(jax.random.PRNGKey(seed), 32)
    ki = iter(keys)
    p = {}
    p["reco_embedding"] = jax.random.normal(next(ki), (VOCAB, DIM), jnp.float32) * 0.02
    p["search_embedding"] = jax.random.normal(next(ki), (VOCAB, DIM), jnp.float32) * 0.02
    p["user_embedding"] = jax.random.normal(next(ki), (USER_NUM, DIM), jnp.float32) * 0.02

    def tf_params():
        return (_init_mat(next(ki), 2 * DIM, DIM),   # input proj (emb || time -> dim)
                _init_mat(next(ki), DIM, DIM),       # Wq
                _init_mat(next(ki), DIM, DIM),       # Wk
                _init_mat(next(ki), DIM, DIM))       # Wv

    p["reco_tf"] = tf_params()
    p["search_tf"] = tf_params()
    p["open_search_tf"] = tf_params()

    # TargetAttention(3*dim, 2*dim, dim)
    p["repeat"] = (_init_mat(next(ki), 3 * DIM, DIM),   # Wq
                   _init_mat(next(ki), 2 * DIM, DIM),   # Wk
                   _init_mat(next(ki), 2 * DIM, DIM))   # Wv

    # linear1: 3*dim -> 2*dim -> dim ; output_linear: 3*dim+6 -> 3*dim -> dim -> 2
    p["head"] = (
        _init_linear(next(ki), 3 * DIM, 2 * DIM),
        _init_linear(next(ki), 2 * DIM, DIM),
        _init_linear(next(ki), 3 * DIM + TF_DIM, 3 * DIM),
        _init_linear(next(ki), 3 * DIM, DIM),
        _init_linear(next(ki), DIM, 2),
    )
    return p


# ---------------- forward (embedding gathers + concat are plain-JAX glue) ----------------
def forward(p, reco_history, search_history, open_search_history,
            time_features, user_id, reco_time, search_time, open_search_time):
    reco_emb = jnp.take(p["reco_embedding"], reco_history, axis=0)            # (B,S,DIM)
    search_emb = jnp.take(p["search_embedding"], search_history, axis=0)
    # open_search tower shares the search embedding table, matching the PyTorch reference
    open_emb = jnp.take(p["search_embedding"], open_search_history, axis=0)
    user_feature = jnp.take(p["user_embedding"], user_id, axis=0)             # (B,DIM)

    x_reco = jnp.concatenate([reco_emb, reco_time], axis=-1)                  # (B,S,2*DIM)
    x_search = jnp.concatenate([search_emb, search_time], axis=-1)            # also the repeat-attn keys
    x_open = jnp.concatenate([open_emb, open_search_time], axis=-1)

    return run_fused_forward(p, x_reco, x_search, x_open, user_feature, time_features)  # (B,2)


if __name__ == "__main__":
    B = 2
    key = jax.random.PRNGKey(0)
    k = jax.random.split(key, 8)

    reco_history = jax.random.randint(k[0], (B, SEQ), 0, VOCAB, dtype=jnp.int32)
    search_history = jax.random.randint(k[1], (B, SEQ), 0, VOCAB, dtype=jnp.int32)
    open_search_history = jax.random.randint(k[2], (B, SEQ), 0, VOCAB, dtype=jnp.int32)
    user_id = jax.random.randint(k[3], (B,), 0, USER_NUM, dtype=jnp.int32)
    time_features = jax.random.normal(k[4], (B, TF_DIM), jnp.float32)
    reco_time = jax.random.normal(k[5], (B, SEQ, TIME_DIM), jnp.float32)
    search_time = jax.random.normal(k[6], (B, SEQ, TIME_DIM), jnp.float32)
    open_search_time = jax.random.normal(k[7], (B, SEQ, TIME_DIM), jnp.float32)

    params = make_params()

    out = jax.jit(forward)(params, reco_history, search_history, open_search_history,
                           time_features, user_id, reco_time, search_time, open_search_time)
    out = jax.block_until_ready(out)
    assert out.shape == (B, 2), out.shape
    print("KERNEL_OK")
</pallas_src>

<mosaic_0001>
module attributes {stable_mosaic.version = 11 : i64} {
  func.func @fused_forward_kernel(%arg0: i32, %arg1: memref<64x192xbf16, #tpu.memory_space<vmem>>, %arg2: memref<8x32xf32, #tpu.memory_space<vmem>>, %arg3: memref<8x32xf32, #tpu.memory_space<vmem>>, %arg4: memref<192x352xbf16, #tpu.memory_space<vmem>>, %arg5: memref<96x32xbf16, #tpu.memory_space<vmem>>, %arg6: memref<96x64xbf16, #tpu.memory_space<vmem>>, %arg7: memref<1x64xf32, #tpu.memory_space<vmem>>, %arg8: memref<64x32xbf16, #tpu.memory_space<vmem>>, %arg9: memref<1x32xf32, #tpu.memory_space<vmem>>, %arg10: memref<128x96xbf16, #tpu.memory_space<vmem>>, %arg11: memref<1x96xf32, #tpu.memory_space<vmem>>, %arg12: memref<96x32xbf16, #tpu.memory_space<vmem>>, %arg13: memref<1x32xf32, #tpu.memory_space<vmem>>, %arg14: memref<32x128xbf16, #tpu.memory_space<vmem>>, %arg15: memref<1x128xf32, #tpu.memory_space<vmem>>, %arg16: memref<8x128xf32, #tpu.memory_space<vmem>>) attributes {dimension_semantics = [#tpu.dimension_semantics<parallel>], iteration_bounds = array<i64: 1>, scalar_prefetch = 0 : i64, scratch_operands = 0 : i64, tpu.core_type = #tpu.core_type<tc>, window_params = [{transform_indices = @transform_0, window_bounds = array<i64: 64, 192>}, {transform_indices = @transform_1, window_bounds = array<i64: 8, 32>}, {transform_indices = @transform_2, window_bounds = array<i64: 8, 32>}, {pipeline_mode = #tpu.pipeline_mode<synchronous>, transform_indices = @transform_3, window_bounds = array<i64: 192, 352>}, {pipeline_mode = #tpu.pipeline_mode<synchronous>, transform_indices = @transform_4, window_bounds = array<i64: 96, 32>}, {pipeline_mode = #tpu.pipeline_mode<synchronous>, transform_indices = @transform_5, window_bounds = array<i64: 96, 64>}, {pipeline_mode = #tpu.pipeline_mode<synchronous>, transform_indices = @transform_6, window_bounds = array<i64: 1, 64>}, {pipeline_mode = #tpu.pipeline_mode<synchronous>, transform_indices = @transform_7, window_bounds = array<i64: 64, 32>}, {pipeline_mode = #tpu.pipeline_mode<synchronous>, transform_indices = @transform_8, window_bounds = array<i64: 1, 32>}, {pipeline_mode = #tpu.pipeline_mode<synchronous>, transform_indices = @transform_9, window_bounds = array<i64: 128, 96>}, {pipeline_mode = #tpu.pipeline_mode<synchronous>, transform_indices = @transform_10, window_bounds = array<i64: 1, 96>}, {pipeline_mode = #tpu.pipeline_mode<synchronous>, transform_indices = @transform_11, window_bounds = array<i64: 96, 32>}, {pipeline_mode = #tpu.pipeline_mode<synchronous>, transform_indices = @transform_12, window_bounds = array<i64: 1, 32>}, {pipeline_mode = #tpu.pipeline_mode<synchronous>, transform_indices = @transform_13, window_bounds = array<i64: 32, 128>}, {pipeline_mode = #tpu.pipeline_mode<synchronous>, transform_indices = @transform_14, window_bounds = array<i64: 1, 128>}, {transform_indices = @transform_15, window_bounds = array<i64: 8, 128>}]} {
    %c0 = arith.constant 0 : index
    %c0_0 = arith.constant 0 : index
    %0 = vector.load %arg1[%c0, %c0_0] : memref<64x192xbf16, #tpu.memory_space<vmem>>, vector<64x192xbf16>
    %c0_1 = arith.constant 0 : index
    %c0_2 = arith.constant 0 : index
    %1 = vector.load %arg4[%c0_1, %c0_2] : memref<192x352xbf16, #tpu.memory_space<vmem>>, vector<192x352xbf16>
    %cst = arith.constant dense<0.000000e+00> : vector<64x352xf32>
    %2 = tpu.matmul %0, %1, %cst {dimension_numbers = #tpu.dot_dimension_numbers<[1], [0], [0], [1], [0, 0, 1, 1], [], []>} : vector<64x192xbf16>, vector<192x352xbf16>, vector<64x352xf32> -> vector<64x352xf32>
    %3 = vector.shape_cast %2 : vector<64x352xf32> to vector<8x8x352xf32>
    %4 = vector.extract_strided_slice %3 {offsets = [0, 0, 0], sizes = [8, 8, 96], strides = [1, 1, 1]} : vector<8x8x352xf32> to vector<8x8x96xf32>
    %5 = vector.extract_strided_slice %4 {offsets = [0, 0, 0], sizes = [8, 8, 32], strides = [1, 1, 1]} : vector<8x8x96xf32> to vector<8x8x32xf32>
    %6 = arith.truncf %5 : vector<8x8x32xf32> to vector<8x8x32xbf16>
    %7 = vector.extract_strided_slice %4 {offsets = [0, 0, 32], sizes = [8, 8, 32], strides = [1, 1, 1]} : vector<8x8x96xf32> to vector<8x8x32xf32>
    %8 = arith.truncf %7 : vector<8x8x32xf32> to vector<8x8x32xbf16>
    %9 = vector.extract_strided_slice %4 {offsets = [0, 0, 64], sizes = [8, 8, 32], strides = [1, 1, 1]} : vector<8x8x96xf32> to vector<8x8x32xf32>
    %10 = arith.truncf %9 : vector<8x8x32xf32> to vector<8x8x32xbf16>
    "tpu.trace_start"() <{level = 10 : i32, message = "bqd,bkd->bqk"}> : () -> ()
    %cst_3 = arith.constant dense<0.000000e+00> : vector<8x8x8xf32>
    %11 = tpu.matmul %6, %8, %cst_3 {dimension_numbers = #tpu.dot_dimension_numbers<[2], [2], [1], [1], [0, 0, 0, 1, 1, 1], [0], [0]>} : vector<8x8x32xbf16>, vector<8x8x32xbf16>, vector<8x8x8xf32> -> vector<8x8x8xf32>
    "tpu.trace_stop"() : () -> ()
    %cst_4 = arith.constant 0.176776692 : f32
    %12 = vector.broadcast %cst_4 : f32 to vector<8x8x8xf32>
    %13 = arith.mulf %11, %12 : vector<8x8x8xf32>
    %cst_5 = arith.constant dense<0xFF800000> : vector<8x8xf32>
    %14 = vector.multi_reduction <maximumf>, %13, %cst_5 [2] : vector<8x8x8xf32> to vector<8x8xf32>
    %15 = vector.shape_cast %14 : vector<8x8xf32> to vector<8x8x1xf32>
    %16 = vector.broadcast %15 : vector<8x8x1xf32> to vector<8x8x8xf32>
    %17 = arith.subf %13, %16 : vector<8x8x8xf32>
    %18 = math.exp %17 : vector<8x8x8xf32>
    %cst_6 = arith.constant dense<0.000000e+00> : vector<8x8xf32>
    %19 = vector.multi_reduction <add>, %18, %cst_6 [2] : vector<8x8x8xf32> to vector<8x8xf32>
    %20 = vector.shape_cast %19 : vector<8x8xf32> to vector<8x8x1xf32>
    %21 = tpu.reciprocal %20 {approx = true} : vector<8x8x1xf32> -> vector<8x8x1xf32>
    %22 = vector.broadcast %21 : vector<8x8x1xf32> to vector<8x8x8xf32>
    %23 = arith.mulf %18, %22 : vector<8x8x8xf32>
    %24 = arith.truncf %23 : vector<8x8x8xf32> to vector<8x8x8xbf16>
    "tpu.trace_start"() <{level = 10 : i32, message = "bqk,bkd->bqd"}> : () -> ()
    %cst_7 = arith.constant dense<0.000000e+00> : vector<8x8x32xf32>
    %25 = tpu.matmul %24, %10, %cst_7 {dimension_numbers = #tpu.dot_dimension_numbers<[2], [1], [1], [2], [0, 0, 0, 1, 1, 2], [0], [0]>} : vector<8x8x8xbf16>, vector<8x8x32xbf16>, vector<8x8x32xf32> -> vector<8x8x32xf32>
    "tpu.trace_stop"() : () -> ()
    %cst_8 = arith.constant dense<0.000000e+00> : vector<8x32xf32>
    %26 = vector.multi_reduction <add>, %25, %cst_8 [1] : vector<8x8x32xf32> to vector<8x32xf32>
    %cst_9 = arith.constant 8.000000e+00 : f32
    %27 = vector.broadcast %cst_9 : f32 to vector<8x32xf32>
    %28 = arith.divf %26, %27 : vector<8x32xf32>
    %29 = vector.extract_strided_slice %3 {offsets = [0, 0, 96], sizes = [8, 8, 96], strides = [1, 1, 1]} : vector<8x8x352xf32> to vector<8x8x96xf32>
    %30 = vector.extract_strided_slice %29 {offsets = [0, 0, 0], sizes = [8, 8, 32], strides = [1, 1, 1]} : vector<8x8x96xf32> to vector<8x8x32xf32>
    %31 = arith.truncf %30 : vector<8x8x32xf32> to vector<8x8x32xbf16>
    %32 = vector.extract_strided_slice %29 {offsets = [0, 0, 32], sizes = [8, 8, 32], strides = [1, 1, 1]} : vector<8x8x96xf32> to vector<8x8x32xf32>
    %33 = arith.truncf %32 : vector<8x8x32xf32> to vector<8x8x32xbf16>
    %34 = vector.extract_strided_slice %29 {offsets = [0, 0, 64], sizes = [8, 8, 32], strides = [1, 1, 1]} : vector<8x8x96xf32> to vector<8x8x32xf32>
    %35 = arith.truncf %34 : vector<8x8x32xf32> to vector<8x8x32xbf16>
    "tpu.trace_start"() <{level = 10 : i32, message = "bqd,bkd->bqk"}> : () -> ()
    %cst_10 = arith.constant dense<0.000000e+00> : vector<8x8x8xf32>
    %36 = tpu.matmul %31, %33, %cst_10 {dimension_numbers = #tpu.dot_dimension_numbers<[2], [2], [1], [1], [0, 0, 0, 1, 1, 1], [0], [0]>} : vector<8x8x32xbf16>, vector<8x8x32xbf16>, vector<8x8x8xf32> -> vector<8x8x8xf32>
    "tpu.trace_stop"() : () -> ()
    %cst_11 = arith.constant 0.176776692 : f32
    %37 = vector.broadcast %cst_11 : f32 to vector<8x8x8xf32>
    %38 = arith.mulf %36, %37 : vector<8x8x8xf32>
    %cst_12 = arith.constant dense<0xFF800000> : vector<8x8xf32>
    %39 = vector.multi_reduction <maximumf>, %38, %cst_12 [2] : vector<8x8x8xf32> to vector<8x8xf32>
    %40 = vector.shape_cast %39 : vector<8x8xf32> to vector<8x8x1xf32>
    %41 = vector.broadcast %40 : vector<8x8x1xf32> to vector<8x8x8xf32>
    %42 = arith.subf %38, %41 : vector<8x8x8xf32>
    %43 = math.exp %42 : vector<8x8x8xf32>
    %cst_13 = arith.constant dense<0.000000e+00> : vector<8x8xf32>
    %44 = vector.multi_reduction <add>, %43, %cst_13 [2] : vector<8x8x8xf32> to vector<8x8xf32>
    %45 = vector.shape_cast %44 : vector<8x8xf32> to vector<8x8x1xf32>
    %46 = tpu.reciprocal %45 {approx = true} : vector<8x8x1xf32> -> vector<8x8x1xf32>
    %47 = vector.broadcast %46 : vector<8x8x1xf32> to vector<8x8x8xf32>
    %48 = arith.mulf %43, %47 : vector<8x8x8xf32>
    %49 = arith.truncf %48 : vector<8x8x8xf32> to vector<8x8x8xbf16>
    "tpu.trace_start"() <{level = 10 : i32, message = "bqk,bkd->bqd"}> : () -> ()
    %cst_14 = arith.constant dense<0.000000e+00> : vector<8x8x32xf32>
    %50 = tpu.matmul %49, %35, %cst_14 {dimension_numbers = #tpu.dot_dimension_numbers<[2], [1], [1], [2], [0, 0, 0, 1, 1, 2], [0], [0]>} : vector<8x8x8xbf16>, vector<8x8x32xbf16>, vector<8x8x32xf32> -> vector<8x8x32xf32>
    "tpu.trace_stop"() : () -> ()
    %cst_15 = arith.constant dense<0.000000e+00> : vector<8x32xf32>
    %51 = vector.multi_reduction <add>, %50, %cst_15 [1] : vector<8x8x32xf32> to vector<8x32xf32>
    %cst_16 = arith.constant 8.000000e+00 : f32
    %52 = vector.broadcast %cst_16 : f32 to vector<8x32xf32>
    %53 = arith.divf %51, %52 : vector<8x32xf32>
    %54 = vector.extract_strided_slice %3 {offsets = [0, 0, 192], sizes = [8, 8, 96], strides = [1, 1, 1]} : vector<8x8x352xf32> to vector<8x8x96xf32>
    %55 = vector.extract_strided_slice %54 {offsets = [0, 0, 0], sizes = [8, 8, 32], strides = [1, 1, 1]} : vector<8x8x96xf32> to vector<8x8x32xf32>
    %56 = arith.truncf %55 : vector<8x8x32xf32> to vector<8x8x32xbf16>
    %57 = vector.extract_strided_slice %54 {offsets = [0, 0, 32], sizes = [8, 8, 32], strides = [1, 1, 1]} : vector<8x8x96xf32> to vector<8x8x32xf32>
    %58 = arith.truncf %57 : vector<8x8x32xf32> to vector<8x8x32xbf16>
    %59 = vector.extract_strided_slice %54 {offsets = [0, 0, 64], sizes = [8, 8, 32], strides = [1, 1, 1]} : vector<8x8x96xf32> to vector<8x8x32xf32>
    %60 = arith.truncf %59 : vector<8x8x32xf32> to vector<8x8x32xbf16>
    "tpu.trace_start"() <{level = 10 : i32, message = "bqd,bkd->bqk"}> : () -> ()
    %cst_17 = arith.constant dense<0.000000e+00> : vector<8x8x8xf32>
    %61 = tpu.matmul %56, %58, %cst_17 {dimension_numbers = #tpu.dot_dimension_numbers<[2], [2], [1], [1], [0, 0, 0, 1, 1, 1], [0], [0]>} : vector<8x8x32xbf16>, vector<8x8x32xbf16>, vector<8x8x8xf32> -> vector<8x8x8xf32>
    "tpu.trace_stop"() : () -> ()
    %cst_18 = arith.constant 0.176776692 : f32
    %62 = vector.broadcast %cst_18 : f32 to vector<8x8x8xf32>
    %63 = arith.mulf %61, %62 : vector<8x8x8xf32>
    %cst_19 = arith.constant dense<0xFF800000> : vector<8x8xf32>
    %64 = vector.multi_reduction <maximumf>, %63, %cst_19 [2] : vector<8x8x8xf32> to vector<8x8xf32>
    %65 = vector.shape_cast %64 : vector<8x8xf32> to vector<8x8x1xf32>
    %66 = vector.broadcast %65 : vector<8x8x1xf32> to vector<8x8x8xf32>
    %67 = arith.subf %63, %66 : vector<8x8x8xf32>
    %68 = math.exp %67 : vector<8x8x8xf32>
    %cst_20 = arith.constant dense<0.000000e+00> : vector<8x8xf32>
    %69 = vector.multi_reduction <add>, %68, %cst_20 [2] : vector<8x8x8xf32> to vector<8x8xf32>
    %70 = vector.shape_cast %69 : vector<8x8xf32> to vector<8x8x1xf32>
    %71 = tpu.reciprocal %70 {approx = true} : vector<8x8x1xf32> -> vector<8x8x1xf32>
    %72 = vector.broadcast %71 : vector<8x8x1xf32> to vector<8x8x8xf32>
    %73 = arith.mulf %68, %72 : vector<8x8x8xf32>
    %74 = arith.truncf %73 : vector<8x8x8xf32> to vector<8x8x8xbf16>
    "tpu.trace_start"() <{level = 10 : i32, message = "bqk,bkd->bqd"}> : () -> ()
    %cst_21 = arith.constant dense<0.000000e+00> : vector<8x8x32xf32>
    %75 = tpu.matmul %74, %60, %cst_21 {dimension_numbers = #tpu.dot_dimension_numbers<[2], [1], [1], [2], [0, 0, 0, 1, 1, 2], [0], [0]>} : vector<8x8x8xbf16>, vector<8x8x32xbf16>, vector<8x8x32xf32> -> vector<8x8x32xf32>
    "tpu.trace_stop"() : () -> ()
    %cst_22 = arith.constant dense<0.000000e+00> : vector<8x32xf32>
    %76 = vector.multi_reduction <add>, %75, %cst_22 [1] : vector<8x8x32xf32> to vector<8x32xf32>
    %cst_23 = arith.constant 8.000000e+00 : f32
    %77 = vector.broadcast %cst_23 : f32 to vector<8x32xf32>
    %78 = arith.divf %76, %77 : vector<8x32xf32>
    %79 = tpu.concatenate %28, %53, %78 in 1 : vector<8x32xf32>, vector<8x32xf32>, vector<8x32xf32> -> vector<8x96xf32>
    %80 = arith.truncf %79 : vector<8x96xf32> to vector<8x96xbf16>
    %c0_24 = arith.constant 0 : index
    %c0_25 = arith.constant 0 : index
    %81 = vector.load %arg5[%c0_24, %c0_25] : memref<96x32xbf16, #tpu.memory_space<vmem>>, vector<96x32xbf16>
    %cst_26 = arith.constant dense<0.000000e+00> : vector<8x32xf32>
    %82 = tpu.matmul %80, %81, %cst_26 {dimension_numbers = #tpu.dot_dimension_numbers<[1], [0], [0], [1], [0, 0, 1, 1], [], []>} : vector<8x96xbf16>, vector<96x32xbf16>, vector<8x32xf32> -> vector<8x32xf32>
    %83 = vector.shape_cast %82 : vector<8x32xf32> to vector<8x1x32xf32>
    %84 = vector.broadcast %83 : vector<8x1x32xf32> to vector<8x8x32xf32>
    %85 = arith.truncf %84 : vector<8x8x32xf32> to vector<8x8x32xbf16>
    %86 = vector.extract_strided_slice %3 {offsets = [0, 0, 288], sizes = [8, 8, 64], strides = [1, 1, 1]} : vector<8x8x352xf32> to vector<8x8x64xf32>
    %87 = vector.extract_strided_slice %86 {offsets = [0, 0, 0], sizes = [8, 8, 32], strides = [1, 1, 1]} : vector<8x8x64xf32> to vector<8x8x32xf32>
    %88 = arith.truncf %87 : vector<8x8x32xf32> to vector<8x8x32xbf16>
    %89 = vector.extract_strided_slice %86 {offsets = [0, 0, 32], sizes = [8, 8, 32], strides = [1, 1, 1]} : vector<8x8x64xf32> to vector<8x8x32xf32>
    %90 = arith.truncf %89 : vector<8x8x32xf32> to vector<8x8x32xbf16>
    "tpu.trace_start"() <{level = 10 : i32, message = "bqd,bkd->bqk"}> : () -> ()
    %cst_27 = arith.constant dense<0.000000e+00> : vector<8x8x8xf32>
    %91 = tpu.matmul %85, %88, %cst_27 {dimension_numbers = #tpu.dot_dimension_numbers<[2], [2], [1], [1], [0, 0, 0, 1, 1, 1], [0], [0]>} : vector<8x8x32xbf16>, vector<8x8x32xbf16>, vector<8x8x8xf32> -> vector<8x8x8xf32>
    "tpu.trace_stop"() : () -> ()
    %cst_28 = arith.constant 0.176776692 : f32
    %92 = vector.broadcast %cst_28 : f32 to vector<8x8x8xf32>
    %93 = arith.mulf %91, %92 : vector<8x8x8xf32>
    %cst_29 = arith.constant dense<0xFF800000> : vector<8x8xf32>
    %94 = vector.multi_reduction <maximumf>, %93, %cst_29 [2] : vector<8x8x8xf32> to vector<8x8xf32>
    %95 = vector.shape_cast %94 : vector<8x8xf32> to vector<8x8x1xf32>
    %96 = vector.broadcast %95 : vector<8x8x1xf32> to vector<8x8x8xf32>
    %97 = arith.subf %93, %96 : vector<8x8x8xf32>
    %98 = math.exp %97 : vector<8x8x8xf32>
    %cst_30 = arith.constant dense<0.000000e+00> : vector<8x8xf32>
    %99 = vector.multi_reduction <add>, %98, %cst_30 [2] : vector<8x8x8xf32> to vector<8x8xf32>
    %100 = vector.shape_cast %99 : vector<8x8xf32> to vector<8x8x1xf32>
    %101 = tpu.reciprocal %100 {approx = true} : vector<8x8x1xf32> -> vector<8x8x1xf32>
    %102 = vector.broadcast %101 : vector<8x8x1xf32> to vector<8x8x8xf32>
    %103 = arith.mulf %98, %102 : vector<8x8x8xf32>
    %104 = arith.truncf %103 : vector<8x8x8xf32> to vector<8x8x8xbf16>
    "tpu.trace_start"() <{level = 10 : i32, message = "bqk,bkd->bqd"}> : () -> ()
    %cst_31 = arith.constant dense<0.000000e+00> : vector<8x8x32xf32>
    %105 = tpu.matmul %104, %90, %cst_31 {dimension_numbers = #tpu.dot_dimension_numbers<[2], [1], [1], [2], [0, 0, 0, 1, 1, 2], [0], [0]>} : vector<8x8x8xbf16>, vector<8x8x32xbf16>, vector<8x8x32xf32> -> vector<8x8x32xf32>
    "tpu.trace_stop"() : () -> ()
    %cst_32 = arith.constant dense<0.000000e+00> : vector<8x32xf32>
    %106 = vector.multi_reduction <add>, %105, %cst_32 [1] : vector<8x8x32xf32> to vector<8x32xf32>
    %cst_33 = arith.constant 8.000000e+00 : f32
    %107 = vector.broadcast %cst_33 : f32 to vector<8x32xf32>
    %108 = arith.divf %106, %107 : vector<8x32xf32>
    %c0_34 = arith.constant 0 : index
    %c0_35 = arith.constant 0 : index
    %109 = vector.load %arg6[%c0_34, %c0_35] : memref<96x64xbf16, #tpu.memory_space<vmem>>, vector<96x64xbf16>
    %cst_36 = arith.constant dense<0.000000e+00> : vector<8x64xf32>
    %110 = tpu.matmul %80, %109, %cst_36 {dimension_numbers = #tpu.dot_dimension_numbers<[1], [0], [0], [1], [0, 0, 1, 1], [], []>} : vector<8x96xbf16>, vector<96x64xbf16>, vector<8x64xf32> -> vector<8x64xf32>
    %c0_37 = arith.constant 0 : index
    %c0_38 = arith.constant 0 : index
    %111 = vector.load %arg7[%c0_37, %c0_38] : memref<1x64xf32, #tpu.memory_space<vmem>>, vector<1x64xf32>
    %112 = vector.broadcast %111 : vector<1x64xf32> to vector<8x64xf32>
    %113 = arith.addf %110, %112 : vector<8x64xf32>
    %cst_39 = arith.constant 0.000000e+00 : f32
    %114 = vector.broadcast %cst_39 : f32 to vector<8x64xf32>
    %115 = arith.cmpf ogt, %113, %114 : vector<8x64xf32>
    %cst_40 = arith.constant 0.00999999977 : f32
    %116 = vector.broadcast %cst_40 : f32 to vector<8x64xf32>
    %117 = arith.mulf %116, %113 : vector<8x64xf32>
    %118 = arith.select %115, %113, %117 : vector<8x64xi1>, vector<8x64xf32>
    %119 = arith.truncf %118 : vector<8x64xf32> to vector<8x64xbf16>
    %c0_41 = arith.constant 0 : index
    %c0_42 = arith.constant 0 : index
    %120 = vector.load %arg8[%c0_41, %c0_42] : memref<64x32xbf16, #tpu.memory_space<vmem>>, vector<64x32xbf16>
    %cst_43 = arith.constant dense<0.000000e+00> : vector<8x32xf32>
    %121 = tpu.matmul %119, %120, %cst_43 {dimension_numbers = #tpu.dot_dimension_numbers<[1], [0], [0], [1], [0, 0, 1, 1], [], []>} : vector<8x64xbf16>, vector<64x32xbf16>, vector<8x32xf32> -> vector<8x32xf32>
    %c0_44 = arith.constant 0 : index
    %c0_45 = arith.constant 0 : index
    %122 = vector.load %arg9[%c0_44, %c0_45] : memref<1x32xf32, #tpu.memory_space<vmem>>, vector<1x32xf32>
    %123 = vector.broadcast %122 : vector<1x32xf32> to vector<8x32xf32>
    %124 = arith.addf %121, %123 : vector<8x32xf32>
    %cst_46 = arith.constant 0.000000e+00 : f32
    %125 = vector.broadcast %cst_46 : f32 to vector<8x32xf32>
    %126 = arith.cmpf ogt, %124, %125 : vector<8x32xf32>
    %cst_47 = arith.constant 0.00999999977 : f32
    %127 = vector.broadcast %cst_47 : f32 to vector<8x32xf32>
    %128 = arith.mulf %127, %124 : vector<8x32xf32>
    %129 = arith.select %126, %124, %128 : vector<8x32xi1>, vector<8x32xf32>
    %c0_48 = arith.constant 0 : index
    %c0_49 = arith.constant 0 : index
    %130 = vector.load %arg2[%c0_48, %c0_49] : memref<8x32xf32, #tpu.memory_space<vmem>>, vector<8x32xf32>
    %c0_50 = arith.constant 0 : index
    %c0_51 = arith.constant 0 : index
    %131 = vector.load %arg3[%c0_50, %c0_51] : memref<8x32xf32, #tpu.memory_space<vmem>>, vector<8x32xf32>
    %132 = tpu.concatenate %129, %130, %108, %131 in 1 : vector<8x32xf32>, vector<8x32xf32>, vector<8x32xf32>, vector<8x32xf32> -> vector<8x128xf32>
    %133 = arith.truncf %132 : vector<8x128xf32> to vector<8x128xbf16>
    %c0_52 = arith.constant 0 : index
    %c0_53 = arith.constant 0 : index
    %134 = vector.load %arg10[%c0_52, %c0_53] : memref<128x96xbf16, #tpu.memory_space<vmem>>, vector<128x96xbf16>
    %cst_54 = arith.constant dense<0.000000e+00> : vector<8x96xf32>
    %135 = tpu.matmul %133, %134, %cst_54 {dimension_numbers = #tpu.dot_dimension_numbers<[1], [0], [0], [1], [0, 0, 1, 1], [], []>} : vector<8x128xbf16>, vector<128x96xbf16>, vector<8x96xf32> -> vector<8x96xf32>
    %c0_55 = arith.constant 0 : index
    %c0_56 = arith.constant 0 : index
    %136 = vector.load %arg11[%c0_55, %c0_56] : memref<1x96xf32, #tpu.memory_space<vmem>>, vector<1x96xf32>
    %137 = vector.broadcast %136 : vector<1x96xf32> to vector<8x96xf32>
    %138 = arith.addf %135, %137 : vector<8x96xf32>
    %cst_57 = arith.constant 0.000000e+00 : f32
    %139 = vector.broadcast %cst_57 : f32 to vector<8x96xf32>
    %140 = arith.cmpf ogt, %138, %139 : vector<8x96xf32>
    %cst_58 = arith.constant 0.00999999977 : f32
    %141 = vector.broadcast %cst_58 : f32 to vector<8x96xf32>
    %142 = arith.mulf %141, %138 : vector<8x96xf32>
    %143 = arith.select %140, %138, %142 : vector<8x96xi1>, vector<8x96xf32>
    %144 = arith.truncf %143 : vector<8x96xf32> to vector<8x96xbf16>
    %c0_59 = arith.constant 0 : index
    %c0_60 = arith.constant 0 : index
    %145 = vector.load %arg12[%c0_59, %c0_60] : memref<96x32xbf16, #tpu.memory_space<vmem>>, vector<96x32xbf16>
    %cst_61 = arith.constant dense<0.000000e+00> : vector<8x32xf32>
    %146 = tpu.matmul %144, %145, %cst_61 {dimension_numbers = #tpu.dot_dimension_numbers<[1], [0], [0], [1], [0, 0, 1, 1], [], []>} : vector<8x96xbf16>, vector<96x32xbf16>, vector<8x32xf32> -> vector<8x32xf32>
    %c0_62 = arith.constant 0 : index
    %c0_63 = arith.constant 0 : index
    %147 = vector.load %arg13[%c0_62, %c0_63] : memref<1x32xf32, #tpu.memory_space<vmem>>, vector<1x32xf32>
    %148 = vector.broadcast %147 : vector<1x32xf32> to vector<8x32xf32>
    %149 = arith.addf %146, %148 : vector<8x32xf32>
    %cst_64 = arith.constant 0.000000e+00 : f32
    %150 = vector.broadcast %cst_64 : f32 to vector<8x32xf32>
    %151 = arith.cmpf ogt, %149, %150 : vector<8x32xf32>
    %cst_65 = arith.constant 0.00999999977 : f32
    %152 = vector.broadcast %cst_65 : f32 to vector<8x32xf32>
    %153 = arith.mulf %152, %149 : vector<8x32xf32>
    %154 = arith.select %151, %149, %153 : vector<8x32xi1>, vector<8x32xf32>
    %155 = arith.truncf %154 : vector<8x32xf32> to vector<8x32xbf16>
    %c0_66 = arith.constant 0 : index
    %c0_67 = arith.constant 0 : index
    %156 = vector.load %arg14[%c0_66, %c0_67] : memref<32x128xbf16, #tpu.memory_space<vmem>>, vector<32x128xbf16>
    %cst_68 = arith.constant dense<0.000000e+00> : vector<8x128xf32>
    %157 = tpu.matmul %155, %156, %cst_68 {dimension_numbers = #tpu.dot_dimension_numbers<[1], [0], [0], [1], [0, 0, 1, 1], [], []>} : vector<8x32xbf16>, vector<32x128xbf16>, vector<8x128xf32> -> vector<8x128xf32>
    %c0_69 = arith.constant 0 : index
    %c0_70 = arith.constant 0 : index
    %158 = vector.load %arg15[%c0_69, %c0_70] : memref<1x128xf32, #tpu.memory_space<vmem>>, vector<1x128xf32>
    %159 = vector.broadcast %158 : vector<1x128xf32> to vector<8x128xf32>
    %160 = arith.addf %157, %159 : vector<8x128xf32>
    %c0_71 = arith.constant 0 : index
    %c0_72 = arith.constant 0 : index
    %161 = vector.load %arg16[%c0_71, %c0_72] : memref<8x128xf32, #tpu.memory_space<vmem>>, vector<8x128xf32>
    tpu.vector_store %arg16[%c0_71, %c0_72], %160 {strides = array<i32>} : memref<8x128xf32, #tpu.memory_space<vmem>>, vector<8x128xf32>,
    return
  }
  func.func @transform_0(%arg0: i32) -> (i32, i32) {
    %c0_i32 = arith.constant 0 : i32
    %c0_i32_0 = arith.constant 0 : i32
    return %arg0, %c0_i32 : i32, i32
  }
  func.func @transform_1(%arg0: i32) -> (i32, i32) {
    %c0_i32 = arith.constant 0 : i32
    %c0_i32_0 = arith.constant 0 : i32
    return %arg0, %c0_i32 : i32, i32
  }
  func.func @transform_2(%arg0: i32) -> (i32, i32) {
    %c0_i32 = arith.constant 0 : i32
    %c0_i32_0 = arith.constant 0 : i32
    return %arg0, %c0_i32 : i32, i32
  }
  func.func @transform_3(%arg0: i32) -> (i32, i32) {
    %c0_i32 = arith.constant 0 : i32
    %c0_i32_0 = arith.constant 0 : i32
    %c0_i32_1 = arith.constant 0 : i32
    return %c0_i32, %c0_i32_0 : i32, i32
  }
  func.func @transform_4(%arg0: i32) -> (i32, i32) {
    %c0_i32 = arith.constant 0 : i32
    %c0_i32_0 = arith.constant 0 : i32
    %c0_i32_1 = arith.constant 0 : i32
    return %c0_i32, %c0_i32_0 : i32, i32
  }
  func.func @transform_5(%arg0: i32) -> (i32, i32) {
    %c0_i32 = arith.constant 0 : i32
    %c0_i32_0 = arith.constant 0 : i32
    %c0_i32_1 = arith.constant 0 : i32
    return %c0_i32, %c0_i32_0 : i32, i32
  }
  func.func @transform_6(%arg0: i32) -> (i32, i32) {
    %c0_i32 = arith.constant 0 : i32
    %c0_i32_0 = arith.constant 0 : i32
    %c0_i32_1 = arith.constant 0 : i32
    return %c0_i32, %c0_i32_0 : i32, i32
  }
  func.func @transform_7(%arg0: i32) -> (i32, i32) {
    %c0_i32 = arith.constant 0 : i32
    %c0_i32_0 = arith.constant 0 : i32
    %c0_i32_1 = arith.constant 0 : i32
    return %c0_i32, %c0_i32_0 : i32, i32
  }
  func.func @transform_8(%arg0: i32) -> (i32, i32) {
    %c0_i32 = arith.constant 0 : i32
    %c0_i32_0 = arith.constant 0 : i32
    %c0_i32_1 = arith.constant 0 : i32
    return %c0_i32, %c0_i32_0 : i32, i32
  }
  func.func @transform_9(%arg0: i32) -> (i32, i32) {
    %c0_i32 = arith.constant 0 : i32
    %c0_i32_0 = arith.constant 0 : i32
    %c0_i32_1 = arith.constant 0 : i32
    return %c0_i32, %c0_i32_0 : i32, i32
  }
  func.func @transform_10(%arg0: i32) -> (i32, i32) {
    %c0_i32 = arith.constant 0 : i32
    %c0_i32_0 = arith.constant 0 : i32
    %c0_i32_1 = arith.constant 0 : i32
    return %c0_i32, %c0_i32_0 : i32, i32
  }
  func.func @transform_11(%arg0: i32) -> (i32, i32) {
    %c0_i32 = arith.constant 0 : i32
    %c0_i32_0 = arith.constant 0 : i32
    %c0_i32_1 = arith.constant 0 : i32
    return %c0_i32, %c0_i32_0 : i32, i32
  }
  func.func @transform_12(%arg0: i32) -> (i32, i32) {
    %c0_i32 = arith.constant 0 : i32
    %c0_i32_0 = arith.constant 0 : i32
    %c0_i32_1 = arith.constant 0 : i32
    return %c0_i32, %c0_i32_0 : i32, i32
  }
  func.func @transform_13(%arg0: i32) -> (i32, i32) {
    %c0_i32 = arith.constant 0 : i32
    %c0_i32_0 = arith.constant 0 : i32
    %c0_i32_1 = arith.constant 0 : i32
    return %c0_i32, %c0_i32_0 : i32, i32
  }
  func.func @transform_14(%arg0: i32) -> (i32, i32) {
    %c0_i32 = arith.constant 0 : i32
    %c0_i32_0 = arith.constant 0 : i32
    %c0_i32_1 = arith.constant 0 : i32
    return %c0_i32, %c0_i32_0 : i32, i32
  }
  func.func @transform_15(%arg0: i32) -> (i32, i32) {
    %c0_i32 = arith.constant 0 : i32
    %c0_i32_0 = arith.constant 0 : i32
    return %arg0, %c0_i32 : i32, i32
  }
}

</mosaic_0001>

<bundles_post_ra>
// kernel: forward.1
= control target key start
LH: loop header
LB: loop body
LE: loop exit
PB: predicated region body
PF: predicated region fallthrough
CT: control target
= control target key end

     0   :  { %vm335_vm0 = vcmask 523264   ;;  %s3757_s30 = smov 96   ;;  %vm535_vm1 = vcmask 261120   ;;  %vm833_vm2 = vcmask 1043456   ;;  %vm731_vm3 = vcmask 64512   ;;  %s5077_s3 = inlined_call_operand.vmem [shape: bf16[192,352], index: 3, kind: input, shape index: {}]   ;;  %s5078_s0 = inlined_call_operand.vmem [shape: bf16[64,192], index: 0, kind: input, shape index: {}]   ;;  %s5079_s4 = inlined_call_operand.vmem [shape: bf16[96,32], index: 4, kind: input, shape index: {}]   ;;  %s5080_s5 = inlined_call_operand.vmem [shape: bf16[96,64], index: 5, kind: input, shape index: {}]   ;;  %s5081_s6 = inlined_call_operand.vmem [shape: f32[1,64], index: 6, kind: input, shape index: {}]   ;;  %s5082_s7 = inlined_call_operand.vmem [shape: bf16[64,32], index: 7, kind: input, shape index: {}]   ;;  %s5083_s1 = inlined_call_operand.vmem [shape: f32[8,32], index: 1, kind: input, shape index: {}]   ;;  %s5084_s8 = inlined_call_operand.vmem [shape: f32[1,32], index: 8, kind: input, shape index: {}]   ;;  %s5085_s2 = inlined_call_operand.vmem [shape: f32[8,32], index: 2, kind: input, shape index: {}]   ;;  %s5086_s10 = inlined_call_operand.vmem [shape: f32[1,96], index: 10, kind: input, shape index: {}]   ;;  %s5087_s9 = inlined_call_operand.vmem [shape: bf16[128,96], index: 9, kind: input, shape index: {}]   ;;  %s5088_s11 = inlined_call_operand.vmem [shape: bf16[96,32], index: 11, kind: input, shape index: {}]   ;;  %s5089_s12 = inlined_call_operand.vmem [shape: f32[1,32], index: 12, kind: input, shape index: {}]   ;;  %s5090_s14 = inlined_call_operand.vmem [shape: f32[1,128], index: 14, kind: input, shape index: {}]   ;;  %s5091_s13 = inlined_call_operand.vmem [shape: bf16[32,128], index: 13, kind: input, shape index: {}]   ;;  %s5092_s15 = inlined_call_operand.vmem [shape: f32[8,128], index: 15, kind: output, shape index: {}]  }
   0x1   :  { %v3275_v0 = vld [vmem:[%s5077_s3 + $0xa8] sm:$0xf]  ;;  %v3572_v1 = vld [vmem:[%s5077_s3 + $0xb0] sm:$0xf0]  ;;  %v3263_v2 = vld [vmem:[%s5077_s3 + $0x90] sm:$0xf] }
   0x2   :  { %v3276_v3 = vor.u32 %v3572_v1, %v3275_v0  ;;  %v3569_v4 = vld [vmem:[%s5077_s3 + $0x98] sm:$0xf0]  ;;  %v3323_v5 = vld [vmem:[%s5077_s3 + $0x108] sm:$0xf]  ;;  %v3584_v6 = vld [vmem:[%s5077_s3 + $0x110] sm:$0xf0] }
   0x3   :  { %v3264_v7 = vor.u32 %v3569_v4, %v3263_v2  ;;  %v3324_v8 = vor.u32 %v3584_v6, %v3323_v5  ;;  %v3311_v9 = vld [vmem:[%s5077_s3 + $0xf0] sm:$0xf]  ;;  %v3581_v10 = vld [vmem:[%s5077_s3 + $0xf8] sm:$0xf0]  ;;  %v3251_v11 = vld [vmem:[%s5077_s3 + $0x78] sm:$0xf] }
   0x4   :  { %348 = vmatpush.bf16.msra.mxu0 %v3276_v3  ;;  %v3566_v12 = vld [vmem:[%s5077_s3 + $0x80] sm:$0xf0]  ;;  %v3312_v13 = vor.u32 %v3581_v10, %v3311_v9  ;;  %v3299_v14 = vld [vmem:[%s5077_s3 + $0xd8] sm:$0xf]  ;;  %v3239_v17 = vld [vmem:[%s5077_s3 + $0x60] sm:$0xf] }
   0x5   :  { %381 = vmatpush.bf16.msra.mxu1 %v3324_v8  ;;  %v3578_v15 = vld [vmem:[%s5077_s3 + $0xe0] sm:$0xf0]  ;;  %v3252_v16 = vor.u32 %v3566_v12, %v3251_v11  ;;  %v3563_v18 = vld [vmem:[%s5077_s3 + $0x68] sm:$0xf0]  ;;  %v3287_v20 = vld [vmem:[%s5077_s3 + $0xc0] sm:$0xf] }
   0x6   :  { %v3300_v19 = vor.u32 %v3578_v15, %v3299_v14  ;;  %v3575_v21 = vld [vmem:[%s5077_s3 + $0xc8] sm:$0xf0]  ;;  %v3240_v22 = vor.u32 %v3563_v18, %v3239_v17  ;;  %v3227_v23 = vld [vmem:[%s5077_s3 + $0x48] sm:$0xf]  ;;  %v3560_v24 = vld [vmem:[%s5077_s3 + $0x50] sm:$0xf0] }
   0x7   :  { %v3288_v25 = vor.u32 %v3575_v21, %v3287_v20  ;;  %v3542_v26 = vld [vmem:[%s5078_s0 + $0x4] sm:$0xf]  ;;  %v3161_v27 = vld [vmem:[%s5078_s0 + $0x8] sm:$0xf0]  ;;  %v3228_v28 = vor.u32 %v3560_v24, %v3227_v23  ;;  %v3215_v29 = vld [vmem:[%s5077_s3 + $0x30] sm:$0xf] }
   0x8   :  { %349 = vmatpush.bf16.msra.mxu0 %v3264_v7  ;;  %v3557_v30 = vld [vmem:[%s5077_s3 + $0x38] sm:$0xf0]  ;;  %v3907_v31 = vor.u32 %v3542_v26, %v3161_v27  ;;  %v3203_v33 = vld [vmem:[%s5077_s3 + $0x18] sm:$0xf]  ;;  %v3554_v34 = vld [vmem:[%s5077_s3 + $0x20] sm:$0xf0] }
   0x9   :  { %382 = vmatpush.bf16.msra.mxu1 %v3312_v13  ;;  %v3216_v32 = vor.u32 %v3557_v30, %v3215_v29  ;;  %v3204_v35 = vor.u32 %v3554_v34, %v3203_v33  ;;  %v3191_v36 = vld [vmem:[%s5077_s3] sm:$0xf]  ;;  %v3551_v37 = vld [vmem:[%s5077_s3 + $0x8] sm:$0xf0]  ;;  %v3543_v40 = vld [vmem:[%s5078_s0 + $0x4] sm:$0xf0] }
   0xa   :  { %v3192_v38 = vor.u32 %v3551_v37, %v3191_v36  ;;  %v3159_v39 = vld [vmem:[%s5078_s0] sm:$0xf]  ;;  %v3544_v41 = vld [vmem:[%s5078_s0 + $0x14] sm:$0xf]  ;;  %v3169_v42 = vld [vmem:[%s5078_s0 + $0x18] sm:$0xf0] }
   0xb   :  { %v3935_v43 = vor.u32 %v3543_v40, %v3159_v39  ;;  %v3937_v44 = vor.u32 %v3544_v41, %v3169_v42  ;;  %v3167_v45 = vld [vmem:[%s5078_s0 + $0x10] sm:$0xf]  ;;  %v3545_v46 = vld [vmem:[%s5078_s0 + $0x14] sm:$0xf0]  ;;  %v3546_v47 = vld [vmem:[%s5078_s0 + $0x24] sm:$0xf] }
   0xc   :  { %350 = vmatpush.bf16.msra.mxu0 %v3252_v16  ;;  %v3177_v48 = vld [vmem:[%s5078_s0 + $0x28] sm:$0xf0]  ;;  %v3954_v49 = vor.u32 %v3545_v46, %v3167_v45  ;;  %v3175_v51 = vld [vmem:[%s5078_s0 + $0x20] sm:$0xf]  ;;  %v3547_v52 = vld [vmem:[%s5078_s0 + $0x24] sm:$0xf0] }
   0xd   :  { %383 = vmatpush.bf16.msra.mxu1 %v3300_v19  ;;  %v3956_v50 = vor.u32 %v3546_v47, %v3177_v48  ;;  %v3548_v53 = vld [vmem:[%s5078_s0 + $0x34] sm:$0xf]  ;;  %v3185_v54 = vld [vmem:[%s5078_s0 + $0x38] sm:$0xf0]  ;;  %v3973_v55 = vor.u32 %v3547_v52, %v3175_v51  ;;  %v3183_v57 = vld [vmem:[%s5078_s0 + $0x30] sm:$0xf] }
   0xe   :  { %v3975_v56 = vor.u32 %v3548_v53, %v3185_v54  ;;  %v3549_v58 = vld [vmem:[%s5078_s0 + $0x34] sm:$0xf0]  ;;  %v3571_v2 = vld [vmem:[%s5077_s3 + $0xac] sm:$0xf]  ;;  %v3568_v8 = vld [vmem:[%s5077_s3 + $0x94] sm:$0xf] }
   0xf   :  { %v3986_v59 = vor.u32 %v3549_v58, %v3183_v57  ;;  %v3277_v3 = vld [vmem:[%s5077_s3 + $0xb4] sm:$0xf0]  ;;  %v3265_v9 = vld [vmem:[%s5077_s3 + $0x9c] sm:$0xf0]  ;;  %v3565_v15 = vld [vmem:[%s5077_s3 + $0x7c] sm:$0xf] }
  0x10   :  { %351 = vmatpush.bf16.msra.mxu0 %v3240_v22  ;;  %v3280_v6 = vor.u32 %v3571_v2, %v3277_v3  ;;  %v3268_v12 = vor.u32 %v3568_v8, %v3265_v9  ;;  %v3253_v16 = vld [vmem:[%s5077_s3 + $0x84] sm:$0xf0]  ;;  %v3562_v19 = vld [vmem:[%s5077_s3 + $0x64] sm:$0xf]  ;;  %v3241_v20 = vld [vmem:[%s5077_s3 + $0x6c] sm:$0xf0] }
  0x11   :  { %384 = vmatpush.bf16.msra.mxu1 %v3288_v25  ;;  %v3256_v18 = vor.u32 %v3565_v15, %v3253_v16  ;;  %v3244_v22 = vor.u32 %v3562_v19, %v3241_v20  ;;  %v3559_v26 = vld [vmem:[%s5077_s3 + $0x4c] sm:$0xf]  ;;  %v3229_v27 = vld [vmem:[%s5077_s3 + $0x54] sm:$0xf0]  ;;  %v3556_v33 = vld [vmem:[%s5077_s3 + $0x34] sm:$0xf] }
  0x12   :  { %406 = vmatpush.bf16.msra.mxu2 %v3280_v6  ;;  %v3232_v30 = vor.u32 %v3559_v26, %v3229_v27  ;;  %v3217_v34 = vld [vmem:[%s5077_s3 + $0x3c] sm:$0xf0]  ;;  %v3553_v40 = vld [vmem:[%s5077_s3 + $0x1c] sm:$0xf]  ;;  %v3205_v41 = vld [vmem:[%s5077_s3 + $0x24] sm:$0xf0] }
  0x13   :  { %v3550_v42 = vld [vmem:[%s5077_s3 + $0x4] sm:$0xf]  ;;  %v3208_v46 = vor.u32 %v3553_v40, %v3205_v41  ;;  %v3193_v47 = vld [vmem:[%s5077_s3 + $0xc] sm:$0xf0]  ;;  %v3573_v51 = vld [vmem:[%s5077_s3 + $0xb8] sm:$0xf0] }
  0x14   :  { %352 = vmatpush.bf16.msra.mxu0 %v3228_v28  ;;  %3333 = vmatmul.msk.bf16.vlgmr.msra.gmra.mxu1 %vm335_vm0, %v3907_v31  ;;  %v3283_v48 = vld [vmem:[%s5077_s3 + $0xb0] sm:$0xf]  ;;  %v3271_v53 = vld [vmem:[%s5077_s3 + $0x98] sm:$0xf]  ;;  %v3570_v54 = vld [vmem:[%s5077_s3 + $0xa0] sm:$0xf0]  ;;  %v3196_v57 = vor.u32 %v3550_v42, %v3193_v47 }
  0x15   :  { %v3284_v52 = vor.u32 %v3573_v51, %v3283_v48  ;;  %v3272_v58 = vor.u32 %v3570_v54, %v3271_v53  ;;  %v3564_v6 = vld [vmem:[%s5077_s3 + $0x70] sm:$0xf0]  ;;  %v3561_v15 = vld [vmem:[%s5077_s3 + $0x58] sm:$0xf0]  ;;  %s3758_s0 = smov 64   ;;  %vm2124_vm5 = vcmask 1041409  }
  0x16   :  { %407 = vmatpush.bf16.msra.mxu2 %v3268_v12  ;;  %v3552_v40 = vld [vmem:[%s5077_s3 + $0x10] sm:$0xf0]  ;;  %v3325_v47 = vld [vmem:[%s5077_s3 + $0x114] sm:$0xf0]  ;;  %v3577_v53 = vld [vmem:[%s5077_s3 + $0xdc] sm:$0xf] }
  0x17   :  { %464 = vmatpush.bf16.msrb.mxu1 %v3284_v52  ;;  %v3580_v51 = vld [vmem:[%s5077_s3 + $0xf4] sm:$0xf]  ;;  %v3301_v54 = vld [vmem:[%s5077_s3 + $0xe4] sm:$0xf0]  ;;  %vm2126_vm6 = vcmask 1042434   ;;  %vm2128_vm7 = vcmask 1043459  }
  0x18   :  { %353 = vmatpush.bf16.msra.mxu0 %v3216_v32  ;;  %vm2130_vm8 = vcmask 1044484   ;;  %vm2132_vm9 = vcmask 1045509   ;;  %vm2134_vm10 = vcmask 1046534   ;;  %vm2136_vm11 = vcmask 1047559  }
  0x19   :  { %vm2226_vm12 = vcmask 785408  }
  0x1a   :  { %408 = vmatpush.bf16.msra.mxu2 %v3256_v18 }
  0x1b   :  { %465 = vmatpush.bf16.msrb.mxu1 %v3272_v58  ;;  %v3574_v58 = vld [vmem:[%s5077_s3 + $0xc4] sm:$0xf] }
  0x1c   :  { %354 = vmatpush.bf16.msra.mxu0 %v3204_v35  ;;  %v3220_v35 = vor.u32 %v3556_v33, %v3217_v34 }
  0x1e   :  { %409 = vmatpush.bf16.msra.mxu2 %v3244_v22  ;;  %v3223_v22 = vld [vmem:[%s5077_s3 + $0x38] sm:$0xf] }
  0x20   :  { %355 = vmatpush.bf16.msra.mxu0 %v3192_v38 }
  0x22   :  { %410 = vmatpush.bf16.msra.mxu2 %v3232_v30  ;;  %v3211_v30 = vld [vmem:[%s5077_s3 + $0x20] sm:$0xf] }
  0x23   :  { %356 = vmatmul.bf16.vlgmr.msra.gmra.mxu0 %v3935_v43 }
  0x24   :  { %3334 = vmatmul.msk.bf16.gmra.mxu1 %vm335_vm0, %v3937_v44 }
  0x26   :  { %411 = vmatpush.bf16.msra.mxu2 %v3220_v35 }
  0x2a   :  { %412 = vmatpush.bf16.msra.mxu2 %v3208_v46  ;;  %v3583_v46 = vld [vmem:[%s5077_s3 + $0x10c] sm:$0xf] }
  0x2b   :  { %v3328_v48 = vor.u32 %v3583_v46, %v3325_v47 }
  0x2d   :  { %439 = vmatpush.bf16.msra.mxu3 %v3328_v48 }
  0x2e   :  { %413 = vmatpush.bf16.msra.mxu2 %v3196_v57  ;;  %v3304_v57 = vor.u32 %v3577_v53, %v3301_v54 }
  0x31   :  { %414 = vmatmul.bf16.vlgmr.msra.gmra.mxu2 %v3935_v43 }
  0x33   :  { %361 = vmatmul.bf16.gmra.mxu0 %v3954_v49 }
  0x34   :  { %3335 = vmatmul.msk.bf16.gmra.mxu1 %vm335_vm0, %v3956_v50 }
  0x41   :  { %419 = vmatmul.bf16.gmra.mxu2 %v3954_v49 }
  0x43   :  { %366 = vmatmul.bf16.gmra.mxu0 %v3973_v55 }
  0x44   :  { %3336 = vmatmul.msk.bf16.gmra.mxu1 %vm335_vm0, %v3975_v56 }
  0x51   :  { %424 = vmatmul.bf16.gmra.mxu2 %v3973_v55 }
  0x53   :  { %371 = vmatmul.bf16.gmra.mxu0 %v3986_v59 }
  0x61   :  { %429 = vmatmul.bf16.gmra.mxu2 %v3986_v59 }
  0x91   :  { %v386_v60 = vpop.f32.mrf.mxu1 }
  0x99   :  { %v388_v61 = vpop.f32.mrf.mxu1 }
  0xa0   :  { %v357_v62 = vpop.f32.mrf.mxu0 }
  0xa1   :  { %v391_v63 = vpop.f32.mrf.mxu1  ;;  %v387_v4 = vadd.f32 %v386_v60, %v357_v62  ;;  %v3567_v62 = vld [vmem:[%s5077_s3 + $0x88] sm:$0xf0] }
  0xa3   :  { %v4004_v10 = vpack.c.bf16 %v387_v4, %v387_v4  ;;  %v3247_v4 = vld [vmem:[%s5077_s3 + $0x68] sm:$0xf] }
  0xa4   :  { %v3248_v12 = vor.u32 %v3564_v6, %v3247_v4 }
  0xa5   :  { %v531_v17 = vunpack.c.l.b16 %v4004_v10 }
  0xa7   :  { %v4023_v21 = vpack.c.b16 %v531_v17, %v531_v17 }
  0xa8   :  { %v359_v0 = vpop.f32.mrf.mxu0 }
  0xa9   :  { %v389_v1 = vadd.f32 %v388_v61, %v359_v0  ;;  %v393_v14 = vpop.f32.mrf.mxu1  ;;  %v3259_v61 = vld [vmem:[%s5077_s3 + $0x80] sm:$0xf] }
  0xaa   :  { %v3260_v2 = vor.u32 %v3567_v62, %v3259_v61  ;;  %v3289_v61 = vld [vmem:[%s5077_s3 + $0xcc] sm:$0xf0] }
  0xab   :  { %v3995_v5 = vpack.c.bf16 %v389_v1, %v389_v1  ;;  %v3292_v62 = vor.u32 %v3574_v58, %v3289_v61 }
  0xac   :  { %466 = vmatpush.bf16.msrb.mxu1 %v3260_v2  ;;  %v3582_v2 = vld [vmem:[%s5077_s3 + $0x100] sm:$0xf0] }
  0xad   :  { %v556_v7 = vunpack.c.l.b16 %v3995_v5 }
  0xaf   :  { %v4006_v11 = vpack.c.b16 %v556_v7, %v556_v7 }
  0xb0   :  { %v362_v13 = vpop.f32.mrf.mxu0  ;;  %467 = vmatpush.bf16.msrb.mxu1 %v3248_v12  ;;  %v3307_v12 = vld [vmem:[%s5077_s3 + $0xe0] sm:$0xf] }
  0xb1   :  { %558 = vrot.lane.b32.xlu0 %v4006_v11, %s3757_s30  ;;  %v396_v24 = vpop.f32.mrf.mxu1  ;;  %v392_v28 = vadd.f32 %v391_v63, %v362_v13 }
  0xb3   :  { %v4042_v36 = vpack.c.bf16 %v392_v28, %v392_v28 }
  0xb5   :  { %v580_v45 = vunpack.c.l.b16 %v4042_v36 }
  0xb7   :  { %v4073_v60 = vpack.c.b16 %v580_v45, %v580_v45 }
  0xb8   :  { %v364_v23 = vpop.f32.mrf.mxu0 }
  0xb9   :  { %v394_v25 = vadd.f32 %v393_v14, %v364_v23  ;;  %533 = vrot.lane.b32.xlu0 %v4023_v21, %s3757_s30  ;;  %v398_v39 = vpop.f32.mrf.mxu1  ;;  %v3235_v14 = vld [vmem:[%s5077_s3 + $0x50] sm:$0xf]  ;;  %v3558_v23 = vld [vmem:[%s5077_s3 + $0x40] sm:$0xf0] }
  0xba   :  { %v3236_v19 = vor.u32 %v3561_v15, %v3235_v14  ;;  %v3224_v27 = vor.u32 %v3558_v23, %v3223_v22  ;;  %v3579_v14 = vld [vmem:[%s5077_s3 + $0xe8] sm:$0xf0] }
  0xbb   :  { %v4033_v29 = vpack.c.bf16 %v394_v25, %v394_v25  ;;  %v3308_v15 = vor.u32 %v3579_v14, %v3307_v12 }
  0xbc   :  { %468 = vmatpush.bf16.msrb.mxu1 %v3236_v19 }
  0xbd   :  { %v604_v32 = vunpack.c.l.b16 %v4033_v29 }
  0xbf   :  { %v4044_v37 = vpack.c.b16 %v604_v32, %v604_v32  ;;  %v3555_v32 = vld [vmem:[%s5077_s3 + $0x28] sm:$0xf0] }
  0xc0   :  { %v367_v38 = vpop.f32.mrf.mxu0  ;;  %469 = vmatpush.bf16.msrb.mxu1 %v3224_v27  ;;  %v3212_v35 = vor.u32 %v3555_v32, %v3211_v30 }
  0xc1   :  { %606 = vrot.lane.b32.xlu1 %v4044_v37, %s3757_s30  ;;  %v397_v0 = vadd.f32 %v396_v24, %v367_v38  ;;  %v401_v7 = vpop.f32.mrf.mxu1 }
  0xc3   :  { %v4092_v8 = vpack.c.bf16 %v397_v0, %v397_v0  ;;  %v3331_v0 = vld [vmem:[%s5077_s3 + $0x110] sm:$0xf] }
  0xc4   :  { %470 = vmatpush.bf16.msrb.mxu1 %v3212_v35 }
  0xc5   :  { %v628_v17 = vunpack.c.l.b16 %v4092_v8 }
  0xc7   :  { %v4114_v24 = vpack.c.b16 %v628_v17, %v628_v17 }
  0xc8   :  { %v369_v63 = vpop.f32.mrf.mxu0 }
  0xc9   :  { %v399_v1 = vadd.f32 %v398_v39, %v369_v63  ;;  %582 = vrot.lane.b32.xlu1 %v4073_v60, %s3757_s30  ;;  %v403_v26 = vpop.f32.mrf.mxu1  ;;  %v3199_v39 = vld [vmem:[%s5077_s3 + $0x8] sm:$0xf] }
  0xca   :  { %v3200_v42 = vor.u32 %v3552_v40, %v3199_v39 }
  0xcb   :  { %v4083_v3 = vpack.c.bf16 %v399_v1, %v399_v1 }
  0xcc   :  { %471 = vmatpush.bf16.msrb.mxu1 %v3200_v42 }
  0xcd   :  { %v652_v9 = vunpack.c.l.b16 %v4083_v3 }
  0xcf   :  { %v4095_v13 = vpack.c.b16 %v652_v9, %v652_v9  ;;  %472 = vmatmul.bf16.vlgmr.msrb.gmra.mxu1 %v3935_v43  ;;  %v3313_v43 = vld [vmem:[%s5077_s3 + $0xfc] sm:$0xf0] }
  0xd0   :  { %v372_v16 = vpop.f32.mrf.mxu0  ;;  %v3316_v52 = vor.u32 %v3580_v51, %v3313_v43 }
  0xd1   :  { %v402_v18 = vadd.f32 %v401_v7, %v372_v16  ;;  %654 = vrot.lane.b32.xlu2 %v4095_v13, %s3757_s30  ;;  %v3295_v16 = vld [vmem:[%s5077_s3 + $0xc8] sm:$0xf] }
  0xd2   :  { %440 = vmatpush.bf16.msra.mxu3 %v3316_v52 }
  0xd3   :  { %v4106_v20 = vpack.c.bf16 %v402_v18, %v402_v18 }
  0xd5   :  { %v676_v25 = vunpack.c.l.b16 %v4106_v20 }
  0xd6   :  { %441 = vmatpush.bf16.msra.mxu3 %v3304_v57 }
  0xd7   :  { %v4117_v28 = vpack.c.b16 %v676_v25, %v676_v25 }
  0xd8   :  { %v374_v33 = vpop.f32.mrf.mxu0 }
  0xd9   :  { %v404_v34 = vadd.f32 %v403_v26, %v374_v33  ;;  %630 = vrot.lane.b32.xlu2 %v4114_v24, %s3757_s30  ;;  %678 = vrot.lane.b32.xlu0 %v4117_v28, %s3757_s30 }
  0xda   :  { %442 = vmatpush.bf16.msra.mxu3 %v3292_v62 }
  0xdb   :  { %v4129_v38 = vpack.c.bf16 %v404_v34, %v404_v34 }
  0xdd   :  { %v700_v41 = vunpack.c.l.b16 %v4129_v38  ;;  %3337 = vmatmul.msk.bf16.vlgmr.msra.gmra.mxu3 %vm335_vm0, %v3907_v31 }
  0xdf   :  { %v4139_v45 = vpack.c.b16 %v700_v41, %v700_v41  ;;  %477 = vmatmul.bf16.gmra.mxu1 %v3954_v49 }
  0xe1   :  { %702 = vrot.lane.b32.xlu1 %v4139_v45, %s3757_s30  ;;  %828 = vrot.lane.b32.xlu2 %v4023_v21, %s3758_s0 }
  0xe2   :  { %850 = vrot.lane.b32.xlu0 %v4006_v11, %s3758_s0 }
  0xe9   :  { %913 = vrot.lane.b32.xlu2 %v4114_v24, %s3758_s0 }
  0xed   :  { %3338 = vmatmul.msk.bf16.gmra.mxu3 %vm335_vm0, %v3937_v44 }
  0xef   :  { %482 = vmatmul.bf16.gmra.mxu1 %v3973_v55  ;;  %v3585_v55 = vld [vmem:[%s5077_s3 + $0x118] sm:$0xf0] }
  0xf0   :  { %v3332_v1 = vor.u32 %v3585_v55, %v3331_v0 }
  0xf2   :  { %497 = vmatpush.bf16.msrb.mxu3 %v3332_v1 }
  0xfd   :  { %3339 = vmatmul.msk.bf16.gmra.mxu3 %vm335_vm0, %v3956_v50 }
  0xff   :  { %487 = vmatmul.bf16.gmra.mxu1 %v3986_v59  ;;  %v3319_v59 = vld [vmem:[%s5077_s3 + $0xf8] sm:$0xf] }
 0x100   :  { %v3320_v7 = vor.u32 %v3582_v2, %v3319_v59 }
 0x102   :  { %498 = vmatpush.bf16.msrb.mxu3 %v3320_v7 }
 0x106   :  { %499 = vmatpush.bf16.msrb.mxu3 %v3308_v15 }
 0x10d   :  { %3340 = vmatmul.msk.bf16.gmra.mxu3 %vm335_vm0, %v3975_v56 }
 0x123   :  { %v559_v63 = vpop.permute.xlu0 %558 }
 0x124   :  { %v564_v49 = vsel %vm535_vm1, %v559_v63, 0 }
 0x125   :  { %573 = vmatpush.bf16.xpose.msrb.mxu2 %v564_v49 }
 0x12b   :  { %v655_v4 = vpop.permute.xlu2 %654  ;;  %v534_v6 = vpop.permute.xlu0 %533 }
 0x12c   :  { %3346 = vmatmul.msk.bf16.vlgmr.msrb.gmra.mxu2 %vm535_vm1, %v3995_v5  ;;  %v540_v9 = vsel %vm535_vm1, %v534_v6, 0  ;;  %v3576_v5 = vld [vmem:[%s5077_s3 + $0xd0] sm:$0xf0]  ;;  %v660_v17 = vsel %vm535_vm1, %v655_v4, 0  ;;  %s3759_s3 = smov 32  }
 0x12d   :  { %549 = vmatpush.bf16.xpose.msrb.mxu0 %v540_v9  ;;  %v3296_v22 = vor.u32 %v3576_v5, %v3295_v16 }
 0x12f   :  { %500 = vmatpush.bf16.msrb.mxu3 %v3296_v22 }
 0x132   :  { %3341 = vmatmul.msk.bf16.vlgmr.msrb.gmra.mxu3 %vm335_vm0, %v3907_v31 }
 0x133   :  { %v631_v18 = vpop.permute.xlu2 %630  ;;  %v607_v19 = vpop.permute.xlu1 %606 }
 0x134   :  { %v612_v23 = vsel %vm535_vm1, %v607_v19, 0  ;;  %3345 = vmatmul.msk.bf16.vlgmr.msrb.gmra.mxu0 %vm535_vm1, %v4004_v10  ;;  %v636_v25 = vsel %vm535_vm1, %v631_v18, 0 }
 0x135   :  { %621 = vmatpush.bf16.xpose.msra.mxu2 %v612_v23 }
 0x13b   :  { %v583_v26 = vpop.permute.xlu1 %582  ;;  %v829_v27 = vpop.permute.xlu2 %828 }
 0x13c   :  { %v588_v30 = vsel %vm535_vm1, %v583_v26, 0  ;;  %v835_v32 = vsel %vm833_vm2, %v829_v27, 0  ;;  %3348 = vmatmul.msk.bf16.vlgmr.msra.gmra.mxu2 %vm535_vm1, %v4033_v29 }
 0x13d   :  { %669 = vmatpush.bf16.xpose.msrb.mxu2 %v660_v17  ;;  %597 = vmatpush.bf16.xpose.msra.mxu0 %v588_v30 }
 0x142   :  { %3342 = vmatmul.msk.bf16.gmra.mxu3 %vm335_vm0, %v3937_v44  ;;  %v4242_v44 = vpop.f32.mrf.mxu2 }
 0x143   :  { %v914_v10 = vpop.permute.xlu2 %913 }
 0x144   :  { %3347 = vmatmul.msk.bf16.vlgmr.msra.gmra.mxu0 %vm535_vm1, %v4042_v36  ;;  %v919_v34 = vsel %vm833_vm2, %v914_v10, 0 }
 0x145   :  { %844 = vmatpush.bf16.msra.mxu2 %v835_v32  ;;  %645 = vmatpush.bf16.xpose.msrb.mxu0 %v636_v25 }
 0x14b   :  { %v679_v31 = vpop.permute.xlu0 %678 }
 0x14c   :  { %v684_v33 = vsel %vm535_vm1, %v679_v31, 0  ;;  %3350 = vmatmul.msk.bf16.vlgmr.msrb.gmra.mxu2 %vm535_vm1, %v4083_v3  ;;  %v4246_v3 = vpop.f32.mrf.mxu2 }
 0x14d   :  { %693 = vmatpush.bf16.xpose.msra.mxu0 %v684_v33  ;;  %928 = vmatpush.bf16.msrb.mxu2 %v919_v34 }
 0x152   :  { %3343 = vmatmul.msk.bf16.gmra.mxu3 %vm335_vm0, %v3956_v50  ;;  %v4256_v50 = vpop.f32.mrf.mxu1 }
 0x153   :  { %v703_v29 = vpop.permute.xlu1 %702 }
 0x154   :  { %v708_v35 = vsel %vm535_vm1, %v703_v29, 0  ;;  %v851_v39 = vpop.permute.xlu0 %850  ;;  %3349 = vmatmul.msk.bf16.vlgmr.msrb.gmra.mxu0 %vm535_vm1, %v4092_v8  ;;  %v4250_v8 = vpop.f32.mrf.mxu2 }
 0x155   :  { %v856_v36 = vsel %vm833_vm2, %v851_v39, 0  ;;  %717 = vmatpush.bf16.xpose.msra.mxu1 %v708_v35 }
 0x156   :  { %865 = vmatpush.bf16.msra.mxu3 %v856_v36 }
 0x15c   :  { %3352 = vmatmul.msk.bf16.vlgmr.msra.gmra.mxu1 %vm535_vm1, %v4129_v38  ;;  %v4252_v40 = vpop.f32.mrf.mxu2  ;;  %v4260_v38 = vpop.f32.mrf.mxu1 }
 0x162   :  { %3344 = vmatmul.msk.bf16.gmra.mxu3 %vm335_vm0, %v3975_v56 }
 0x164   :  { %3351 = vmatmul.msk.bf16.vlgmr.msra.gmra.mxu0 %vm535_vm1, %v4106_v20  ;;  %v4254_v41 = vpop.f32.mrf.mxu2  ;;  %v4264_v20 = vpop.f32.mrf.mxu1 }
 0x16c   :  { %v4258_v42 = vpop.f32.mrf.mxu2  ;;  %v4268_v48 = vpop.f32.mrf.mxu1 }
 0x174   :  { %v4262_v46 = vpop.f32.mrf.mxu2  ;;  %v4270_v52 = vpop.f32.mrf.mxu1 }
 0x17c   :  { %v4266_v47 = vpop.f32.mrf.mxu2  ;;  %v4274_v62 = vpop.f32.mrf.mxu1 }
 0x184   :  { %v4281_v2 = vpop.f32.mrf.mxu1 }
 0x18c   :  { %v4283_v9 = vpop.f32.mrf.mxu1 }
 0x1af   :  { %v575_v56 = vpop.f32.mrf.mxu2 }
 0x1b0   :  { %v724_v51 = vmul.f32 0.17677669, %v575_v56 }
 0x1b1   :  { %v551_v43 = vpop.f32.mrf.mxu0 }
 0x1b2   :  { %v723_v53 = vmul.f32 0.17677669, %v551_v43  ;;  %v735_v54 = vsel %vm731_vm3, %v724_v51, -inf }
 0x1b3   :  { %736 = vmax.xlane.f32.xlu0 %v735_v54 }
 0x1b4   :  { %v732_v57 = vsel %vm731_vm3, %v723_v53, -inf }
 0x1b5   :  { %733 = vmax.xlane.f32.xlu2 %v732_v57 }
 0x1b7   :  { %v577_v58 = vpop.f32.mrf.mxu2 }
 0x1b9   :  { %v553_v61 = vpop.f32.mrf.mxu0 }
 0x1bf   :  { %v623_v63 = vpop.f32.mrf.mxu2 }
 0x1c0   :  { %v4276_v49 = vmul.f32 0.17677669, %v623_v63 }
 0x1c1   :  { %v599_v0 = vpop.f32.mrf.mxu0 }
 0x1c2   :  { %v725_v55 = vmul.f32 0.17677669, %v599_v0  ;;  %v741_v1 = vsel %vm731_vm3, %v4276_v49, -inf }
 0x1c3   :  { %742 = vmax.xlane.f32.xlu0 %v741_v1 }
 0x1c4   :  { %v738_v59 = vsel %vm731_vm3, %v725_v55, -inf }
 0x1c5   :  { %739 = vmax.xlane.f32.xlu2 %v738_v59 }
 0x1c7   :  { %v625_v4 = vpop.f32.mrf.mxu2 }
 0x1c9   :  { %v601_v6 = vpop.f32.mrf.mxu0 }
 0x1cf   :  { %v671_v7 = vpop.f32.mrf.mxu2 }
 0x1d0   :  { %v4296_v23 = vmul.f32 0.17677669, %v671_v7 }
 0x1d1   :  { %v647_v12 = vpop.f32.mrf.mxu0 }
 0x1d2   :  { %v727_v14 = vmul.f32 0.17677669, %v647_v12  ;;  %v747_v25 = vsel %vm731_vm3, %v4296_v23, -inf }
 0x1d4   :  { %v744_v15 = vsel %vm731_vm3, %v727_v14, -inf }
 0x1d5   :  { %745 = vmax.xlane.f32.xlu1 %v744_v15 }
 0x1d7   :  { %v673_v16 = vpop.f32.mrf.mxu2  ;;  %955 = vrot.lane.b32.xlu0 %v4117_v28, %s3758_s0 }
 0x1d9   :  { %v649_v5 = vpop.f32.mrf.mxu0  ;;  %v719_v17 = vpop.f32.mrf.mxu1 }
 0x1da   :  { %v4300_v26 = vmul.f32 0.17677669, %v719_v17  ;;  %v444_v17 = vpop.f32.mrf.mxu3 }
 0x1dd   :  { %871 = vrot.lane.b32.xlu2 %v4073_v60, %s3758_s0 }
 0x1df   :  { %1076 = vrot.lane.b32.xlu0 %v4023_v21, %s3759_s3  ;;  %v753_v21 = vsel %vm731_vm3, %v4300_v26, -inf }
 0x1e1   :  { %v695_v18 = vpop.f32.mrf.mxu0  ;;  %v721_v19 = vpop.f32.mrf.mxu1 }
 0x1e2   :  { %v4302_v27 = vmul.f32 0.17677669, %v695_v18 }
 0x1e4   :  { %v750_v30 = vsel %vm731_vm3, %v4302_v27, -inf }
 0x1e5   :  { %892 = vrot.lane.b32.xlu2 %v4044_v37, %s3758_s0 }
 0x1e9   :  { %v697_v22 = vpop.f32.mrf.mxu0 }
 0x1ea   :  { %v446_v22 = vpop.f32.mrf.mxu3 }
 0x1ee   :  { %934 = vrot.lane.b32.xlu1 %v4095_v13, %s3758_s0 }
 0x20e   :  { %748 = vmax.xlane.f32.xlu2 %v747_v25  ;;  %v4337_v25 = vpop.f32.mrf.mxu3 }
 0x216   :  { %754 = vmax.xlane.f32.xlu2 %v753_v21 }
 0x218   :  { %751 = vmax.xlane.f32.xlu1 %v750_v30 }
 0x226   :  { %v737_v32 = vpop.xlane.xlu0 %736 }
 0x227   :  { %v757_v10 = vsub.f32 %v724_v51, %v737_v32 }
 0x228   :  { %v734_v31 = vpop.xlane.xlu2 %733 }
 0x229   :  { %v766_v33 = vmul.f32 1.442695, %v757_v10  ;;  %v756_v34 = vsub.f32 %v723_v53, %v734_v31  ;;  %v451_v10 = vpop.f32.mrf.mxu3 }
 0x22b   :  { %3627 = vpow2.f32 %v766_v33  ;;  %v764_v29 = vmul.f32 1.442695, %v756_v34 }
 0x22d   :  { %3629 = vpow2.f32 %v764_v29 }
 0x22e   :  { %976 = vrot.lane.b32.xlu2 %v4139_v45, %s3758_s0 }
 0x231   :  { %v4310_v35 = vpop.eup %3627 }
 0x232   :  { %v783_v39 = vsel %vm731_vm3, %v4310_v35, 0.0 }
 0x233   :  { %v4314_v36 = vpop.eup %3629  ;;  %784 = vadd.xlane.f32.xlu1 %v783_v39 }
 0x234   :  { %v780_v56 = vsel %vm731_vm3, %v4314_v36, 0.0 }
 0x235   :  { %781 = vadd.xlane.f32.xlu0 %v780_v56 }
 0x236   :  { %v743_v57 = vpop.xlane.xlu0 %742 }
 0x237   :  { %v759_v5 = vsub.f32 %v4276_v49, %v743_v57 }
 0x238   :  { %v740_v51 = vpop.xlane.xlu2 %739 }
 0x239   :  { %v758_v43 = vsub.f32 %v725_v55, %v740_v51 }
 0x23b   :  { %v768_v53 = vmul.f32 1.442695, %v758_v43 }
 0x23d   :  { %3631 = vpow2.f32 %v768_v53  ;;  %v454_v53 = vpop.f32.mrf.mxu3 }
 0x240   :  { %v872_v54 = vpop.permute.xlu2 %871 }
 0x241   :  { %v877_v58 = vsel %vm833_vm2, %v872_v54, 0 }
 0x242   :  { %886 = vmatpush.bf16.msrb.mxu0 %v877_v58 }
 0x243   :  { %v4319_v61 = vpop.eup %3631 }
 0x244   :  { %v786_v63 = vsel %vm731_vm3, %v4319_v61, 0.0 }
 0x245   :  { %787 = vadd.xlane.f32.xlu1 %v786_v63  ;;  %v456_v63 = vpop.f32.mrf.mxu3 }
 0x248   :  { %v893_v0 = vpop.permute.xlu2 %892  ;;  %v746_v1 = vpop.xlane.xlu1 %745 }
 0x249   :  { %v898_v59 = vsel %vm833_vm2, %v893_v0, 0  ;;  %v760_v4 = vsub.f32 %v727_v14, %v746_v1  ;;  %1097 = vrot.lane.b32.xlu0 %v4006_v11, %s3759_s3  ;;  %v956_v55 = vpop.permute.xlu0 %955  ;;  %v770_v11 = vmul.f32 1.442695, %v759_v5  ;;  %v447_v1 = vadd.f32 %v446_v22, %v4246_v3 }
 0x24a   :  { %v961_v6 = vsel %vm833_vm2, %v956_v55, 0  ;;  %907 = vmatpush.bf16.msrb.mxu1 %v898_v59 }
 0x24b   :  { %v772_v7 = vmul.f32 1.442695, %v760_v4  ;;  %970 = vmatpush.bf16.msra.mxu0 %v961_v6  ;;  %v1069_v59 = vpack.c.bf16 %v447_v1, %v447_v1 }
 0x24d   :  { %3633 = vpow2.f32 %v772_v7  ;;  %v459_v55 = vpop.f32.mrf.mxu3  ;;  %v1373_v6 = vunpack.c.l.b16 %v1069_v59 }
 0x24e   :  { %3635 = vpow2.f32 %v770_v11  ;;  %v460_v7 = vadd.f32 %v459_v55, %v4262_v46 }
 0x250   :  { %v4369_v5 = vpack.c.bf16 %v460_v7, %v460_v7 }
 0x251   :  { %v4363_v0 = vpop.permute.xlu0 %1076 }
 0x253   :  { %v4327_v12 = vpop.eup %3633 }
 0x254   :  { %v792_v15 = vsel %vm731_vm3, %v4327_v12, 0.0  ;;  %v4333_v18 = vpop.eup %3635 }
 0x255   :  { %793 = vadd.xlane.f32.xlu1 %v792_v15  ;;  %v789_v19 = vsel %vm731_vm3, %v4333_v18, 0.0  ;;  %v452_v15 = vadd.f32 %v451_v10, %v4252_v40  ;;  %v1493_v40 = vunpack.c.l.b16 %v4369_v5 }
 0x257   :  { %v4371_v11 = vpack.c.bf16 %v452_v15, %v452_v15 }
 0x259   :  { %v1421_v22 = vunpack.c.l.b16 %v4371_v11  ;;  %v1145_v7 = vsel %vm535_vm1, %v4371_v11, 0 }
 0x260   :  { %v935_v16 = vpop.permute.xlu1 %934 }
 0x261   :  { %v940_v14 = vsel %vm833_vm2, %v935_v16, 0 }
 0x262   :  { %949 = vmatpush.bf16.msrb.mxu3 %v940_v14  ;;  %v1374_v14 = vpack.c.b16 %v1373_v6, %v1373_v6 }
 0x273   :  { %790 = vadd.xlane.f32.xlu0 %v789_v19 }
 0x281   :  { %v749_v21 = vpop.xlane.xlu2 %748 }
 0x282   :  { %v761_v30 = vsub.f32 %v4296_v23, %v749_v21 }
 0x284   :  { %v774_v32 = vmul.f32 1.442695, %v761_v30  ;;  %v4386_v30 = vpack.c.b16 %v1493_v40, %v1493_v40 }
 0x286   :  { %3637 = vpow2.f32 %v774_v32  ;;  %v450_v32 = vadd.f32 %v4337_v25, %v4250_v8 }
 0x287   :  { %1181 = vrot.lane.b32.xlu0 %v4095_v13, %s3759_s3  ;;  %v445_v13 = vadd.f32 %v444_v17, %v4242_v44 }
 0x289   :  { %v755_v49 = vpop.xlane.xlu2 %754 }
 0x28a   :  { %v763_v31 = vsub.f32 %v4300_v26, %v755_v49  ;;  %v1070_v49 = vpack.c.bf16 %v450_v32, %v450_v32 }
 0x28b   :  { %v752_v33 = vpop.xlane.xlu1 %751 }
 0x28c   :  { %v4343_v34 = vpop.eup %3637  ;;  %v778_v29 = vmul.f32 1.442695, %v763_v31  ;;  %v762_v39 = vsub.f32 %v4302_v27, %v752_v33  ;;  %v1068_v27 = vpack.c.bf16 %v445_v13, %v445_v13  ;;  %v455_v33 = vadd.f32 %v454_v53, %v4254_v41 }
 0x28d   :  { %v795_v56 = vsel %vm731_vm3, %v4343_v34, 0.0 }
 0x28e   :  { %3639 = vpow2.f32 %v778_v29  ;;  %v776_v23 = vmul.f32 1.442695, %v762_v39  ;;  %796 = vadd.xlane.f32.xlu1 %v795_v56  ;;  %v1349_v44 = vunpack.c.l.b16 %v1068_v27  ;;  %v1124_v39 = vsel %vm535_vm1, %v1070_v49, 0 }
 0x28f   :  { %1118 = vrot.lane.b32.xlu0 %v4073_v60, %s3759_s3  ;;  %v1072_v25 = vpack.c.bf16 %v455_v33, %v455_v33  ;;  %v1208_v33 = vsel %vm535_vm1, %v4369_v5, 0 }
 0x290   :  { %3641 = vpow2.f32 %v776_v23  ;;  %v1350_v58 = vpack.c.b16 %v1349_v44, %v1349_v44  ;;  %v457_v23 = vadd.f32 %v456_v63, %v4258_v42 }
 0x291   :  { %v977_v51 = vpop.permute.xlu2 %976  ;;  %v1445_v56 = vunpack.c.l.b16 %v1072_v25  ;;  %v1166_v44 = vsel %vm535_vm1, %v1072_v25, 0 }
 0x292   :  { %v982_v26 = vsel %vm833_vm2, %v977_v51, 0  ;;  %v1073_v13 = vpack.c.bf16 %v457_v23, %v457_v23  ;;  %v3760_v23 = vmov 8.0  }
 0x293   :  { %991 = vmatpush.bf16.msra.mxu1 %v982_v26  ;;  %v4412_v41 = vpack.c.b16 %v1445_v56, %v1445_v56  ;;  %v461_v26 = vpop.f32.mrf.mxu3 }
 0x294   :  { %v4352_v43 = vpop.eup %3639  ;;  %v1187_v11 = vsel %vm535_vm1, %v1073_v13, 0 }
 0x295   :  { %v801_v54 = vsel %vm731_vm3, %v4352_v43, 0.0 }
 0x296   :  { %v4356_v57 = vpop.eup %3641  ;;  %802 = vadd.xlane.f32.xlu1 %v801_v54  ;;  %v462_v54 = vadd.f32 %v461_v26, %v4266_v47 }
 0x297   :  { %1202 = vrot.lane.b32.xlu0 %v4117_v28, %s3759_s3  ;;  %v798_v60 = vsel %vm731_vm3, %v4356_v57, 0.0 }
 0x298   :  { %799 = vadd.xlane.f32.xlu2 %v798_v60  ;;  %v1075_v42 = vpack.c.bf16 %v462_v54, %v462_v54 }
 0x29a   :  { %v1517_v63 = vunpack.c.l.b16 %v1075_v42 }
 0x29c   :  { %v4424_v1 = vpack.c.b16 %v1517_v63, %v1517_v63 }
 0x29f   :  { %1351 = vrot.lane.b32.xlu0 %v1350_v58, %s3757_s30 }
 0x2a6   :  { %v785_v4 = vpop.xlane.xlu1 %784 }
 0x2a7   :  { %3643 = vrcp.f32 %v785_v4  ;;  %1614 = vrot.lane.b32.xlu0 %v1350_v58, %s3759_s3 }
 0x2a8   :  { %v782_v28 = vpop.xlane.xlu0 %781 }
 0x2a9   :  { %3645 = vrcp.f32 %v782_v28 }
 0x2ad   :  { %v3644_v16 = vpop.eup %3643 }
 0x2ae   :  { %v813_v3 = vmul.f32 %v3644_v16, %v4310_v35  ;;  %v1103_v35 = vsel %vm535_vm1, %v1069_v59, 0 }
 0x2af   :  { %v3646_v17 = vpop.eup %3645  ;;  %1160 = vrot.lane.b32.xlu1 %v4114_v24, %s3759_s3  ;;  %1637 = vrot.lane.b32.xlu0 %v1374_v14, %s3759_s3  ;;  %v1082_v24 = vsel %vm535_vm1, %v1068_v27, 0  ;;  %v1469_v27 = vunpack.c.l.b16 %v1073_v13 }
 0x2b0   :  { %v821_v19 = vpack.c.bf16 %v813_v3, %v813_v3  ;;  %v812_v46 = vmul.f32 %v3646_v17, %v4314_v36  ;;  %1139 = vrot.lane.b32.xlu2 %v4044_v37, %s3759_s3  ;;  %v4388_v36 = vpack.c.b16 %v1421_v22, %v1421_v22 }
 0x2b2   :  { %v820_v21 = vpack.c.bf16 %v812_v46, %v812_v46  ;;  %3354 = vmatmul.msk.bf16.vlgmr.msra.gmra.mxu3 %vm731_vm3, %v821_v19 }
 0x2b3   :  { %1112 = vmatpush.bf16.xpose.msra.mxu3 %v1103_v35 }
 0x2b4   :  { %3353 = vmatmul.msk.bf16.vlgmr.msra.gmra.mxu2 %vm731_vm3, %v820_v21 }
 0x2b5   :  { %1091 = vmatpush.bf16.xpose.msra.mxu2 %v1082_v24 }
 0x2b7   :  { %1223 = vrot.lane.b32.xlu1 %v4139_v45, %s3759_s3  ;;  %1495 = vrot.lane.b32.xlu0 %v4386_v30, %s3757_s30  ;;  %v1397_v45 = vunpack.c.l.b16 %v1070_v49 }
 0x2b8   :  { %1423 = vrot.lane.b32.xlu2 %v4388_v36, %s3757_s30  ;;  %v788_v37 = vpop.xlane.xlu1 %787 }
 0x2b9   :  { %3647 = vrcp.f32 %v788_v37  ;;  %v4405_v8 = vpack.c.b16 %v1397_v45, %v1397_v45  ;;  %v1229_v45 = vsel %vm535_vm1, %v1075_v42, 0 }
 0x2bb   :  { %v1098_v59 = vpop.permute.xlu0 %1097 }
 0x2bf   :  { %v3648_v10 = vpop.eup %3647  ;;  %1375 = vrot.lane.b32.xlu1 %v1374_v14, %s3757_s30  ;;  %1635 = vrot.lane.b32.xlu0 %v1374_v14, %s3758_s0 }
 0x2c0   :  { %v814_v31 = vmul.f32 %v3648_v10, %v4319_v61  ;;  %1612 = vrot.lane.b32.xlu2 %v1350_v58, %s3758_s0  ;;  %v4420_v58 = vpack.c.b16 %v1469_v27, %v1469_v27 }
 0x2c2   :  { %v822_v29 = vpack.c.bf16 %v814_v31, %v814_v31 }
 0x2c4   :  { %3355 = vmatmul.msk.bf16.vlgmr.msrb.gmra.mxu0 %vm731_vm3, %v822_v29 }
 0x2c5   :  { %1133 = vmatpush.bf16.xpose.msrb.mxu0 %v1124_v39 }
 0x2c7   :  { %1399 = vrot.lane.b32.xlu1 %v4405_v8, %s3757_s30  ;;  %1660 = vrot.lane.b32.xlu0 %v4405_v8, %s3759_s3 }
 0x2c8   :  { %v794_v61 = vpop.xlane.xlu1 %793 }
 0x2c9   :  { %3649 = vrcp.f32 %v794_v61 }
 0x2cf   :  { %v3650_v51 = vpop.eup %3649  ;;  %1447 = vrot.lane.b32.xlu1 %v4412_v41, %s3757_s30 }
 0x2d0   :  { %v816_v53 = vmul.f32 %v3650_v51, %v4327_v12  ;;  %v4430_v12 = vpop.f32.mrf.mxu3 }
 0x2d2   :  { %v824_v60 = vpack.c.bf16 %v816_v53, %v816_v53 }
 0x2d4   :  { %3357 = vmatmul.msk.bf16.vlgmr.msrb.gmra.mxu2 %vm731_vm3, %v824_v60 }
 0x2d5   :  { %1175 = vmatpush.bf16.xpose.msrb.mxu2 %v1166_v44 }
 0x2d7   :  { %1471 = vrot.lane.b32.xlu1 %v4420_v58, %s3757_s30 }
 0x2d8   :  { %v4433_v6 = vpop.f32.mrf.mxu3 }
 0x2df   :  { %1519 = vrot.lane.b32.xlu1 %v4424_v1, %s3757_s30 }
 0x2e0   :  { %v4438_v16 = vpop.f32.mrf.mxu3 }
 0x2e4   :  { %3361 = vmatmul.msk.bf16.vlgmr.msra.gmra.mxu2 %vm535_vm1, %v4363_v0 }
 0x2e6   :  { %v791_v47 = vpop.xlane.xlu0 %790 }
 0x2e7   :  { %3651 = vrcp.f32 %v791_v47 }
 0x2e8   :  { %v4440_v3 = vpop.f32.mrf.mxu3 }
 0x2ed   :  { %v3652_v4 = vpop.eup %3651 }
 0x2ee   :  { %v815_v55 = vmul.f32 %v3652_v4, %v4333_v18 }
 0x2f0   :  { %v823_v28 = vpack.c.bf16 %v815_v55, %v815_v55  ;;  %v4445_v21 = vpop.f32.mrf.mxu3 }
 0x2f2   :  { %3356 = vmatmul.msk.bf16.vlgmr.msrb.gmra.mxu1 %vm731_vm3, %v823_v28 }
 0x2f3   :  { %1154 = vmatpush.bf16.xpose.msrb.mxu1 %v1145_v7 }
 0x2f8   :  { %v4455_v29 = vpop.f32.mrf.mxu3 }
 0x2f9   :  { %v1182_v15 = vpop.permute.xlu0 %1181 }
 0x300   :  { %v4459_v25 = vpop.f32.mrf.mxu3 }
 0x301   :  { %v797_v0 = vpop.xlane.xlu1 %796  ;;  %v1119_v14 = vpop.permute.xlu0 %1118 }
 0x302   :  { %3653 = vrcp.f32 %v797_v0 }
 0x308   :  { %v3654_v17 = vpop.eup %3653  ;;  %v4466_v13 = vpop.f32.mrf.mxu3 }
 0x309   :  { %v817_v18 = vmul.f32 %v3654_v17, %v4343_v34  ;;  %v803_v19 = vpop.xlane.xlu1 %802  ;;  %v1203_v46 = vpop.permute.xlu0 %1202 }
 0x30a   :  { %3655 = vrcp.f32 %v803_v19 }
 0x30b   :  { %v825_v40 = vpack.c.bf16 %v817_v18, %v817_v18  ;;  %v800_v22 = vpop.xlane.xlu2 %799 }
 0x30c   :  { %3657 = vrcp.f32 %v800_v22 }
 0x30d   :  { %3358 = vmatmul.msk.bf16.vlgmr.msrb.gmra.mxu3 %vm731_vm3, %v825_v40  ;;  %3659 = vrcp.f32 %v3760_v23 }
 0x30e   :  { %1196 = vmatpush.bf16.xpose.msrb.mxu3 %v1187_v11 }
 0x310   :  { %v3656_v35 = vpop.eup %3655 }
 0x311   :  { %v819_v24 = vmul.f32 %v3656_v35, %v4352_v43  ;;  %v1352_v37 = vpop.permute.xlu0 %1351 }
 0x312   :  { %v3658_v32 = vpop.eup %3657  ;;  %v1357_v34 = vsel %vm833_vm2, %v1352_v37, 0 }
 0x313   :  { %v827_v49 = vpack.c.bf16 %v819_v24, %v819_v24  ;;  %v818_v10 = vmul.f32 %v3658_v32, %v4356_v57  ;;  %1366 = vmatpush.bf16.msra.mxu2 %v1357_v34  ;;  %v1140_v43 = vpop.permute.xlu2 %1139  ;;  %v3660_v26 = vpop.eup %3659 }
 0x314   :  { %v1054_v54 = vmul.f32 8.0, %v3660_v26  ;;  %vm1058_vm4 = vweird.f32 %v3660_v26 }
 0x315   :  { %v826_v31 = vpack.c.bf16 %v818_v10, %v818_v10  ;;  %3360 = vmatmul.msk.bf16.vlgmr.msra.gmra.mxu1 %vm731_vm3, %v827_v49 }
 0x316   :  { %1238 = vmatpush.bf16.xpose.msra.mxu1 %v1229_v45  ;;  %v1055_v42 = vsub.f32 1.0, %v1054_v54 }
 0x317   :  { %3359 = vmatmul.msk.bf16.vlgmr.msra.gmra.mxu0 %vm731_vm3, %v826_v31 }
 0x318   :  { %1217 = vmatpush.bf16.xpose.msra.mxu0 %v1208_v33 }
 0x319   :  { %v4461_v61 = vpop.permute.xlu0 %1614 }
 0x31b   :  { %v1424_v57 = vpop.permute.xlu2 %1423 }
 0x31c   :  { %v1429_v56 = vsel %vm833_vm2, %v1424_v57, 0 }
 0x31d   :  { %3362 = vmatmul.msk.bf16.vlgmr.msra.gmra.mxu3 %vm535_vm1, %v1098_v59 }
 0x321   :  { %v1161_v39 = vpop.permute.xlu1 %1160  ;;  %v4469_v51 = vpop.permute.xlu0 %1637 }
 0x322   :  { %3365 = vmatmul.msk.bf16.vlgmr.msrb.gmra.mxu2 %vm535_vm1, %v1161_v39 }
 0x325   :  { %3364 = vmatmul.msk.bf16.vlgmr.msrb.gmra.mxu1 %vm535_vm1, %v1140_v43 }
 0x326   :  { %1438 = vmatpush.bf16.msrb.mxu1 %v1429_v56 }
 0x327   :  { %3363 = vmatmul.msk.bf16.vlgmr.msrb.gmra.mxu0 %vm535_vm1, %v1119_v14 }
 0x329   :  { %v1224_v5 = vpop.permute.xlu1 %1223  ;;  %v1496_v47 = vpop.permute.xlu0 %1495 }
 0x32a   :  { %v1501_v14 = vsel %vm833_vm2, %v1496_v47, 0 }
 0x32d   :  { %3366 = vmatmul.msk.bf16.vlgmr.msrb.gmra.mxu3 %vm535_vm1, %v1182_v15  ;;  %v1056_v15 = vmul.f32 %v3660_v26, %v1055_v42 }
 0x32f   :  { %v1057_v11 = vadd.f32 %v3660_v26, %v1056_v15 }
 0x331   :  { %v1376_v53 = vpop.permute.xlu1 %1375  ;;  %v4478_v10 = vsel %vm1058_vm4, %v3660_v26, %v1057_v11 }
 0x332   :  { %v1381_v27 = vsel %vm833_vm2, %v1376_v53, 0 }
 0x333   :  { %1390 = vmatpush.bf16.msra.mxu3 %v1381_v27 }
 0x335   :  { %v867_v60 = vpop.f32.mrf.mxu3  ;;  %3368 = vmatmul.msk.bf16.vlgmr.msra.gmra.mxu1 %vm535_vm1, %v1224_v5 }
 0x336   :  { %v1004_v44 = vsel %vm535_vm1, %v867_v60, 0.0 }
 0x337   :  { %v1005_v63 = vrot.slane %v1004_v44, 4  ;;  %v846_v59 = vpop.f32.mrf.mxu2  ;;  %3367 = vmatmul.msk.bf16.vlgmr.msra.gmra.mxu0 %vm535_vm1, %v1203_v46 }
 0x338   :  { %v997_v4 = vsel %vm535_vm1, %v846_v59, 0.0 }
 0x339   :  { %v1006_v55 = vadd.f32 %v1005_v63, %v1004_v44  ;;  %v998_v28 = vrot.slane %v997_v4, 4  ;;  %v1400_v7 = vpop.permute.xlu1 %1399 }
 0x33a   :  { %v1405_v0 = vsel %vm833_vm2, %v1400_v7, 0 }
 0x33b   :  { %v1007_v17 = vrot.slane %v1006_v55, 2  ;;  %v999_v18 = vadd.f32 %v998_v28, %v997_v4  ;;  %1414 = vmatpush.bf16.msrb.mxu0 %v1405_v0 }
 0x33d   :  { %v1008_v19 = vadd.f32 %v1007_v17, %v1006_v55  ;;  %v1000_v40 = vrot.slane %v999_v18, 2  ;;  %v869_v22 = vpop.f32.mrf.mxu3 }
 0x33f   :  { %1510 = vmatpush.bf16.msra.mxu0 %v1501_v14  ;;  %v1009_v46 = vrot.slane %v1008_v19, 1  ;;  %v1001_v35 = vadd.f32 %v1000_v40, %v999_v18  ;;  %v848_v24 = vpop.f32.mrf.mxu2 }
 0x341   :  { %v1010_v37 = vadd.f32 %v1009_v46, %v1008_v19  ;;  %v1002_v32 = vrot.slane %v1001_v35, 1  ;;  %v888_v34 = vpop.f32.mrf.mxu0  ;;  %v1448_v49 = vpop.permute.xlu1 %1447 }
 0x342   :  { %v1011_v31 = vsel %vm535_vm1, %v888_v34, 0.0  ;;  %v1453_v45 = vsel %vm833_vm2, %v1448_v49, 0 }
 0x343   :  { %v1003_v33 = vadd.f32 %v1002_v32, %v1001_v35  ;;  %v1012_v43 = vrot.slane %v1011_v31, 4  ;;  %1462 = vmatpush.bf16.msrb.mxu2 %v1453_v45  ;;  %v1061_v39 = vmul.f32 %v4478_v10, %v1010_v37 }
 0x345   :  { %v1060_v57 = vmul.f32 %v4478_v10, %v1003_v33  ;;  %v1013_v56 = vadd.f32 %v1012_v43, %v1011_v31 }
 0x347   :  { %v2125_v5 = vsel %vm2124_vm5, %v1061_v39, %v1060_v57  ;;  %v1014_v23 = vrot.slane %v1013_v56, 2 }
 0x349   :  { %v1015_v53 = vadd.f32 %v1014_v23, %v1013_v56  ;;  %v890_v27 = vpop.f32.mrf.mxu0  ;;  %v1472_v26 = vpop.permute.xlu1 %1471 }
 0x34a   :  { %v1477_v54 = vsel %vm833_vm2, %v1472_v26, 0 }
 0x34b   :  { %v1016_v60 = vrot.slane %v1015_v53, 1  ;;  %1486 = vmatpush.bf16.msrb.mxu3 %v1477_v54 }
 0x34d   :  { %v1017_v44 = vadd.f32 %v1016_v60, %v1015_v53 }
 0x34f   :  { %v1062_v42 = vmul.f32 %v4478_v10, %v1017_v44 }
 0x351   :  { %v2127_v63 = vsel %vm2126_vm6, %v1062_v42, %v2125_v5  ;;  %v1520_v59 = vpop.permute.xlu1 %1519 }
 0x352   :  { %v1525_v47 = vsel %vm833_vm2, %v1520_v59, 0 }
 0x353   :  { %1534 = vmatpush.bf16.msra.mxu1 %v1525_v47 }
 0x357   :  { %v930_v4 = vpop.f32.mrf.mxu2 }
 0x358   :  { %v1025_v28 = vsel %vm535_vm1, %v930_v4, 0.0 }
 0x359   :  { %v1026_v7 = vrot.slane %v1025_v28, 4 }
 0x35b   :  { %v1027_v14 = vadd.f32 %v1026_v7, %v1025_v28 }
 0x35d   :  { %v1028_v18 = vrot.slane %v1027_v14, 2 }
 0x35f   :  { %v932_v55 = vpop.f32.mrf.mxu2  ;;  %v1029_v46 = vadd.f32 %v1028_v18, %v1027_v14 }
 0x361   :  { %v1030_v37 = vrot.slane %v1029_v46, 1 }
 0x363   :  { %v1031_v31 = vadd.f32 %v1030_v37, %v1029_v46 }
 0x365   :  { %v1064_v43 = vmul.f32 %v4478_v10, %v1031_v31 }
 0x367   :  { %v1093_v15 = vpop.f32.mrf.mxu2 }
 0x368   :  { %v4490_v0 = vmul.f32 0.17677669, %v1093_v15 }
 0x36a   :  { %v1252_v17 = vsel %vm731_vm3, %v4490_v0, -inf }
 0x36b   :  { %1253 = vmax.xlane.f32.xlu2 %v1252_v17 }
 0x36f   :  { %v909_v19 = vpop.f32.mrf.mxu1  ;;  %v1095_v40 = vpop.f32.mrf.mxu2 }
 0x370   :  { %v1018_v22 = vsel %vm535_vm1, %v909_v19, 0.0 }
 0x371   :  { %v1019_v11 = vrot.slane %v1018_v22, 4 }
 0x373   :  { %v1020_v35 = vadd.f32 %v1019_v11, %v1018_v22 }
 0x375   :  { %v1021_v24 = vrot.slane %v1020_v35, 2 }
 0x377   :  { %v1022_v32 = vadd.f32 %v1021_v24, %v1020_v35  ;;  %v911_v34 = vpop.f32.mrf.mxu1 }
 0x379   :  { %v1023_v49 = vrot.slane %v1022_v32, 1 }
 0x37b   :  { %v1024_v45 = vadd.f32 %v1023_v49, %v1022_v32 }
 0x37d   :  { %v1063_v33 = vmul.f32 %v4478_v10, %v1024_v45 }
 0x37f   :  { %v2129_v39 = vsel %vm2128_vm7, %v1063_v33, %v2127_v63 }
 0x380   :  { %v2131_v57 = vsel %vm2130_vm8, %v1064_v43, %v2129_v39 }
 0x390   :  { %v951_v56 = vpop.f32.mrf.mxu3 }
 0x391   :  { %v1032_v5 = vsel %vm535_vm1, %v951_v56, 0.0 }
 0x392   :  { %v1033_v23 = vrot.slane %v1032_v5, 4  ;;  %v993_v53 = vpop.f32.mrf.mxu1 }
 0x393   :  { %v1046_v27 = vsel %vm535_vm1, %v993_v53, 0.0 }
 0x394   :  { %v1034_v26 = vadd.f32 %v1033_v23, %v1032_v5  ;;  %v1047_v54 = vrot.slane %v1046_v27, 4  ;;  %v972_v60 = vpop.f32.mrf.mxu0 }
 0x395   :  { %v1039_v44 = vsel %vm535_vm1, %v972_v60, 0.0 }
 0x396   :  { %v1035_v42 = vrot.slane %v1034_v26, 2  ;;  %v1048_v59 = vadd.f32 %v1047_v54, %v1046_v27  ;;  %v1040_v47 = vrot.slane %v1039_v44, 4 }
 0x398   :  { %v1036_v4 = vadd.f32 %v1035_v42, %v1034_v26  ;;  %v1049_v55 = vrot.slane %v1048_v59, 2  ;;  %v1041_v63 = vadd.f32 %v1040_v47, %v1039_v44  ;;  %v953_v28 = vpop.f32.mrf.mxu3 }
 0x39a   :  { %v1037_v7 = vrot.slane %v1036_v4, 1  ;;  %v1050_v15 = vadd.f32 %v1049_v55, %v1048_v59  ;;  %v1042_v14 = vrot.slane %v1041_v63, 2  ;;  %v995_v17 = vpop.f32.mrf.mxu1 }
 0x39c   :  { %v1038_v18 = vadd.f32 %v1037_v7, %v1036_v4  ;;  %v1051_v19 = vrot.slane %v1050_v15, 1  ;;  %v1043_v40 = vadd.f32 %v1042_v14, %v1041_v63  ;;  %v974_v22 = vpop.f32.mrf.mxu0 }
 0x39d   :  { %v4529_v22 = vpop.permute.xlu2 %1612 }
 0x39e   :  { %v1065_v11 = vmul.f32 %v4478_v10, %v1038_v18  ;;  %v1044_v46 = vrot.slane %v1043_v40, 1  ;;  %v1052_v35 = vadd.f32 %v1051_v19, %v1050_v15 }
 0x3a0   :  { %v1045_v24 = vadd.f32 %v1044_v46, %v1043_v40  ;;  %v1114_v37 = vpop.f32.mrf.mxu3  ;;  %v2133_v32 = vsel %vm2132_vm9, %v1065_v11, %v2131_v57  ;;  %v1067_v45 = vmul.f32 %v4478_v10, %v1052_v35 }
 0x3a1   :  { %v1245_v34 = vmul.f32 0.17677669, %v1114_v37 }
 0x3a2   :  { %v1066_v49 = vmul.f32 %v4478_v10, %v1045_v24  ;;  %v1156_v31 = vpop.f32.mrf.mxu1 }
 0x3a3   :  { %v4506_v33 = vmul.f32 0.17677669, %v1156_v31  ;;  %v1255_v43 = vsel %vm731_vm3, %v1245_v34, -inf }
 0x3a4   :  { %1256 = vmax.xlane.f32.xlu0 %v1255_v43  ;;  %v1135_v39 = vpop.f32.mrf.mxu0  ;;  %v2135_v56 = vsel %vm2134_vm10, %v1066_v49, %v2133_v32  ;;  %v4533_v32 = vpop.permute.xlu0 %1635 }
 0x3a5   :  { %v1246_v5 = vmul.f32 0.17677669, %v1135_v39  ;;  %v1177_v23 = vpop.f32.mrf.mxu2  ;;  %v1261_v57 = vsel %vm731_vm3, %v4506_v33, -inf  ;;  %v4513_v53 = vsel %vm2136_vm11, %v1067_v45, %v2135_v56 }
 0x3a6   :  { %1262 = vmax.xlane.f32.xlu2 %v1261_v57  ;;  %v1248_v27 = vmul.f32 0.17677669, %v1177_v23 }
 0x3a7   :  { %v1258_v26 = vsel %vm731_vm3, %v1246_v5, -inf }
 0x3a8   :  { %v1116_v54 = vpop.f32.mrf.mxu3  ;;  %1259 = vmax.xlane.f32.xlu1 %v1258_v26  ;;  %v1264_v44 = vsel %vm731_vm3, %v1248_v27, -inf }
 0x3aa   :  { %v1158_v60 = vpop.f32.mrf.mxu1 }
 0x3ac   :  { %1265 = vmax.xlane.f32.xlu0 %v1264_v44  ;;  %v1137_v42 = vpop.f32.mrf.mxu0  ;;  %v4535_v49 = vpop.permute.xlu0 %1660 }
 0x3ad   :  { %v1179_v59 = vpop.f32.mrf.mxu2 }
 0x3b0   :  { %v1198_v47 = vpop.f32.mrf.mxu3 }
 0x3b1   :  { %v1249_v4 = vmul.f32 0.17677669, %v1198_v47 }
 0x3b2   :  { %v1240_v55 = vpop.f32.mrf.mxu1 }
 0x3b3   :  { %v4517_v63 = vmul.f32 0.17677669, %v1240_v55  ;;  %v1267_v28 = vsel %vm731_vm3, %v1249_v4, -inf }
 0x3b4   :  { %1268 = vmax.xlane.f32.xlu1 %v1267_v28  ;;  %v1219_v7 = vpop.f32.mrf.mxu0 }
 0x3b5   :  { %v1250_v15 = vmul.f32 0.17677669, %v1219_v7  ;;  %v1273_v14 = vsel %vm731_vm3, %v4517_v63, -inf }
 0x3b6   :  { %1274 = vmax.xlane.f32.xlu0 %v1273_v14 }
 0x3b7   :  { %v1270_v17 = vsel %vm731_vm3, %v1250_v15, -inf }
 0x3b8   :  { %v1200_v18 = vpop.f32.mrf.mxu3  ;;  %1271 = vmax.xlane.f32.xlu2 %v1270_v17 }
 0x3ba   :  { %v1242_v19 = vpop.f32.mrf.mxu1 }
 0x3bc   :  { %v1221_v40 = vpop.f32.mrf.mxu0 }
 0x3ca   :  { %1683 = vrot.lane.b32.xlu0 %v4388_v36, %s3759_s3 }
 0x3cd   :  { %1706 = vrot.lane.b32.xlu1 %v4412_v41, %s3759_s3 }
 0x3d0   :  { %1729 = vrot.lane.b32.xlu2 %v4420_v58, %s3759_s3 }
 0x3de   :  { %v1254_v11 = vpop.xlane.xlu2 %1253 }
 0x3df   :  { %v1276_v46 = vsub.f32 %v4490_v0, %v1254_v11 }
 0x3e1   :  { %v1284_v35 = vmul.f32 1.442695, %v1276_v46 }
 0x3e3   :  { %3661 = vpow2.f32 %v1284_v35 }
 0x3e9   :  { %v3662_v24 = vpop.eup %3661 }
 0x3ea   :  { %v1300_v37 = vsel %vm731_vm3, %v3662_v24, 0.0 }
 0x3f7   :  { %1301 = vadd.xlane.f32.xlu1 %v1300_v37 }
 0x410   :  { %1681 = vrot.lane.b32.xlu1 %v4388_v36, %s3758_s0 }
 0x417   :  { %v1257_v31 = vpop.xlane.xlu0 %1256 }
 0x418   :  { %v1277_v39 = vsub.f32 %v1245_v34, %v1257_v31 }
 0x419   :  { %v1263_v54 = vpop.xlane.xlu2 %1262 }
 0x41a   :  { %v1286_v57 = vmul.f32 1.442695, %v1277_v39  ;;  %v1279_v44 = vsub.f32 %v4506_v33, %v1263_v54 }
 0x41b   :  { %v1260_v45 = vpop.xlane.xlu1 %1259 }
 0x41c   :  { %v1278_v43 = vsub.f32 %v1246_v5, %v1260_v45  ;;  %v1290_v59 = vmul.f32 1.442695, %v1279_v44  ;;  %v1666_v44 = vsel %vm535_vm1, %v4535_v49, 0  ;;  %v1643_v49 = vsel %vm535_vm1, %v4469_v51, 0 }
 0x41e   :  { %v1288_v56 = vmul.f32 1.442695, %v1278_v43  ;;  %v1620_v43 = vsel %vm535_vm1, %v4461_v61, 0 }
 0x41f   :  { %v1266_v23 = vpop.xlane.xlu0 %1265 }
 0x420   :  { %3663 = vpow2.f32 %v1288_v56  ;;  %v1280_v0 = vsub.f32 %v1248_v27, %v1266_v23 }
 0x422   :  { %v1292_v26 = vmul.f32 1.442695, %v1280_v0 }
 0x424   :  { %3665 = vpow2.f32 %v1292_v26 }
 0x425   :  { %3667 = vpow2.f32 %v1286_v57 }
 0x426   :  { %v3664_v60 = vpop.eup %3663  ;;  %3669 = vpow2.f32 %v1290_v59 }
 0x427   :  { %v1306_v42 = vsel %vm731_vm3, %v3664_v60, 0.0  ;;  %v1269_v47 = vpop.xlane.xlu1 %1268 }
 0x428   :  { %1307 = vadd.xlane.f32.xlu2 %v1306_v42  ;;  %v1281_v28 = vsub.f32 %v1249_v4, %v1269_v47 }
 0x429   :  { %v1275_v35 = vpop.xlane.xlu0 %1274 }
 0x42a   :  { %v3666_v36 = vpop.eup %3665  ;;  %v1294_v33 = vmul.f32 1.442695, %v1281_v28  ;;  %v503_v28 = vadd.f32 %v4430_v12, %v4256_v50 }
 0x42b   :  { %v1272_v5 = vpop.xlane.xlu2 %1271  ;;  %v1312_v34 = vsel %vm731_vm3, %v3666_v36, 0.0  ;;  %v4542_v55 = vpop.eup %3667 }
 0x42c   :  { %v1282_v27 = vsub.f32 %v1250_v15, %v1272_v5  ;;  %1313 = vadd.xlane.f32.xlu0 %v1312_v34  ;;  %v1303_v14 = vsel %vm731_vm3, %v4542_v55, 0.0  ;;  %v4546_v17 = vpop.eup %3669 }
 0x42d   :  { %v1309_v19 = vsel %vm731_vm3, %v4546_v17, 0.0 }
 0x42e   :  { %v1296_v7 = vmul.f32 1.442695, %v1282_v27 }
 0x430   :  { %3671 = vpow2.f32 %v1296_v7  ;;  %1304 = vadd.xlane.f32.xlu2 %v1303_v14 }
 0x431   :  { %3673 = vpow2.f32 %v1294_v33 }
 0x433   :  { %v1730_v39 = vpop.permute.xlu2 %1729 }
 0x436   :  { %v4548_v18 = vpop.eup %3671 }
 0x437   :  { %v1318_v15 = vsel %vm731_vm3, %v4548_v18, 0.0  ;;  %v4554_v4 = vpop.eup %3673 }
 0x438   :  { %1310 = vadd.xlane.f32.xlu2 %v1309_v19  ;;  %v1315_v40 = vsel %vm731_vm3, %v4554_v4, 0.0 }
 0x43a   :  { %1319 = vadd.xlane.f32.xlu1 %v1318_v15  ;;  %v4595_v15 = vpack.c.bf16 %v503_v28, %v503_v28 }
 0x43c   :  { %v1684_v56 = vpop.permute.xlu0 %1683  ;;  %v1904_v50 = vsel %vm833_vm2, %v4595_v15, 0 }
 0x43f   :  { %v1707_v11 = vpop.permute.xlu1 %1706 }
 0x440   :  { %1316 = vadd.xlane.f32.xlu2 %v1315_v40  ;;  %1658 = vrot.lane.b32.xlu0 %v4405_v8, %s3758_s0  ;;  %v1283_v8 = vsub.f32 %v4517_v63, %v1275_v35  ;;  %v1712_v47 = vsel %vm535_vm1, %v1707_v11, 0  ;;  %v1689_v40 = vsel %vm535_vm1, %v1684_v56, 0  ;;  %v513_v35 = vadd.f32 %v4445_v21, %v4270_v52 }
 0x442   :  { %v1298_v31 = vmul.f32 1.442695, %v1283_v8 }
 0x448   :  { %1727 = vrot.lane.b32.xlu0 %v4420_v58, %s3758_s0 }
 0x450   :  { %1750 = vrot.lane.b32.xlu0 %v4386_v30, %s3758_s0 }
 0x453   :  { %1752 = vrot.lane.b32.xlu1 %v4386_v30, %s3759_s3 }
 0x458   :  { %1704 = vrot.lane.b32.xlu2 %v4412_v41, %s3758_s0 }
 0x45b   :  { %1773 = vrot.lane.b32.xlu1 %v4424_v1, %s3758_s0 }
 0x46a   :  { %v1302_v46 = vpop.xlane.xlu1 %1301 }
 0x46b   :  { %3675 = vrcp.f32 %v1302_v46  ;;  %v508_v46 = vadd.f32 %v4438_v16, %v4264_v20 }
 0x46c   :  { %3677 = vpow2.f32 %v1298_v31  ;;  %v4616_v31 = vpack.c.bf16 %v513_v35, %v513_v35 }
 0x46e   :  { %v1980_v16 = vsel %vm833_vm2, %v4616_v31, 0 }
 0x471   :  { %v3676_v37 = vpop.eup %3675 }
 0x472   :  { %v1332_v58 = vmul.f32 %v3676_v37, %v3662_v24  ;;  %v4574_v30 = vpop.eup %3677  ;;  %v4611_v37 = vpack.c.bf16 %v508_v46, %v508_v46 }
 0x473   :  { %v1321_v41 = vsel %vm731_vm3, %v4574_v30, 0.0 }
 0x474   :  { %v1340_v45 = vpack.c.bf16 %v1332_v58, %v1332_v58 }
 0x476   :  { %3369 = vmatmul.msk.bf16.vlgmr.msra.gmra.mxu2 %vm731_vm3, %v1340_v45  ;;  %v1942_v45 = vsel %vm833_vm2, %v4611_v37, 0 }
 0x477   :  { %1629 = vmatpush.bf16.xpose.msra.mxu2 %v1620_v43 }
 0x481   :  { %1322 = vadd.xlane.f32.xlu2 %v1321_v41  ;;  %v515_v41 = vadd.f32 %v4455_v29, %v4274_v62 }
 0x482   :  { %v4580_v57 = vpop.permute.xlu1 %1681 }
 0x499   :  { %1775 = vrot.lane.b32.xlu2 %v4424_v1, %s3759_s3 }
 0x49b   :  { %v1308_v63 = vpop.xlane.xlu2 %1307 }
 0x49c   :  { %3679 = vrcp.f32 %v1308_v63 }
 0x49f   :  { %v1314_v24 = vpop.xlane.xlu0 %1313 }
 0x4a0   :  { %3681 = vrcp.f32 %v1314_v24 }
 0x4a2   :  { %v3680_v61 = vpop.eup %3679 }
 0x4a3   :  { %v1334_v23 = vmul.f32 %v3680_v61, %v3664_v60  ;;  %v1305_v0 = vpop.xlane.xlu2 %1304 }
 0x4a4   :  { %3683 = vrcp.f32 %v1305_v0 }
 0x4a5   :  { %v1342_v26 = vpack.c.bf16 %v1334_v23, %v1334_v23 }
 0x4a6   :  { %v3682_v54 = vpop.eup %3681 }
 0x4a7   :  { %v1336_v42 = vmul.f32 %v3682_v54, %v3666_v36  ;;  %3371 = vmatmul.msk.bf16.vlgmr.msrb.gmra.mxu0 %vm731_vm3, %v1342_v26  ;;  %v510_v26 = vadd.f32 %v4440_v3, %v4268_v48 }
 0x4a8   :  { %1675 = vmatpush.bf16.xpose.msrb.mxu0 %v1666_v44 }
 0x4a9   :  { %v1344_v1 = vpack.c.bf16 %v1336_v42, %v1336_v42  ;;  %v4649_v54 = vpack.c.bf16 %v510_v26, %v510_v26 }
 0x4aa   :  { %v3684_v59 = vpop.eup %3683 }
 0x4ab   :  { %v1333_v5 = vmul.f32 %v3684_v59, %v4542_v55  ;;  %v1311_v60 = vpop.xlane.xlu2 %1310  ;;  %3373 = vmatmul.msk.bf16.vlgmr.msrb.gmra.mxu2 %vm731_vm3, %v1344_v1  ;;  %v1961_v44 = vsel %vm833_vm2, %v4649_v54, 0 }
 0x4ac   :  { %3685 = vrcp.f32 %v1311_v60  ;;  %1721 = vmatpush.bf16.xpose.msrb.mxu2 %v1712_v47 }
 0x4ad   :  { %v1341_v34 = vpack.c.bf16 %v1333_v5, %v1333_v5  ;;  %v1320_v27 = vpop.xlane.xlu1 %1319 }
 0x4ae   :  { %3687 = vrcp.f32 %v1320_v27 }
 0x4af   :  { %3370 = vmatmul.msk.bf16.vlgmr.msra.gmra.mxu3 %vm731_vm3, %v1341_v34 }
 0x4b0   :  { %1652 = vmatpush.bf16.xpose.msra.mxu3 %v1643_v49 }
 0x4b2   :  { %v3686_v36 = vpop.eup %3685  ;;  %v1659_v8 = vpop.permute.xlu0 %1658 }
 0x4b3   :  { %v1335_v55 = vmul.f32 %v3686_v36, %v4546_v17  ;;  %v1317_v7 = vpop.xlane.xlu2 %1316 }
 0x4b4   :  { %v3688_v14 = vpop.eup %3687  ;;  %3689 = vrcp.f32 %v1317_v7 }
 0x4b5   :  { %v1343_v33 = vpack.c.bf16 %v1335_v55, %v1335_v55  ;;  %v1338_v19 = vmul.f32 %v3688_v14, %v4548_v18  ;;  %v1735_v18 = vsel %vm535_vm1, %v1730_v39, 0 }
 0x4b7   :  { %v1346_v51 = vpack.c.bf16 %v1338_v19, %v1338_v19  ;;  %3372 = vmatmul.msk.bf16.vlgmr.msrb.gmra.mxu1 %vm731_vm3, %v1343_v33 }
 0x4b8   :  { %1698 = vmatpush.bf16.xpose.msrb.mxu1 %v1689_v40 }
 0x4b9   :  { %3375 = vmatmul.msk.bf16.vlgmr.msra.gmra.mxu0 %vm731_vm3, %v1346_v51 }
 0x4ba   :  { %v3690_v11 = vpop.eup %3689  ;;  %v1728_v21 = vpop.permute.xlu0 %1727 }
 0x4bb   :  { %v1337_v12 = vmul.f32 %v3690_v11, %v4554_v4  ;;  %3377 = vmatmul.msk.bf16.vlgmr.msra.gmra.mxu2 %vm535_vm1, %v4529_v22  ;;  %v505_v22 = vadd.f32 %v4433_v6, %v4260_v38  ;;  %v1705_v20 = vpop.permute.xlu2 %1704  ;;  %v518_v6 = vadd.f32 %v4459_v25, %v4281_v2 }
 0x4bc   :  { %1913 = vmatpush.bf16.msra.mxu2 %v1904_v50 }
 0x4bd   :  { %v1345_v17 = vpack.c.bf16 %v1337_v12, %v1337_v12  ;;  %v4621_v52 = vpack.c.bf16 %v505_v22, %v505_v22  ;;  %v4632_v43 = vpack.c.bf16 %v518_v6, %v518_v6 }
 0x4bf   :  { %3374 = vmatmul.msk.bf16.vlgmr.msrb.gmra.mxu3 %vm731_vm3, %v1345_v17  ;;  %v1923_v38 = vsel %vm833_vm2, %v4621_v52, 0  ;;  %v2018_v56 = vsel %vm833_vm2, %v4632_v43, 0 }
 0x4c0   :  { %1744 = vmatpush.bf16.xpose.msrb.mxu3 %v1735_v18 }
 0x4c2   :  { %v1751_v39 = vpop.permute.xlu0 %1750 }
 0x4c5   :  { %v1753_v4 = vpop.permute.xlu1 %1752 }
 0x4c6   :  { %v1758_v58 = vsel %vm535_vm1, %v1753_v4, 0 }
 0x4c7   :  { %1767 = vmatpush.bf16.xpose.msra.mxu0 %v1758_v58 }
 0x4c9   :  { %3379 = vmatmul.msk.bf16.vlgmr.msrb.gmra.mxu0 %vm535_vm1, %v1659_v8 }
 0x4cb   :  { %3381 = vmatmul.msk.bf16.vlgmr.msrb.gmra.mxu2 %vm535_vm1, %v1705_v20 }
 0x4cc   :  { %1989 = vmatpush.bf16.msrb.mxu2 %v1980_v16 }
 0x4cd   :  { %v1774_v1 = vpop.permute.xlu1 %1773 }
 0x4cf   :  { %1951 = vmatpush.bf16.msrb.mxu0 %v1942_v45  ;;  %3378 = vmatmul.msk.bf16.vlgmr.msra.gmra.mxu3 %vm535_vm1, %v4533_v32  ;;  %v4639_v32 = vpack.c.bf16 %v515_v41, %v515_v41 }
 0x4d0   :  { %1932 = vmatpush.bf16.msra.mxu3 %v1923_v38 }
 0x4d1   :  { %v1999_v63 = vsel %vm833_vm2, %v4639_v32, 0 }
 0x4d9   :  { %3383 = vmatmul.msk.bf16.vlgmr.msra.gmra.mxu0 %vm535_vm1, %v1751_v39 }
 0x4da   :  { %2027 = vmatpush.bf16.msra.mxu0 %v2018_v56 }
 0x4df   :  { %3382 = vmatmul.msk.bf16.vlgmr.msrb.gmra.mxu3 %vm535_vm1, %v1728_v21 }
 0x4e0   :  { %2008 = vmatpush.bf16.msrb.mxu3 %v1999_v63 }
 0x4f4   :  { %v1323_v2 = vpop.xlane.xlu2 %1322 }
 0x4f5   :  { %3691 = vrcp.f32 %v1323_v2 }
 0x4f9   :  { %v1368_v25 = vpop.f32.mrf.mxu2 }
 0x4fa   :  { %v1540_v59 = vsel %vm535_vm1, %v1368_v25, 0.0 }
 0x4fb   :  { %v3692_v24 = vpop.eup %3691  ;;  %v1541_v47 = vrot.slane %v1540_v59, 4 }
 0x4fc   :  { %v1339_v62 = vmul.f32 %v3692_v24, %v4574_v30  ;;  %v1776_v29 = vpop.permute.xlu2 %1775  ;;  %v520_v30 = vadd.f32 %v4466_v13, %v4283_v9 }
 0x4fd   :  { %v1781_v23 = vsel %vm535_vm1, %v1776_v29, 0  ;;  %v1542_v60 = vadd.f32 %v1541_v47, %v1540_v59 }
 0x4fe   :  { %v1347_v61 = vpack.c.bf16 %v1339_v62, %v1339_v62  ;;  %v4657_v42 = vpack.c.bf16 %v520_v30, %v520_v30 }
 0x4ff   :  { %v1543_v49 = vrot.slane %v1542_v60, 2 }
 0x500   :  { %3376 = vmatmul.msk.bf16.vlgmr.msra.gmra.mxu1 %vm731_vm3, %v1347_v61  ;;  %v2037_v48 = vsel %vm833_vm2, %v4657_v42, 0 }
 0x501   :  { %1790 = vmatpush.bf16.xpose.msra.mxu1 %v1781_v23  ;;  %v1370_v0 = vpop.f32.mrf.mxu2  ;;  %v1544_v33 = vadd.f32 %v1543_v49, %v1542_v60 }
 0x503   :  { %v1545_v4 = vrot.slane %v1544_v33, 1 }
 0x505   :  { %v1546_v41 = vadd.f32 %v1545_v4, %v1544_v33 }
 0x507   :  { %v1596_v26 = vmul.f32 %v1546_v41, %v4478_v10 }
 0x510   :  { %3380 = vmatmul.msk.bf16.vlgmr.msrb.gmra.mxu1 %vm535_vm1, %v4580_v57 }
 0x511   :  { %1970 = vmatpush.bf16.msrb.mxu1 %v1961_v44 }
 0x520   :  { %3384 = vmatmul.msk.bf16.vlgmr.msra.gmra.mxu1 %vm535_vm1, %v1774_v1 }
 0x521   :  { %2046 = vmatpush.bf16.msra.mxu1 %v2037_v48 }
 0x524   :  { %v1416_v3 = vpop.f32.mrf.mxu0 }
 0x525   :  { %v1554_v57 = vsel %vm535_vm1, %v1416_v3, 0.0 }
 0x526   :  { %v1555_v5 = vrot.slane %v1554_v57, 4 }
 0x528   :  { %v1556_v27 = vadd.f32 %v1555_v5, %v1554_v57 }
 0x52a   :  { %v1557_v28 = vrot.slane %v1556_v27, 2 }
 0x52c   :  { %v1418_v34 = vpop.f32.mrf.mxu0  ;;  %v1558_v11 = vadd.f32 %v1557_v28, %v1556_v27 }
 0x52e   :  { %v1464_v9 = vpop.f32.mrf.mxu2  ;;  %v1559_v45 = vrot.slane %v1558_v11, 1 }
 0x52f   :  { %v1568_v13 = vsel %vm535_vm1, %v1464_v9, 0.0 }
 0x530   :  { %v1569_v36 = vrot.slane %v1568_v13, 4  ;;  %v1560_v2 = vadd.f32 %v1559_v45, %v1558_v11 }
 0x532   :  { %v1570_v55 = vadd.f32 %v1569_v36, %v1568_v13  ;;  %v1392_v7 = vpop.f32.mrf.mxu3  ;;  %v1598_v1 = vmul.f32 %v1560_v2, %v4478_v10 }
 0x533   :  { %v1547_v14 = vsel %vm535_vm1, %v1392_v7, 0.0 }
 0x534   :  { %v1571_v19 = vrot.slane %v1570_v55, 2  ;;  %v1548_v40 = vrot.slane %v1547_v14, 4  ;;  %v1440_v51 = vpop.f32.mrf.mxu1 }
 0x535   :  { %v1561_v50 = vsel %vm535_vm1, %v1440_v51, 0.0 }
 0x536   :  { %v1549_v12 = vadd.f32 %v1548_v40, %v1547_v14  ;;  %v1562_v17 = vrot.slane %v1561_v50, 4  ;;  %v1466_v18 = vpop.f32.mrf.mxu2  ;;  %v1512_v46 = vpop.f32.mrf.mxu0  ;;  %v1572_v35 = vadd.f32 %v1571_v19, %v1570_v55 }
 0x537   :  { %v1582_v8 = vsel %vm535_vm1, %v1512_v46, 0.0 }
 0x538   :  { %v1550_v58 = vrot.slane %v1549_v12, 2  ;;  %v1563_v22 = vadd.f32 %v1562_v17, %v1561_v50  ;;  %v1583_v20 = vrot.slane %v1582_v8, 4  ;;  %v1573_v6 = vrot.slane %v1572_v35, 1 }
 0x53a   :  { %v1551_v16 = vadd.f32 %v1550_v58, %v1549_v12  ;;  %v1564_v21 = vrot.slane %v1563_v22, 2  ;;  %v1394_v38 = vpop.f32.mrf.mxu3  ;;  %v1584_v25 = vadd.f32 %v1583_v20, %v1582_v8  ;;  %v1574_v23 = vadd.f32 %v1573_v6, %v1572_v35 }
 0x53c   :  { %v1552_v39 = vrot.slane %v1551_v16, 1  ;;  %v1565_v56 = vadd.f32 %v1564_v21, %v1563_v22  ;;  %v1442_v63 = vpop.f32.mrf.mxu1  ;;  %v1585_v48 = vrot.slane %v1584_v25, 2  ;;  %v1600_v5 = vmul.f32 %v1574_v23, %v4478_v10 }
 0x53e   :  { %v1553_v24 = vadd.f32 %v1552_v39, %v1551_v16  ;;  %v1566_v62 = vrot.slane %v1565_v56, 1  ;;  %v1514_v29 = vpop.f32.mrf.mxu0  ;;  %v1631_v61 = vpop.f32.mrf.mxu2  ;;  %v1586_v13 = vadd.f32 %v1585_v48, %v1584_v25 }
 0x53f   :  { %v4668_v0 = vmul.f32 0.17677669, %v1631_v61 }
 0x540   :  { %v1597_v44 = vmul.f32 %v1553_v24, %v4478_v10  ;;  %v1567_v30 = vadd.f32 %v1566_v62, %v1565_v56  ;;  %v1587_v33 = vrot.slane %v1586_v13, 1 }
 0x541   :  { %v1804_v3 = vsel %vm731_vm3, %v4668_v0, -inf }
 0x542   :  { %v2147_v59 = vsel %vm2124_vm5, %v1597_v44, %v1596_v26  ;;  %v1599_v57 = vmul.f32 %v1567_v30, %v4478_v10  ;;  %v1488_v47 = vpop.f32.mrf.mxu3  ;;  %1805 = vmax.xlane.f32.xlu2 %v1804_v3  ;;  %v1588_v50 = vadd.f32 %v1587_v33, %v1586_v13 }
 0x543   :  { %v1575_v60 = vsel %vm535_vm1, %v1488_v47, 0.0  ;;  %v2148_v34 = vsel %vm2126_vm6, %v1598_v1, %v2147_v59 }
 0x544   :  { %v1576_v27 = vrot.slane %v1575_v60, 4  ;;  %v2149_v9 = vsel %vm2128_vm7, %v1599_v57, %v2148_v34  ;;  %v1602_v35 = vmul.f32 %v1588_v50, %v4478_v10 }
 0x545   :  { %v2150_v49 = vsel %vm2130_vm8, %v1600_v5, %v2149_v9 }
 0x546   :  { %v1577_v36 = vadd.f32 %v1576_v27, %v1575_v60  ;;  %v1633_v28 = vpop.f32.mrf.mxu2  ;;  %v1677_v55 = vpop.f32.mrf.mxu0 }
 0x547   :  { %v4682_v7 = vmul.f32 0.17677669, %v1677_v55 }
 0x548   :  { %v1578_v14 = vrot.slane %v1577_v36, 2 }
 0x549   :  { %v1810_v19 = vsel %vm731_vm3, %v4682_v7, -inf }
 0x54a   :  { %v1579_v40 = vadd.f32 %v1578_v14, %v1577_v36  ;;  %v1490_v51 = vpop.f32.mrf.mxu3  ;;  %1811 = vmax.xlane.f32.xlu1 %v1810_v19 }
 0x54c   :  { %v1580_v11 = vrot.slane %v1579_v40, 1 }
 0x54e   :  { %v1581_v12 = vadd.f32 %v1580_v11, %v1579_v40  ;;  %v1679_v17 = vpop.f32.mrf.mxu0  ;;  %v1723_v18 = vpop.f32.mrf.mxu2 }
 0x54f   :  { %v1800_v38 = vmul.f32 0.17677669, %v1723_v18 }
 0x550   :  { %v1601_v46 = vmul.f32 %v1581_v12, %v4478_v10 }
 0x551   :  { %v1816_v39 = vsel %vm731_vm3, %v1800_v38, -inf }
 0x552   :  { %v1654_v8 = vpop.f32.mrf.mxu3  ;;  %v2151_v4 = vsel %vm2132_vm9, %v1601_v46, %v2150_v49 }
 0x553   :  { %v1797_v58 = vmul.f32 0.17677669, %v1654_v8  ;;  %v2152_v22 = vsel %vm2134_vm10, %v1602_v35, %v2151_v4 }
 0x555   :  { %v1807_v45 = vsel %vm731_vm3, %v1797_v58, -inf }
 0x556   :  { %1808 = vmax.xlane.f32.xlu0 %v1807_v45  ;;  %v1725_v20 = vpop.f32.mrf.mxu2  ;;  %v1769_v16 = vpop.f32.mrf.mxu0 }
 0x557   :  { %v4691_v21 = vmul.f32 0.17677669, %v1769_v16 }
 0x559   :  { %v1822_v6 = vsel %vm731_vm3, %v4691_v21, -inf }
 0x55a   :  { %v1656_v41 = vpop.f32.mrf.mxu3  ;;  %1823 = vmax.xlane.f32.xlu1 %v1822_v6 }
 0x55e   :  { %1817 = vmax.xlane.f32.xlu0 %v1816_v39  ;;  %v1771_v56 = vpop.f32.mrf.mxu0 }
 0x562   :  { %v1746_v63 = vpop.f32.mrf.mxu3 }
 0x563   :  { %v1801_v47 = vmul.f32 0.17677669, %v1746_v63 }
 0x565   :  { %v1819_v60 = vsel %vm731_vm3, %v1801_v47, -inf }
 0x56a   :  { %v1748_v2 = vpop.f32.mrf.mxu3 }
 0x57d   :  { %v1536_v25 = vpop.f32.mrf.mxu1 }
 0x57e   :  { %v1589_v24 = vsel %vm535_vm1, %v1536_v25, 0.0 }
 0x57f   :  { %v1590_v62 = vrot.slane %v1589_v24, 4 }
 0x581   :  { %v1591_v29 = vadd.f32 %v1590_v62, %v1589_v24 }
 0x583   :  { %v1592_v61 = vrot.slane %v1591_v29, 2 }
 0x585   :  { %v1593_v23 = vadd.f32 %v1592_v61, %v1591_v29  ;;  %v1538_v26 = vpop.f32.mrf.mxu1 }
 0x587   :  { %v1594_v44 = vrot.slane %v1593_v23, 1 }
 0x589   :  { %v1595_v30 = vadd.f32 %v1594_v44, %v1593_v23  ;;  %v2372_v44 = vunpack.c.l.b16 %v4616_v31  ;;  %v2324_v31 = vunpack.c.l.b16 %v4611_v37 }
 0x58b   :  { %v1603_v1 = vmul.f32 %v1595_v30, %v4478_v10  ;;  %v4742_v30 = vpack.c.b16 %v2372_v44, %v2372_v44 }
 0x58d   :  { %v1700_v48 = vpop.f32.mrf.mxu1  ;;  %v4699_v3 = vsel %vm2136_vm11, %v1603_v1, %v2152_v22  ;;  %v2276_v1 = vunpack.c.l.b16 %v4595_v15 }
 0x58e   :  { %v1799_v59 = vmul.f32 0.17677669, %v1700_v48 }
 0x590   :  { %v1813_v57 = vsel %vm731_vm3, %v1799_v59, -inf }
 0x591   :  { %1814 = vmax.xlane.f32.xlu2 %v1813_v57  ;;  %v4748_v57 = vpack.c.b16 %v2276_v1, %v2276_v1 }
 0x595   :  { %v1702_v5 = vpop.f32.mrf.mxu1 }
 0x599   :  { %1820 = vmax.xlane.f32.xlu2 %v1819_v60  ;;  %v2396_v60 = vunpack.c.l.b16 %v4639_v32 }
 0x59d   :  { %v1792_v34 = vpop.f32.mrf.mxu1 }
 0x59e   :  { %v1803_v27 = vmul.f32 0.17677669, %v1792_v34  ;;  %v4759_v34 = vpack.c.b16 %v2324_v31, %v2324_v31 }
 0x5a0   :  { %v1825_v9 = vsel %vm731_vm3, %v1803_v27, -inf }
 0x5a1   :  { %1826 = vmax.xlane.f32.xlu0 %v1825_v9  ;;  %v2420_v9 = vunpack.c.l.b16 %v4632_v43 }
 0x5a3   :  { %v4770_v32 = vpack.c.b16 %v2420_v9, %v2420_v9 }
 0x5a5   :  { %v1794_v13 = vpop.f32.mrf.mxu1 }
 0x5b5   :  { %v1806_v49 = vpop.xlane.xlu2 %1805 }
 0x5b6   :  { %v1828_v36 = vsub.f32 %v4668_v0, %v1806_v49 }
 0x5b8   :  { %v1836_v28 = vmul.f32 1.442695, %v1828_v36 }
 0x5ba   :  { %3693 = vpow2.f32 %v1836_v28 }
 0x5bd   :  { %v1812_v55 = vpop.xlane.xlu1 %1811 }
 0x5be   :  { %v1830_v14 = vsub.f32 %v4682_v7, %v1812_v55 }
 0x5c0   :  { %v4706_v33 = vpop.eup %3693  ;;  %v1840_v19 = vmul.f32 1.442695, %v1830_v14 }
 0x5c1   :  { %v1852_v40 = vsel %vm731_vm3, %v4706_v33, 0.0 }
 0x5c2   :  { %3695 = vpow2.f32 %v1840_v19  ;;  %1853 = vadd.xlane.f32.xlu2 %v1852_v40 }
 0x5c8   :  { %v4710_v51 = vpop.eup %3695 }
 0x5c9   :  { %v1809_v11 = vpop.xlane.xlu0 %1808  ;;  %v1858_v50 = vsel %vm731_vm3, %v4710_v51, 0.0 }
 0x5ca   :  { %v1829_v0 = vsub.f32 %v1797_v58, %v1809_v11  ;;  %1859 = vadd.xlane.f32.xlu0 %v1858_v50  ;;  %v3590_v11 = vld [vmem:[%s5079_s4 + $0x20] sm:$0xff]  ;;  %v3589_v50 = vld [vmem:[%s5079_s4 + $0x18] sm:$0xff] }
 0x5cc   :  { %v1838_v12 = vmul.f32 1.442695, %v1829_v0  ;;  %v3588_v0 = vld [vmem:[%s5079_s4 + $0x10] sm:$0xff] }
 0x5cd   :  { %v1824_v58 = vpop.xlane.xlu1 %1823 }
 0x5ce   :  { %3697 = vpow2.f32 %v1838_v12  ;;  %v1834_v20 = vsub.f32 %v4691_v21, %v1824_v58  ;;  %v3587_v12 = vld [vmem:[%s5079_s4 + $0x8] sm:$0xff] }
 0x5d1   :  { %v1818_v17 = vpop.xlane.xlu0 %1817 }
 0x5d2   :  { %v1832_v7 = vsub.f32 %v1800_v38, %v1818_v17  ;;  %v1848_v38 = vmul.f32 1.442695, %v1834_v20 }
 0x5d4   :  { %v4714_v18 = vpop.eup %3697  ;;  %v1844_v46 = vmul.f32 1.442695, %v1832_v7  ;;  %v3586_v7 = vld [vmem:[%s5079_s4] sm:$0xff] }
 0x5d5   :  { %v1855_v35 = vsel %vm731_vm3, %v4714_v18, 0.0 }
 0x5d6   :  { %3699 = vpow2.f32 %v1844_v46  ;;  %1856 = vadd.xlane.f32.xlu1 %v1855_v35 }
 0x5dc   :  { %v4718_v8 = vpop.eup %3699 }
 0x5dd   :  { %v1864_v4 = vsel %vm731_vm3, %v4718_v8, 0.0 }
 0x5de   :  { %1865 = vadd.xlane.f32.xlu1 %v1864_v4 }
 0x604   :  { %v1815_v22 = vpop.xlane.xlu2 %1814 }
 0x605   :  { %v1831_v45 = vsub.f32 %v1799_v59, %v1815_v22  ;;  %v2300_v59 = vunpack.c.l.b16 %v4621_v52 }
 0x607   :  { %v1842_v16 = vmul.f32 1.442695, %v1831_v45 }
 0x609   :  { %3701 = vpow2.f32 %v1842_v16 }
 0x60a   :  { %3703 = vpow2.f32 %v1848_v38 }
 0x60c   :  { %v1821_v6 = vpop.xlane.xlu2 %1820 }
 0x60d   :  { %v1833_v41 = vsub.f32 %v1801_v47, %v1821_v6  ;;  %v4752_v47 = vpack.c.b16 %v2300_v59, %v2300_v59 }
 0x60f   :  { %v4723_v39 = vpop.eup %3701  ;;  %v1846_v56 = vmul.f32 1.442695, %v1833_v41 }
 0x610   :  { %v1861_v63 = vsel %vm731_vm3, %v4723_v39, 0.0  ;;  %v4727_v25 = vpop.eup %3703 }
 0x611   :  { %3705 = vpow2.f32 %v1846_v56  ;;  %1862 = vadd.xlane.f32.xlu2 %v1861_v63  ;;  %v1870_v61 = vsel %vm731_vm3, %v4727_v25, 0.0 }
 0x614   :  { %v1827_v2 = vpop.xlane.xlu0 %1826 }
 0x615   :  { %v1835_v24 = vsub.f32 %v1803_v27, %v1827_v2  ;;  %v4764_v27 = vpack.c.b16 %v2396_v60, %v2396_v60 }
 0x617   :  { %v4729_v62 = vpop.eup %3705  ;;  %v1850_v21 = vmul.f32 1.442695, %v1835_v24 }
 0x618   :  { %v1867_v29 = vsel %vm731_vm3, %v4729_v62, 0.0 }
 0x619   :  { %3707 = vpow2.f32 %v1850_v21  ;;  %1868 = vadd.xlane.f32.xlu0 %v1867_v29  ;;  %1871 = vadd.xlane.f32.xlu2 %v1870_v61 }
 0x61f   :  { %v4735_v23 = vpop.eup %3707 }
 0x620   :  { %v1873_v26 = vsel %vm731_vm3, %v4735_v23, 0.0 }
 0x621   :  { %1874 = vadd.xlane.f32.xlu1 %v1873_v26 }
 0x62d   :  { %2154 = vrot.lane.b32.xlu0 %v4699_v3, %s3759_s3 }
 0x635   :  { %2374 = vrot.lane.b32.xlu0 %v4742_v30, %s3757_s30  ;;  %v1854_v48 = vpop.xlane.xlu2 %1853 }
 0x636   :  { %3709 = vrcp.f32 %v1854_v48 }
 0x63a   :  { %2278 = vrot.lane.b32.xlu1 %v4748_v57, %s3757_s30 }
 0x63c   :  { %v3710_v3 = vpop.eup %3709 }
 0x63d   :  { %v1884_v5 = vmul.f32 %v3710_v3, %v4706_v33  ;;  %2302 = vrot.lane.b32.xlu0 %v4752_v47, %s3757_s30  ;;  %v1860_v15 = vpop.xlane.xlu0 %1859 }
 0x63e   :  { %3711 = vrcp.f32 %v1860_v15 }
 0x63f   :  { %v1892_v52 = vpack.c.bf16 %v1884_v5, %v1884_v5 }
 0x641   :  { %3385 = vmatmul.msk.bf16.vlgmr.msra.gmra.mxu2 %vm731_vm3, %v1892_v52 }
 0x642   :  { %2326 = vrot.lane.b32.xlu1 %v4759_v34, %s3757_s30 }
 0x644   :  { %v3712_v37 = vpop.eup %3711 }
 0x645   :  { %v1886_v13 = vmul.f32 %v3712_v37, %v4710_v51  ;;  %2398 = vrot.lane.b32.xlu0 %v4764_v27, %s3757_s30  ;;  %v3591_v51 = vld [vmem:[%s5079_s4 + $0x28] sm:$0xff] }
 0x646   :  { %2232 = vmatpush.bf16.msra.mxu2 %v3591_v51 }
 0x647   :  { %v1894_v49 = vpack.c.bf16 %v1886_v13, %v1886_v13 }
 0x649   :  { %v1857_v36 = vpop.xlane.xlu1 %1856  ;;  %3387 = vmatmul.msk.bf16.vlgmr.msrb.gmra.mxu0 %vm731_vm3, %v1894_v49 }
 0x64a   :  { %3713 = vrcp.f32 %v1857_v36  ;;  %2422 = vrot.lane.b32.xlu1 %v4770_v32, %s3757_s30  ;;  %2233 = vmatpush.bf16.msra.mxu2 %v3590_v11 }
 0x64e   :  { %2234 = vmatpush.bf16.msra.mxu2 %v3589_v50 }
 0x650   :  { %v3714_v28 = vpop.eup %3713 }
 0x651   :  { %v1885_v55 = vmul.f32 %v3714_v28, %v4714_v18  ;;  %v1866_v14 = vpop.xlane.xlu1 %1865 }
 0x652   :  { %3715 = vrcp.f32 %v1866_v14  ;;  %2235 = vmatpush.bf16.msra.mxu2 %v3588_v0 }
 0x653   :  { %v1893_v43 = vpack.c.bf16 %v1885_v55, %v1885_v55 }
 0x655   :  { %3386 = vmatmul.msk.bf16.vlgmr.msra.gmra.mxu3 %vm731_vm3, %v1893_v43 }
 0x656   :  { %2236 = vmatpush.bf16.msra.mxu2 %v3587_v12 }
 0x658   :  { %v3716_v33 = vpop.eup %3715 }
 0x659   :  { %v1888_v19 = vmul.f32 %v3716_v33, %v4718_v8 }
 0x65a   :  { %2237 = vmatpush.bf16.msra.mxu2 %v3586_v7 }
 0x65b   :  { %v1896_v40 = vpack.c.bf16 %v1888_v19, %v1888_v19 }
 0x65d   :  { %3389 = vmatmul.msk.bf16.vlgmr.msrb.gmra.mxu2 %vm731_vm3, %v1896_v40 }
 0x684   :  { %v1863_v17 = vpop.xlane.xlu2 %1862 }
 0x685   :  { %3717 = vrcp.f32 %v1863_v17 }
 0x68b   :  { %v3718_v18 = vpop.eup %3717 }
 0x68c   :  { %v1887_v46 = vmul.f32 %v3718_v18, %v4723_v39  ;;  %v1872_v35 = vpop.xlane.xlu2 %1871  ;;  %v1869_v8 = vpop.xlane.xlu0 %1868 }
 0x68d   :  { %3719 = vrcp.f32 %v1872_v35 }
 0x68e   :  { %v1895_v4 = vpack.c.bf16 %v1887_v46, %v1887_v46  ;;  %3721 = vrcp.f32 %v1869_v8 }
 0x690   :  { %3388 = vmatmul.msk.bf16.vlgmr.msrb.gmra.mxu1 %vm731_vm3, %v1895_v4 }
 0x693   :  { %v3720_v58 = vpop.eup %3719 }
 0x694   :  { %v3722_v22 = vpop.eup %3721  ;;  %v1890_v45 = vmul.f32 %v3720_v58, %v4727_v25  ;;  %v1875_v20 = vpop.xlane.xlu1 %1874 }
 0x695   :  { %v1889_v16 = vmul.f32 %v3722_v22, %v4729_v62  ;;  %3723 = vrcp.f32 %v1875_v20 }
 0x696   :  { %v1898_v38 = vpack.c.bf16 %v1890_v45, %v1890_v45 }
 0x697   :  { %v1897_v6 = vpack.c.bf16 %v1889_v16, %v1889_v16 }
 0x698   :  { %3391 = vmatmul.msk.bf16.vlgmr.msra.gmra.mxu0 %vm731_vm3, %v1898_v38 }
 0x699   :  { %3390 = vmatmul.msk.bf16.vlgmr.msrb.gmra.mxu3 %vm731_vm3, %v1897_v6 }
 0x69b   :  { %v3724_v41 = vpop.eup %3723 }
 0x69c   :  { %v1891_v39 = vmul.f32 %v3724_v41, %v4735_v23 }
 0x69e   :  { %v1899_v56 = vpack.c.bf16 %v1891_v39, %v1891_v39 }
 0x69f   :  { %v2155_v63 = vpop.permute.xlu0 %2154 }
 0x6a0   :  { %v4806_v2 = vsel %vm535_vm1, %v4513_v53, %v2155_v63  ;;  %3392 = vmatmul.msk.bf16.vlgmr.msra.gmra.mxu1 %vm731_vm3, %v1899_v56 }
 0x6a7   :  { %v2375_v25 = vpop.permute.xlu0 %2374 }
 0x6a8   :  { %v2380_v24 = vsel %vm535_vm1, %v2375_v25, 0 }
 0x6a9   :  { %2389 = vmatpush.bf16.xpose.msrb.mxu2 %v2380_v24 }
 0x6ac   :  { %v2279_v62 = vpop.permute.xlu1 %2278 }
 0x6ad   :  { %v2284_v21 = vsel %vm535_vm1, %v2279_v62, 0 }
 0x6ae   :  { %2293 = vmatpush.bf16.xpose.msra.mxu3 %v2284_v21 }
 0x6af   :  { %v2303_v29 = vpop.permute.xlu0 %2302 }
 0x6b0   :  { %v2308_v61 = vsel %vm535_vm1, %v2303_v29, 0 }
 0x6b1   :  { %2317 = vmatpush.bf16.xpose.msrb.mxu0 %v2308_v61 }
 0x6b4   :  { %v2327_v23 = vpop.permute.xlu1 %2326 }
 0x6b5   :  { %v2332_v26 = vsel %vm535_vm1, %v2327_v23, 0 }
 0x6b6   :  { %2341 = vmatpush.bf16.xpose.msrb.mxu1 %v2332_v26 }
 0x6b7   :  { %v2399_v53 = vpop.permute.xlu0 %2398 }
 0x6b8   :  { %v2404_v44 = vsel %vm535_vm1, %v2399_v53, 0 }
 0x6b9   :  { %2413 = vmatpush.bf16.xpose.msra.mxu0 %v2404_v44 }
 0x6bc   :  { %v2423_v1 = vpop.permute.xlu1 %2422 }
 0x6bd   :  { %v2428_v48 = vsel %vm535_vm1, %v2423_v1, 0 }
 0x6be   :  { %2437 = vmatpush.bf16.xpose.msra.mxu1 %v2428_v48 }
 0x6c4   :  { %v1915_v59 = vpop.f32.mrf.mxu2 }
 0x6c5   :  { %v2052_v31 = vsel %vm535_vm1, %v1915_v59, 0.0 }
 0x6c6   :  { %v1953_v3 = vpop.f32.mrf.mxu0  ;;  %v2053_v60 = vrot.slane %v2052_v31, 4 }
 0x6c7   :  { %v2066_v5 = vsel %vm535_vm1, %v1953_v3, 0.0 }
 0x6c8   :  { %v2067_v37 = vrot.slane %v2066_v5, 4  ;;  %v2054_v9 = vadd.f32 %v2053_v60, %v2052_v31 }
 0x6ca   :  { %v2068_v13 = vadd.f32 %v2067_v37, %v2066_v5  ;;  %v2055_v49 = vrot.slane %v2054_v9, 2 }
 0x6cc   :  { %v1917_v15 = vpop.f32.mrf.mxu2  ;;  %v2069_v36 = vrot.slane %v2068_v13, 2  ;;  %v2056_v14 = vadd.f32 %v2055_v49, %v2054_v9 }
 0x6ce   :  { %v1955_v52 = vpop.f32.mrf.mxu0  ;;  %v2070_v33 = vadd.f32 %v2069_v36, %v2068_v13  ;;  %v2057_v40 = vrot.slane %v2056_v14, 1 }
 0x6d0   :  { %v2071_v11 = vrot.slane %v2070_v33, 1  ;;  %v2058_v17 = vadd.f32 %v2057_v40, %v2056_v14 }
 0x6d2   :  { %v2072_v18 = vadd.f32 %v2071_v11, %v2070_v33  ;;  %v2108_v35 = vmul.f32 %v2058_v17, %v4478_v10 }
 0x6d4   :  { %v2110_v4 = vmul.f32 %v2072_v18, %v4478_v10 }
 0x6d8   :  { %v1934_v28 = vpop.f32.mrf.mxu3 }
 0x6d9   :  { %v2059_v55 = vsel %vm535_vm1, %v1934_v28, 0.0 }
 0x6da   :  { %v2060_v43 = vrot.slane %v2059_v55, 4 }
 0x6dc   :  { %v2061_v19 = vadd.f32 %v2060_v43, %v2059_v55 }
 0x6de   :  { %v2062_v51 = vrot.slane %v2061_v19, 2 }
 0x6e0   :  { %v2063_v50 = vadd.f32 %v2062_v51, %v2061_v19  ;;  %v1936_v0 = vpop.f32.mrf.mxu3  ;;  %v1991_v12 = vpop.f32.mrf.mxu2 }
 0x6e1   :  { %v2080_v16 = vsel %vm535_vm1, %v1991_v12, 0.0 }
 0x6e2   :  { %v2064_v7 = vrot.slane %v2063_v50, 1  ;;  %v2081_v41 = vrot.slane %v2080_v16, 4 }
 0x6e4   :  { %v2065_v46 = vadd.f32 %v2064_v7, %v2063_v50  ;;  %v2082_v63 = vadd.f32 %v2081_v41, %v2080_v16  ;;  %v2444_v16 = vunpack.c.l.b16 %v4657_v42 }
 0x6e6   :  { %v2109_v8 = vmul.f32 %v2065_v46, %v4478_v10  ;;  %v2083_v61 = vrot.slane %v2082_v63, 2 }
 0x6e8   :  { %v2165_v58 = vsel %vm2124_vm5, %v2109_v8, %v2108_v35  ;;  %v1993_v22 = vpop.f32.mrf.mxu2  ;;  %v2084_v1 = vadd.f32 %v2083_v61, %v2082_v63 }
 0x6e9   :  { %v2166_v45 = vsel %vm2126_vm6, %v2110_v4, %v2165_v58 }
 0x6ea   :  { %v2085_v9 = vrot.slane %v2084_v1, 1 }
 0x6ec   :  { %v2086_v33 = vadd.f32 %v2085_v9, %v2084_v1 }
 0x6ee   :  { %v2112_v17 = vmul.f32 %v2086_v33, %v4478_v10 }
 0x70d   :  { %v1972_v20 = vpop.f32.mrf.mxu1 }
 0x70e   :  { %v2073_v38 = vsel %vm535_vm1, %v1972_v20, 0.0 }
 0x70f   :  { %v2074_v6 = vrot.slane %v2073_v38, 4 }
 0x711   :  { %v2075_v39 = vadd.f32 %v2074_v6, %v2073_v38  ;;  %v4845_v38 = vpack.c.b16 %v2444_v16, %v2444_v16 }
 0x713   :  { %v2076_v56 = vrot.slane %v2075_v39, 2 }
 0x715   :  { %v1974_v25 = vpop.f32.mrf.mxu1  ;;  %v2029_v24 = vpop.f32.mrf.mxu0  ;;  %v2077_v29 = vadd.f32 %v2076_v56, %v2075_v39 }
 0x716   :  { %v2094_v62 = vsel %vm535_vm1, %v2029_v24, 0.0 }
 0x717   :  { %v2095_v21 = vrot.slane %v2094_v62, 4  ;;  %v2078_v53 = vrot.slane %v2077_v29, 1 }
 0x719   :  { %v2096_v23 = vadd.f32 %v2095_v21, %v2094_v62  ;;  %v2079_v52 = vadd.f32 %v2078_v53, %v2077_v29 }
 0x71b   :  { %v2097_v26 = vrot.slane %v2096_v23, 2  ;;  %v2111_v55 = vmul.f32 %v2079_v52, %v4478_v10 }
 0x71c   :  { %v2010_v44 = vpop.f32.mrf.mxu3 }
 0x71d   :  { %v2087_v48 = vsel %vm535_vm1, %v2010_v44, 0.0  ;;  %v2031_v59 = vpop.f32.mrf.mxu0  ;;  %v2048_v3 = vpop.f32.mrf.mxu1  ;;  %v2098_v15 = vadd.f32 %v2097_v26, %v2096_v23  ;;  %v2167_v12 = vsel %vm2128_vm7, %v2111_v55, %v2166_v45  ;;  %v2348_v45 = vunpack.c.l.b16 %v4649_v54 }
 0x71e   :  { %v2088_v31 = vrot.slane %v2087_v48, 4  ;;  %v2101_v5 = vsel %vm535_vm1, %v2048_v3, 0.0  ;;  %v2168_v8 = vsel %vm2130_vm8, %v2112_v17, %v2167_v12 }
 0x71f   :  { %v2102_v60 = vrot.slane %v2101_v5, 4  ;;  %v2099_v36 = vrot.slane %v2098_v15, 1  ;;  %v4840_v20 = vpack.c.b16 %v2348_v45, %v2348_v45 }
 0x720   :  { %v2089_v37 = vadd.f32 %v2088_v31, %v2087_v48 }
 0x721   :  { %v2103_v13 = vadd.f32 %v2102_v60, %v2101_v5  ;;  %v2100_v11 = vadd.f32 %v2099_v36, %v2098_v15 }
 0x722   :  { %v2090_v49 = vrot.slane %v2089_v37, 2 }
 0x723   :  { %v2104_v28 = vrot.slane %v2103_v13, 2  ;;  %v2114_v46 = vmul.f32 %v2100_v11, %v4478_v10 }
 0x724   :  { %v2091_v14 = vadd.f32 %v2090_v49, %v2089_v37  ;;  %v2012_v43 = vpop.f32.mrf.mxu3 }
 0x725   :  { %v2105_v19 = vadd.f32 %v2104_v28, %v2103_v13  ;;  %v2050_v40 = vpop.f32.mrf.mxu1 }
 0x726   :  { %v2092_v51 = vrot.slane %v2091_v14, 1 }
 0x727   :  { %v2106_v50 = vrot.slane %v2105_v19, 1 }
 0x728   :  { %v2093_v0 = vadd.f32 %v2092_v51, %v2091_v14 }
 0x729   :  { %v2107_v7 = vadd.f32 %v2106_v50, %v2105_v19 }
 0x72a   :  { %v2113_v18 = vmul.f32 %v2093_v0, %v4478_v10 }
 0x72b   :  { %v2115_v35 = vmul.f32 %v2107_v7, %v4478_v10 }
 0x72c   :  { %v2169_v4 = vsel %vm2132_vm9, %v2113_v18, %v2168_v8 }
 0x72d   :  { %v2170_v58 = vsel %vm2134_vm10, %v2114_v46, %v2169_v4 }
 0x72e   :  { %v2171_v22 = vsel %vm2136_vm11, %v2115_v35, %v2170_v58 }
 0x72f   :  { %2172 = vrot.lane.b32.xlu2 %v2171_v22, %s3758_s0 }
 0x737   :  { %2350 = vrot.lane.b32.xlu2 %v4840_v20, %s3757_s30 }
 0x73f   :  { %2446 = vrot.lane.b32.xlu2 %v4845_v38, %s3757_s30 }
 0x789   :  { %v2173_v6 = vpop.permute.xlu2 %2172 }
 0x78a   :  { %v2176_v41 = vsel %vm335_vm0, %v4806_v2, %v2173_v6 }
 0x78b   :  { %v4851_v39 = vpack.c.bf16 %v2176_v41, %v2176_v41 }
 0x78d   :  { %3417 = vmatmul.msk.bf16.vlgmr.msra.gmra.mxu2 %vm2226_vm12, %v4851_v39 }
 0x791   :  { %v2351_v54 = vpop.permute.xlu2 %2350 }
 0x792   :  { %v2356_v56 = vsel %vm535_vm1, %v2351_v54, 0 }
 0x793   :  { %2365 = vmatpush.bf16.xpose.msrb.mxu3 %v2356_v56 }
 0x799   :  { %v2447_v21 = vpop.permute.xlu2 %2446 }
 0x79a   :  { %v2452_v26 = vsel %vm535_vm1, %v2447_v21, 0 }
 0x810   :  { %v2239_v42 = vpop.f32.mrf.mxu2 }
 0x811   :  { %v2251_v63 = vperm.slane %v2239_v42, 0  ;;  %v2244_v25 = vrot.slane %v2239_v42, 1  ;;  %v2245_v24 = vrot.slane %v2239_v42, 2  ;;  %v2247_v62 = vrot.slane %v2239_v42, 4 }
 0x812   :  { %v2246_v59 = vrot.slane %v2239_v42, 3  ;;  %v2248_v3 = vrot.slane %v2239_v42, 5  ;;  %v2249_v31 = vrot.slane %v2239_v42, 6  ;;  %v2250_v13 = vrot.slane %v2239_v42, 7 }
 0x813   :  { %v2267_v29 = vpack.c.bf16 %v2251_v63, %v2251_v63  ;;  %v2252_v61 = vperm.slane %v2244_v25, 0  ;;  %v2253_v23 = vperm.slane %v2245_v24, 0  ;;  %v2255_v2 = vperm.slane %v2247_v62, 0 }
 0x814   :  { %v2254_v5 = vperm.slane %v2246_v59, 0  ;;  %v2256_v15 = vperm.slane %v2248_v3, 0  ;;  %v2257_v60 = vperm.slane %v2249_v31, 0  ;;  %v2258_v49 = vperm.slane %v2250_v13, 0 }
 0x815   :  { %3418 = vmatmul.msk.bf16.vlgmr.msra.gmra.mxu3 %vm535_vm1, %v2267_v29  ;;  %v2268_v53 = vpack.c.bf16 %v2252_v61, %v2252_v61  ;;  %v2269_v44 = vpack.c.bf16 %v2253_v23, %v2253_v23  ;;  %v2271_v1 = vpack.c.bf16 %v2255_v2, %v2255_v2 }
 0x816   :  { %2461 = vmatpush.bf16.xpose.msra.mxu3 %v2452_v26  ;;  %v2270_v52 = vpack.c.bf16 %v2254_v5, %v2254_v5  ;;  %v2272_v37 = vpack.c.bf16 %v2256_v15, %v2256_v15  ;;  %v2273_v9 = vpack.c.bf16 %v2257_v60, %v2257_v60  ;;  %v2274_v36 = vpack.c.bf16 %v2258_v49, %v2258_v49 }
 0x817   :  { %3419 = vmatmul.msk.bf16.vlgmr.msrb.gmra.mxu0 %vm535_vm1, %v2268_v53  ;;  %3420 = vmatmul.msk.bf16.vlgmr.msrb.gmra.mxu1 %vm535_vm1, %v2269_v44 }
 0x818   :  { %3422 = vmatmul.msk.bf16.vlgmr.msrb.gmra.mxu2 %vm535_vm1, %v2271_v1  ;;  %v2241_v48 = vpop.f32.mrf.mxu2 }
 0x825   :  { %3421 = vmatmul.msk.bf16.vlgmr.msrb.gmra.mxu3 %vm535_vm1, %v2270_v52 }
 0x827   :  { %3423 = vmatmul.msk.bf16.vlgmr.msra.gmra.mxu0 %vm535_vm1, %v2272_v37  ;;  %3424 = vmatmul.msk.bf16.vlgmr.msra.gmra.mxu1 %vm535_vm1, %v2273_v9 }
 0x835   :  { %3425 = vmatmul.msk.bf16.vlgmr.msra.gmra.mxu3 %vm535_vm1, %v2274_v36 }
 0x894   :  { %v2319_v28 = vpop.f32.mrf.mxu0  ;;  %v2343_v55 = vpop.f32.mrf.mxu1 }
 0x895   :  { %v2468_v58 = vmul.f32 0.17677669, %v2319_v28  ;;  %v2469_v63 = vmul.f32 0.17677669, %v2343_v55 }
 0x897   :  { %v2478_v45 = vsel %vm731_vm3, %v2468_v58, -inf  ;;  %v2481_v25 = vsel %vm731_vm3, %v2469_v63, -inf }
 0x898   :  { %v2295_v14 = vpop.f32.mrf.mxu3 }
 0x899   :  { %v2467_v43 = vmul.f32 0.17677669, %v2295_v14 }
 0x89b   :  { %v2391_v33 = vpop.f32.mrf.mxu2  ;;  %v2475_v19 = vsel %vm731_vm3, %v2467_v43, -inf }
 0x89c   :  { %v2471_v40 = vmul.f32 0.17677669, %v2391_v33  ;;  %2476 = vmax.xlane.f32.xlu2 %v2475_v19  ;;  %v2321_v51 = vpop.f32.mrf.mxu0  ;;  %v2345_v11 = vpop.f32.mrf.mxu1 }
 0x89e   :  { %v2487_v50 = vsel %vm731_vm3, %v2471_v40, -inf }
 0x89f   :  { %2488 = vmax.xlane.f32.xlu0 %v2487_v50 }
 0x8a0   :  { %v2297_v0 = vpop.f32.mrf.mxu3 }
 0x8a3   :  { %v2393_v12 = vpop.f32.mrf.mxu2 }
 0x8a4   :  { %v2415_v17 = vpop.f32.mrf.mxu0  ;;  %v2439_v7 = vpop.f32.mrf.mxu1 }
 0x8a5   :  { %v2473_v54 = vmul.f32 0.17677669, %v2439_v7  ;;  %v2472_v37 = vmul.f32 0.17677669, %v2415_v17 }
 0x8a7   :  { %v2493_v42 = vsel %vm731_vm3, %v2473_v54, -inf }
 0x8a8   :  { %v2367_v18 = vpop.f32.mrf.mxu3 }
 0x8a9   :  { %v4867_v46 = vmul.f32 0.17677669, %v2367_v18 }
 0x8ab   :  { %v2484_v35 = vsel %vm731_vm3, %v4867_v46, -inf }
 0x8ac   :  { %v2441_v8 = vpop.f32.mrf.mxu1  ;;  %2485 = vmax.xlane.f32.xlu0 %v2484_v35  ;;  %v2417_v4 = vpop.f32.mrf.mxu0 }
 0x8ad   :  { %v3597_v4 = vld [vmem:[%s5080_s5 + $0x28] sm:$0xff] }
 0x8b0   :  { %v2369_v22 = vpop.f32.mrf.mxu3 }
 0x8b1   :  { %v3595_v22 = vld [vmem:[%s5080_s5 + $0x18] sm:$0xff] }
 0x8b4   :  { %2571 = vrot.lane.b32.xlu2 %v4748_v57, %s3758_s0  ;;  %2479 = vmax.xlane.f32.xlu0 %v2478_v45 }
 0x8b8   :  { %v2463_v16 = vpop.f32.mrf.mxu3 }
 0x8b9   :  { %v4874_v6 = vmul.f32 0.17677669, %v2463_v16 }
 0x8bb   :  { %v2496_v41 = vsel %vm731_vm3, %v4874_v6, -inf }
 0x8bc   :  { %2497 = vmax.xlane.f32.xlu0 %v2496_v41 }
 0x8c0   :  { %v2465_v56 = vpop.f32.mrf.mxu3 }
 0x8c4   :  { %2494 = vmax.xlane.f32.xlu0 %v2493_v42 }
 0x8dd   :  { %2482 = vmax.xlane.f32.xlu2 %v2481_v25 }
 0x8f5   :  { %2634 = vrot.lane.b32.xlu2 %v4840_v20, %s3758_s0 }
 0x90f   :  { %v2477_v57 = vpop.xlane.xlu2 %2476 }
 0x910   :  { %v2499_v24 = vsub.f32 %v2467_v43, %v2477_v57 }
 0x912   :  { %v2507_v62 = vmul.f32 1.442695, %v2499_v24  ;;  %v2489_v21 = vpop.xlane.xlu0 %2488 }
 0x913   :  { %v2503_v31 = vsub.f32 %v2471_v40, %v2489_v21 }
 0x914   :  { %3725 = vpow2.f32 %v2507_v62 }
 0x915   :  { %v2515_v15 = vmul.f32 1.442695, %v2503_v31 }
 0x917   :  { %v2572_v29 = vpop.permute.xlu2 %2571 }
 0x918   :  { %v2577_v61 = vsel %vm833_vm2, %v2572_v29, 0 }
 0x919   :  { %2586 = vmatpush.bf16.msra.mxu2 %v2577_v61 }
 0x91a   :  { %v3726_v23 = vpop.eup %3725 }
 0x91b   :  { %v2523_v2 = vsel %vm731_vm3, %v3726_v23, 0.0 }
 0x91c   :  { %2524 = vadd.xlane.f32.xlu1 %v2523_v2 }
 0x91f   :  { %v2486_v26 = vpop.xlane.xlu0 %2485 }
 0x920   :  { %v2502_v33 = vsub.f32 %v4867_v46, %v2486_v26 }
 0x922   :  { %v2513_v40 = vmul.f32 1.442695, %v2502_v33  ;;  %v3601_v33 = vld [vmem:[%s5082_s7 + $0x18] sm:$0xff] }
 0x927   :  { %v2480_v53 = vpop.xlane.xlu0 %2479 }
 0x928   :  { %v2500_v44 = vsub.f32 %v2468_v58, %v2480_v53  ;;  %v3596_v58 = vld [vmem:[%s5080_s5 + $0x20] sm:$0xff] }
 0x92a   :  { %v2509_v1 = vmul.f32 1.442695, %v2500_v44 }
 0x92c   :  { %3727 = vpow2.f32 %v2509_v1 }
 0x92f   :  { %v2498_v28 = vpop.xlane.xlu0 %2497 }
 0x930   :  { %v2506_v50 = vsub.f32 %v4874_v6, %v2498_v28  ;;  %v3592_v6 = vld [vmem:[%s5080_s5] sm:$0xff] }
 0x932   :  { %v4884_v48 = vpop.eup %3727 }
 0x933   :  { %v2526_v20 = vsel %vm731_vm3, %v4884_v48, 0.0 }
 0x934   :  { %2527 = vadd.xlane.f32.xlu0 %v2526_v20 }
 0x935   :  { %2655 = vrot.lane.b32.xlu1 %v4742_v30, %s3758_s0  ;;  %v2490_v30 = vsel %vm731_vm3, %v2472_v37, -inf }
 0x937   :  { %v2495_v55 = vpop.xlane.xlu0 %2494 }
 0x938   :  { %v2505_v43 = vsub.f32 %v2473_v54, %v2495_v55 }
 0x93a   :  { %v2519_v19 = vmul.f32 1.442695, %v2505_v43 }
 0x950   :  { %v2483_v59 = vpop.xlane.xlu2 %2482 }
 0x951   :  { %v2501_v3 = vsub.f32 %v2469_v63, %v2483_v59 }
 0x953   :  { %v2511_v5 = vmul.f32 1.442695, %v2501_v3 }
 0x955   :  { %3729 = vpow2.f32 %v2511_v5 }
 0x956   :  { %3731 = vpow2.f32 %v2515_v15 }
 0x958   :  { %v2635_v60 = vpop.permute.xlu2 %2634 }
 0x959   :  { %v2640_v52 = vsel %vm833_vm2, %v2635_v60, 0 }
 0x95a   :  { %2649 = vmatpush.bf16.msrb.mxu3 %v2640_v52 }
 0x95b   :  { %v4891_v9 = vpop.eup %3729 }
 0x95c   :  { %v2529_v13 = vsel %vm731_vm3, %v4891_v9, 0.0  ;;  %v3732_v49 = vpop.eup %3731 }
 0x95d   :  { %2530 = vadd.xlane.f32.xlu0 %v2529_v13  ;;  %v2535_v36 = vsel %vm731_vm3, %v3732_v49, 0.0 }
 0x95f   :  { %2491 = vmax.xlane.f32.xlu1 %v2490_v30 }
 0x965   :  { %2536 = vadd.xlane.f32.xlu0 %v2535_v36 }
 0x978   :  { %2613 = vrot.lane.b32.xlu1 %v4759_v34, %s3758_s0  ;;  %v2521_v34 = vmul.f32 1.442695, %v2506_v50  ;;  %v3600_v50 = vld [vmem:[%s5082_s7 + $0x10] sm:$0xff] }
 0x979   :  { %2592 = vrot.lane.b32.xlu0 %v4752_v47, %s3758_s0 }
 0x98f   :  { %v2525_v14 = vpop.xlane.xlu1 %2524 }
 0x990   :  { %3733 = vrcp.f32 %v2525_v14 }
 0x991   :  { %3735 = vpow2.f32 %v2519_v19 }
 0x992   :  { %3737 = vpow2.f32 %v2513_v40 }
 0x993   :  { %3739 = vpow2.f32 %v2521_v34 }
 0x996   :  { %v3734_v51 = vpop.eup %3733 }
 0x997   :  { %v2555_v11 = vmul.f32 %v3734_v51, %v3726_v23  ;;  %v4904_v47 = vpop.eup %3735 }
 0x998   :  { %v4906_v12 = vpop.eup %3737  ;;  %v2541_v17 = vsel %vm731_vm3, %v4904_v47, 0.0 }
 0x999   :  { %v2563_v0 = vpack.c.bf16 %v2555_v11, %v2555_v11  ;;  %v2532_v7 = vsel %vm731_vm3, %v4906_v12, 0.0  ;;  %v4912_v18 = vpop.eup %3739 }
 0x99a   :  { %v2544_v8 = vsel %vm731_vm3, %v4912_v18, 0.0 }
 0x99b   :  { %3426 = vmatmul.msk.bf16.vlgmr.msra.gmra.mxu2 %vm731_vm3, %v2563_v0  ;;  %v2927_v0 = vld [vmem:[%s5083_s1] sm:$0xff] }
 0x9a2   :  { %2542 = vadd.xlane.f32.xlu1 %v2541_v17  ;;  %v3598_v17 = vld [vmem:[%s5082_s7] sm:$0xff] }
 0x9a3   :  { %2533 = vadd.xlane.f32.xlu0 %v2532_v7 }
 0x9a7   :  { %v2656_v46 = vpop.permute.xlu1 %2655  ;;  %v2528_v45 = vpop.xlane.xlu0 %2527 }
 0x9a8   :  { %v2661_v35 = vsel %vm833_vm2, %v2656_v46, 0 }
 0x9a9   :  { %2670 = vmatpush.bf16.msrb.mxu2 %v2661_v35 }
 0x9ab   :  { %2545 = vadd.xlane.f32.xlu0 %v2544_v8 }
 0x9ad   :  { %2857 = vmatpush.bf16.msra.mxu2 %v3597_v4 }
 0x9b1   :  { %2858 = vmatpush.bf16.msra.mxu2 %v3596_v58 }
 0x9b5   :  { %2859 = vmatpush.bf16.msra.mxu2 %v3595_v22 }
 0x9bb   :  { %2697 = vrot.lane.b32.xlu1 %v4770_v32, %s3758_s0  ;;  %v3594_v32 = vld [vmem:[%s5080_s5 + $0x10] sm:$0xff] }
 0x9bc   :  { %2860 = vmatpush.bf16.msra.mxu2 %v3594_v32 }
 0x9bf   :  { %2718 = vrot.lane.b32.xlu0 %v4845_v38, %s3758_s0  ;;  %v3593_v38 = vld [vmem:[%s5080_s5 + $0x8] sm:$0xff] }
 0x9c0   :  { %2861 = vmatpush.bf16.msra.mxu2 %v3593_v38 }
 0x9c4   :  { %2862 = vmatpush.bf16.msra.mxu2 %v3592_v6 }
 0x9c7   :  { %2930 = vrot.lane.b32.xlu0 %v2927_v0, %s3759_s3 }
 0x9d0   :  { %v2531_v16 = vpop.xlane.xlu0 %2530 }
 0x9d2   :  { %v2492_v41 = vpop.xlane.xlu1 %2491 }
 0x9d3   :  { %v2504_v54 = vsub.f32 %v2472_v37, %v2492_v41 }
 0x9d5   :  { %v2517_v56 = vmul.f32 1.442695, %v2504_v54 }
 0x9d7   :  { %3741 = vpow2.f32 %v2517_v56 }
 0x9d8   :  { %v2537_v42 = vpop.xlane.xlu0 %2536 }
 0x9d9   :  { %3743 = vrcp.f32 %v2537_v42 }
 0x9da   :  { %3745 = vrcp.f32 %v2531_v16 }
 0x9db   :  { %3747 = vrcp.f32 %v2528_v45 }
 0x9dd   :  { %v3742_v63 = vpop.eup %3741 }
 0x9de   :  { %v2538_v25 = vsel %vm731_vm3, %v3742_v63, 0.0 }
 0x9df   :  { %v3744_v57 = vpop.eup %3743  ;;  %2539 = vadd.xlane.f32.xlu2 %v2538_v25  ;;  %v3622_v25 = vld [vmem:[%s5081_s6] ss:$0 sm:$0xff] }
 0x9e0   :  { %v2559_v24 = vmul.f32 %v3744_v57, %v3732_v49  ;;  %v3746_v21 = vpop.eup %3745 }
 0x9e1   :  { %v3748_v29 = vpop.eup %3747  ;;  %v2557_v61 = vmul.f32 %v3746_v21, %v4891_v9 }
 0x9e2   :  { %v2567_v62 = vpack.c.bf16 %v2559_v24, %v2559_v24  ;;  %v2556_v23 = vmul.f32 %v3748_v29, %v4884_v48 }
 0x9e3   :  { %v2565_v1 = vpack.c.bf16 %v2557_v61, %v2557_v61 }
 0x9e4   :  { %3430 = vmatmul.msk.bf16.vlgmr.msrb.gmra.mxu2 %vm731_vm3, %v2567_v62  ;;  %v2564_v20 = vpack.c.bf16 %v2556_v23, %v2556_v23 }
 0x9ea   :  { %v2614_v2 = vpop.permute.xlu1 %2613 }
 0x9eb   :  { %v2619_v26 = vsel %vm833_vm2, %v2614_v2, 0  ;;  %v2593_v53 = vpop.permute.xlu0 %2592 }
 0x9ec   :  { %v2598_v44 = vsel %vm833_vm2, %v2593_v53, 0  ;;  %2628 = vmatpush.bf16.msrb.mxu1 %v2619_v26 }
 0x9ed   :  { %2607 = vmatpush.bf16.msrb.mxu0 %v2598_v44 }
 0x9ef   :  { %3428 = vmatmul.msk.bf16.vlgmr.msrb.gmra.mxu1 %vm731_vm3, %v2565_v1 }
 0x9f0   :  { %3427 = vmatmul.msk.bf16.vlgmr.msrb.gmra.mxu0 %vm731_vm3, %v2564_v20 }
 0x9f4   :  { %3458 = vmatmul.msk.bf16.vlgmr.msra.gmra.mxu2 %vm2226_vm12, %v4851_v39 }
 0x9f7   :  { %2676 = vrot.lane.b32.xlu2 %v4764_v27, %s3758_s0 }
 0xa15   :  { %v2543_v5 = vpop.xlane.xlu1 %2542 }
 0xa16   :  { %v2534_v48 = vpop.xlane.xlu0 %2533 }
 0xa17   :  { %3749 = vrcp.f32 %v2534_v48 }
 0xa18   :  { %3751 = vrcp.f32 %v2543_v5 }
 0xa1d   :  { %v3750_v59 = vpop.eup %3749 }
 0xa1e   :  { %v2558_v3 = vmul.f32 %v3750_v59, %v4906_v12  ;;  %v2588_v31 = vpop.f32.mrf.mxu2  ;;  %v2546_v60 = vpop.xlane.xlu0 %2545 }
 0xa1f   :  { %3753 = vrcp.f32 %v2546_v60  ;;  %v3752_v37 = vpop.eup %3751  ;;  %v2739_v34 = vsel %vm535_vm1, %v2588_v31, 0.0 }
 0xa20   :  { %v2566_v15 = vpack.c.bf16 %v2558_v3, %v2558_v3  ;;  %v2561_v39 = vmul.f32 %v3752_v37, %v4904_v47  ;;  %v3599_v47 = vld [vmem:[%s5082_s7 + $0x8] sm:$0xff]  ;;  %v2740_v12 = vrot.slane %v2739_v34, 4 }
 0xa22   :  { %3429 = vmatmul.msk.bf16.vlgmr.msrb.gmra.mxu3 %vm731_vm3, %v2566_v15  ;;  %v2569_v30 = vpack.c.bf16 %v2561_v39, %v2561_v39  ;;  %v2741_v7 = vadd.f32 %v2740_v12, %v2739_v34 }
 0xa24   :  { %v2742_v46 = vrot.slane %v2741_v7, 2 }
 0xa25   :  { %v3754_v9 = vpop.eup %3753 }
 0xa26   :  { %v2590_v52 = vpop.f32.mrf.mxu2  ;;  %v2562_v49 = vmul.f32 %v3754_v9, %v4912_v18  ;;  %v2743_v32 = vadd.f32 %v2742_v46, %v2741_v7  ;;  %v2928_v9 = vld [vmem:[%s5085_s2] sm:$0xff] }
 0xa27   :  { %2952 = vrot.lane.b32.xlu0 %v2928_v9, %s3757_s30 }
 0xa28   :  { %v2570_v55 = vpack.c.bf16 %v2562_v49, %v2562_v49  ;;  %v2744_v54 = vrot.slane %v2743_v32, 1 }
 0xa2a   :  { %v2745_v21 = vadd.f32 %v2744_v54, %v2743_v32 }
 0xa2c   :  { %v2795_v44 = vmul.f32 %v2745_v21, %v4478_v10 }
 0xa2d   :  { %v2698_v13 = vpop.permute.xlu1 %2697 }
 0xa2e   :  { %v2703_v27 = vsel %vm833_vm2, %v2698_v13, 0 }
 0xa2f   :  { %2712 = vmatpush.bf16.msra.mxu1 %v2703_v27 }
 0xa31   :  { %v2719_v36 = vpop.permute.xlu0 %2718 }
 0xa32   :  { %v2724_v28 = vsel %vm833_vm2, %v2719_v36, 0  ;;  %3432 = vmatmul.msk.bf16.vlgmr.msra.gmra.mxu1 %vm731_vm3, %v2569_v30 }
 0xa33   :  { %2733 = vmatpush.bf16.msra.mxu3 %v2724_v28 }
 0xa36   :  { %3433 = vmatmul.msk.bf16.vlgmr.msra.gmra.mxu3 %vm731_vm3, %v2570_v55 }
 0xa52   :  { %v2540_v14 = vpop.xlane.xlu2 %2539 }
 0xa53   :  { %3755 = vrcp.f32 %v2540_v14 }
 0xa59   :  { %v3756_v43 = vpop.eup %3755 }
 0xa5a   :  { %v2560_v19 = vmul.f32 %v3756_v43, %v3742_v63  ;;  %v2677_v40 = vpop.permute.xlu2 %2676 }
 0xa5b   :  { %v2682_v51 = vsel %vm833_vm2, %v2677_v40, 0 }
 0xa5c   :  { %v2568_v11 = vpack.c.bf16 %v2560_v19, %v2560_v19  ;;  %2691 = vmatpush.bf16.msra.mxu0 %v2682_v51 }
 0xa5f   :  { %3431 = vmatmul.msk.bf16.vlgmr.msra.gmra.mxu0 %vm731_vm3, %v2568_v11 }
 0xa60   :  { %2915 = vmatpush.bf16.msrb.mxu0 %v3601_v33 }
 0xa64   :  { %2916 = vmatpush.bf16.msrb.mxu0 %v3600_v50 }
 0xa67   :  { %v2672_v18 = vpop.f32.mrf.mxu2 }
 0xa68   :  { %2917 = vmatpush.bf16.msrb.mxu0 %v3599_v47  ;;  %v2767_v15 = vsel %vm535_vm1, %v2672_v18, 0.0 }
 0xa69   :  { %v2768_v60 = vrot.slane %v2767_v15, 4 }
 0xa6b   :  { %v2769_v52 = vadd.f32 %v2768_v60, %v2767_v15  ;;  %v3615_v15 = vld [vmem:[%s5088_s11 + $0x28] sm:$0xff]  ;;  %v3614_v60 = vld [vmem:[%s5088_s11 + $0x20] sm:$0xff] }
 0xa6c   :  { %2918 = vmatpush.bf16.msrb.mxu0 %v3598_v17  ;;  %v2630_v35 = vpop.f32.mrf.mxu1  ;;  %3101 = vmatpush.bf16.msrb.mxu3 %v3615_v15 }
 0xa6d   :  { %v2753_v8 = vsel %vm535_vm1, %v2630_v35, 0.0  ;;  %v2609_v4 = vpop.f32.mrf.mxu0  ;;  %v2770_v37 = vrot.slane %v2769_v52, 2 }
 0xa6e   :  { %v2754_v58 = vrot.slane %v2753_v8, 4  ;;  %v2746_v22 = vsel %vm535_vm1, %v2609_v4, 0.0 }
 0xa6f   :  { %v2747_v45 = vrot.slane %v2746_v22, 4  ;;  %v2674_v38 = vpop.f32.mrf.mxu2  ;;  %v2771_v30 = vadd.f32 %v2770_v37, %v2769_v52  ;;  %v3613_v52 = vld [vmem:[%s5088_s11 + $0x18] sm:$0xff]  ;;  %v3612_v37 = vld [vmem:[%s5088_s11 + $0x10] sm:$0xff] }
 0xa70   :  { %v2755_v16 = vadd.f32 %v2754_v58, %v2753_v8  ;;  %3102 = vmatpush.bf16.msrb.mxu3 %v3614_v60 }
 0xa71   :  { %v2748_v6 = vadd.f32 %v2747_v45, %v2746_v22  ;;  %v2772_v28 = vrot.slane %v2771_v30, 1 }
 0xa72   :  { %v2756_v41 = vrot.slane %v2755_v16, 2 }
 0xa73   :  { %v2749_v56 = vrot.slane %v2748_v6, 2  ;;  %v2773_v19 = vadd.f32 %v2772_v28, %v2771_v30 }
 0xa74   :  { %v2757_v42 = vadd.f32 %v2756_v41, %v2755_v16  ;;  %v2632_v63 = vpop.f32.mrf.mxu1  ;;  %3103 = vmatpush.bf16.msrb.mxu3 %v3613_v52 }
 0xa75   :  { %v2750_v57 = vadd.f32 %v2749_v56, %v2748_v6  ;;  %v2611_v24 = vpop.f32.mrf.mxu0  ;;  %v2799_v11 = vmul.f32 %v2773_v19, %v4478_v10  ;;  %v3610_v19 = vld [vmem:[%s5088_s11] sm:$0xff] }
 0xa76   :  { %v2758_v62 = vrot.slane %v2757_v42, 1  ;;  %v3608_v24 = vld [vmem:[%s5087_s9 + $0x30] sm:$0xff] }
 0xa77   :  { %v2751_v29 = vrot.slane %v2750_v57, 1  ;;  %v2864_v61 = vpop.f32.mrf.mxu2 }
 0xa78   :  { %v2759_v23 = vadd.f32 %v2758_v62, %v2757_v42  ;;  %v2865_v2 = vadd.f32 %v3622_v25, %v2864_v61  ;;  %v3609_v25 = vld [vmem:[%s5087_s9 + $0x38] sm:$0xff]  ;;  %3104 = vmatpush.bf16.msrb.mxu3 %v3612_v37 }
 0xa79   :  { %v2752_v26 = vadd.f32 %v2751_v29, %v2750_v57  ;;  %3027 = vmatpush.bf16.msrb.mxu1 %v3609_v25 }
 0xa7a   :  { %vm2868_vm13 = vcmp.gt.f32.partialorder %v2865_v2, 0.0  ;;  %v2869_v53 = vmul.f32 0.01, %v2865_v2  ;;  %v2797_v20 = vmul.f32 %v2759_v23, %v4478_v10  ;;  %v3607_v23 = vld [vmem:[%s5087_s9 + $0x28] sm:$0xff] }
 0xa7b   :  { %v2796_v1 = vmul.f32 %v2752_v26, %v4478_v10 }
 0xa7c   :  { %v2870_v48 = vsel %vm2868_vm13, %v2865_v2, %v2869_v53 }
 0xa7d   :  { %v2941_v59 = vsel %vm2124_vm5, %v2796_v1, %v2795_v44  ;;  %v2871_v3 = vpack.c.bf16 %v2870_v48, %v2870_v48  ;;  %3028 = vmatpush.bf16.msrb.mxu1 %v3608_v24  ;;  %v3605_v48 = vld [vmem:[%s5087_s9 + $0x18] sm:$0xff] }
 0xa7e   :  { %v2942_v31 = vsel %vm2126_vm6, %v2797_v20, %v2941_v59  ;;  %v3606_v20 = vld [vmem:[%s5087_s9 + $0x20] sm:$0xff]  ;;  %v3603_v59 = vld [vmem:[%s5087_s9 + $0x8] sm:$0xff] }
 0xa7f   :  { %v2866_v5 = vpop.f32.mrf.mxu2  ;;  %3475 = vmatmul.msk.bf16.vlgmr.msrb.gmra.mxu0 %vm335_vm0, %v2871_v3 }
 0xa80   :  { %v3602_v5 = vld [vmem:[%s5087_s9] sm:$0xff] }
 0xa81   :  { %3029 = vmatpush.bf16.msrb.mxu1 %v3607_v23 }
 0xa85   :  { %3030 = vmatpush.bf16.msrb.mxu1 %v3606_v20 }
 0xa89   :  { %3031 = vmatpush.bf16.msrb.mxu1 %v3605_v48 }
 0xaa5   :  { %v2651_v39 = vpop.f32.mrf.mxu3 }
 0xaa6   :  { %v2760_v13 = vsel %vm535_vm1, %v2651_v39, 0.0  ;;  %v3623_v39 = vld [vmem:[%s5084_s8] ss:$0 sm:$0xff] }
 0xaa7   :  { %v2761_v27 = vrot.slane %v2760_v13, 4 }
 0xaa9   :  { %v2762_v49 = vadd.f32 %v2761_v27, %v2760_v13  ;;  %v2931_v13 = vpop.permute.xlu0 %2930 }
 0xaab   :  { %v2763_v36 = vrot.slane %v2762_v49, 2 }
 0xaad   :  { %v2764_v55 = vadd.f32 %v2763_v36, %v2762_v49  ;;  %v2653_v14 = vpop.f32.mrf.mxu3 }
 0xaaf   :  { %v2765_v43 = vrot.slane %v2764_v55, 1  ;;  %v2714_v33 = vpop.f32.mrf.mxu1 }
 0xab0   :  { %v2781_v17 = vsel %vm535_vm1, %v2714_v33, 0.0  ;;  %v3611_v33 = vld [vmem:[%s5088_s11 + $0x8] sm:$0xff] }
 0xab1   :  { %v2766_v40 = vadd.f32 %v2765_v43, %v2764_v55  ;;  %v2782_v18 = vrot.slane %v2781_v17, 4  ;;  %v2953_v49 = vpop.permute.xlu0 %2952  ;;  %3105 = vmatpush.bf16.msrb.mxu3 %v3611_v33 }
 0xab3   :  { %v2798_v51 = vmul.f32 %v2766_v40, %v4478_v10  ;;  %v2783_v35 = vadd.f32 %v2782_v18, %v2781_v17  ;;  %v3624_v40 = vld [vmem:[%s5086_s10] ss:$0 sm:$0xff] }
 0xab4   :  { %v3616_v17 = vld [vmem:[%s5091_s13] sm:$0xff] }
 0xab5   :  { %v2943_v50 = vsel %vm2128_vm7, %v2798_v51, %v2942_v31  ;;  %v2784_v4 = vrot.slane %v2783_v35, 2  ;;  %3106 = vmatpush.bf16.msrb.mxu3 %v3610_v19 }
 0xab6   :  { %v2944_v0 = vsel %vm2130_vm8, %v2799_v11, %v2943_v50 }
 0xab7   :  { %v2716_v34 = vpop.f32.mrf.mxu1  ;;  %v2785_v38 = vadd.f32 %v2784_v4, %v2783_v35 }
 0xab9   :  { %v2735_v47 = vpop.f32.mrf.mxu3  ;;  %v2786_v54 = vrot.slane %v2785_v38, 1 }
 0xaba   :  { %v2788_v7 = vsel %vm535_vm1, %v2735_v47, 0.0 }
 0xabb   :  { %v2789_v46 = vrot.slane %v2788_v7, 4  ;;  %v2787_v62 = vadd.f32 %v2786_v54, %v2785_v38 }
 0xabd   :  { %v2790_v8 = vadd.f32 %v2789_v46, %v2788_v7  ;;  %v2801_v2 = vmul.f32 %v2787_v62, %v4478_v10  ;;  %v3625_v7 = vld [vmem:[%s5089_s12] ss:$0 sm:$0xff] }
 0xabf   :  { %v2791_v58 = vrot.slane %v2790_v8, 2 }
 0xac1   :  { %v2737_v12 = vpop.f32.mrf.mxu3  ;;  %v2792_v16 = vadd.f32 %v2791_v58, %v2790_v8 }
 0xac2   :  { %v3617_v12 = vld [vmem:[%s5091_s13 + $0x8] sm:$0xff] }
 0xac3   :  { %v2793_v56 = vrot.slane %v2792_v16, 1  ;;  %3145 = vmatpush.bf16.msra.mxu0 %v3617_v12 }
 0xac5   :  { %v2794_v21 = vadd.f32 %v2793_v56, %v2792_v16 }
 0xac7   :  { %v2802_v26 = vmul.f32 %v2794_v21, %v4478_v10  ;;  %3146 = vmatpush.bf16.msra.mxu0 %v3616_v17 }
 0xadc   :  { %v2693_v22 = vpop.f32.mrf.mxu0 }
 0xadd   :  { %v2774_v32 = vsel %vm535_vm1, %v2693_v22, 0.0  ;;  %v3626_v22 = vld [vmem:[%s5090_s14] ss:$0 sm:$0xff] }
 0xade   :  { %v2775_v45 = vrot.slane %v2774_v32, 4 }
 0xae0   :  { %v2776_v6 = vadd.f32 %v2775_v45, %v2774_v32 }
 0xae2   :  { %v2777_v41 = vrot.slane %v2776_v6, 2 }
 0xae4   :  { %v2778_v42 = vadd.f32 %v2777_v41, %v2776_v6  ;;  %v2695_v63 = vpop.f32.mrf.mxu0 }
 0xae6   :  { %v2779_v57 = vrot.slane %v2778_v42, 1 }
 0xae8   :  { %v2780_v29 = vadd.f32 %v2779_v57, %v2778_v42 }
 0xaea   :  { %v2800_v61 = vmul.f32 %v2780_v29, %v4478_v10  ;;  %v3604_v10 = vld [vmem:[%s5087_s9 + $0x10] sm:$0xff] }
 0xaeb   :  { %3032 = vmatpush.bf16.msrb.mxu1 %v3604_v10 }
 0xaec   :  { %v2945_v53 = vsel %vm2132_vm9, %v2800_v61, %v2944_v0 }
 0xaed   :  { %v2946_v44 = vsel %vm2134_vm10, %v2801_v2, %v2945_v53 }
 0xaee   :  { %v2947_v1 = vsel %vm2136_vm11, %v2802_v26, %v2946_v44 }
 0xaef   :  { %2948 = vrot.lane.b32.xlu2 %v2947_v1, %s3758_s0  ;;  %3033 = vmatpush.bf16.msrb.mxu1 %v3603_v59 }
 0xaf3   :  { %3034 = vmatpush.bf16.msrb.mxu1 %v3602_v5 }
 0xafc   :  { %v2920_v3 = vpop.f32.mrf.mxu0 }
 0xafd   :  { %v2921_v9 = vadd.f32 %v3623_v39, %v2920_v3 }
 0xaff   :  { %v2925_v27 = vmul.f32 0.01, %v2921_v9  ;;  %vm2924_vm14 = vcmp.gt.f32.partialorder %v2921_v9, 0.0 }
 0xb01   :  { %v2926_v30 = vsel %vm2924_vm14, %v2921_v9, %v2925_v27 }
 0xb02   :  { %v2955_v36 = vsel %vm535_vm1, %v2926_v30, %v2931_v13 }
 0xb04   :  { %v2922_v31 = vpop.f32.mrf.mxu0 }
 0xb49   :  { %v2949_v28 = vpop.permute.xlu2 %2948 }
 0xb4a   :  { %v2956_v55 = vsel %vm335_vm0, %v2955_v36, %v2949_v28 }
 0xb4b   :  { %v2957_v14 = vsel %vm2226_vm12, %v2956_v55, %v2953_v49 }
 0xb4c   :  { %v2958_v43 = vpack.c.bf16 %v2957_v14, %v2957_v14 }
 0xb4e   :  { %3035 = vmatmul.bf16.vlgmr.msrb.gmra.mxu1 %v2958_v43 }
 0xbcb   :  { %v3036_v51 = vpop.f32.mrf.mxu1 }
 0xbcc   :  { %v3037_v11 = vadd.f32 %v3624_v40, %v3036_v51 }
 0xbce   :  { %vm3040_vm15 = vcmp.gt.f32.partialorder %v3037_v11, 0.0  ;;  %v3041_v50 = vmul.f32 0.01, %v3037_v11 }
 0xbd0   :  { %v3042_v0 = vsel %vm3040_vm15, %v3037_v11, %v3041_v50 }
 0xbd1   :  { %v3043_v34 = vpack.c.bf16 %v3042_v0, %v3042_v0 }
 0xbd3   :  { %v3038_v47 = vpop.f32.mrf.mxu1  ;;  %3532 = vmatmul.msk.bf16.vlgmr.msrb.gmra.mxu3 %vm2226_vm12, %v3043_v34 }
 0xc56   :  { %v3108_v18 = vpop.f32.mrf.mxu3 }
 0xc57   :  { %v3109_v46 = vadd.f32 %v3625_v7, %v3108_v18 }
 0xc59   :  { %vm3112_vm0 = vcmp.gt.f32.partialorder %v3109_v46, 0.0  ;;  %v3113_v35 = vmul.f32 0.01, %v3109_v46 }
 0xc5b   :  { %v3114_v8 = vsel %vm3112_vm0, %v3109_v46, %v3113_v35 }
 0xc5c   :  { %v3115_v4 = vpack.c.bf16 %v3114_v8, %v3114_v8 }
 0xc5e   :  { %v3110_v58 = vpop.f32.mrf.mxu3  ;;  %3541 = vmatmul.msk.bf16.vlgmr.msra.gmra.mxu0 %vm535_vm1, %v3115_v4 }
 0xcdb   :  { %v3148_v32 = vpop.f32.mrf.mxu0 }
 0xcdc   :  { %v3149_v45 = vadd.f32 %v3626_v22, %v3148_v32 }
 0xcde   :  { %3152 = vst [vmem:[%s5092_s15] sm:$0xff] %v3149_v45 }
 0xce3   :  { %v3150_v38 = vpop.f32.mrf.mxu0 }

</bundles_post_ra>
